<compile_context>
chip_gen: v6e
topology: v6e:2x2x1
jax: 0.10.0
libtpu: 0.0.40
codegen_flags: <defaults>
</compile_context>

<pallas_src>
import functools

import jax
import jax.numpy as jnp
from jax import lax
from jax.experimental import pallas as pl
from jax.experimental.pallas import tpu as pltpu


def _conscious_layer_kernel(x_ref, mem_ref, w_ref, p_ref, out_ref, *,
                            num_heads, ln_eps):
  # x_ref:   (C, B, S, D)  bf16   -- C instances of the layer per grid step
  # mem_ref: (C, B, D, M)  bf16
  # w_ref:   (D + S + M, D) bf16  -- [Wq | Wp_ctx | Wp_mem], (in, out) layout
  # p_ref:   (4, D) f32           -- [b_q ; b_p ; ln_gamma ; ln_beta]
  C, B, S, D = x_ref.shape
  M = mem_ref.shape[-1]
  H = num_heads
  Dh = D // H
  R = C * B                                   # fused instance*batch rows

  # Row-major leading-dim merges only -> layout-free reshapes.
  x2 = x_ref[...].reshape(R * S, D)           # (R*S, D)  bf16
  mem2 = mem_ref[...].reshape(R * D, M)       # (R*D, M)  bf16

  w_q = w_ref[0:D, :]                         # (D, D) self_query weight
  w_ctx = w_ref[D:D + S, :]                   # (S, D) memory_proj rows for context
  w_mem = w_ref[D + S:D + S + M, :]           # (M, D) memory_proj rows for memory
  p = p_ref[...]
  b_q = p[0:1, :]
  b_p = p[1:2, :]
  gamma = p[2:3, :]
  beta = p[3:4, :]

  # ---------------- self-attention over the reshaped heads ----------------
  # One fat MXU push: R*S (>=256 when batched) rows x K=32 x N=32.
  q2 = jnp.dot(x2, w_q, preferred_element_type=jnp.float32) + b_q     # (R*S, D) f32

  # Exactly torch's .view(B, H, Dh, -1) per instance, with (C, B, H) merged
  # into one batch axis (-1 resolves to S; flat reinterpretation only).
  qh = q2.reshape(R * H, Dh, S).astype(jnp.bfloat16)                  # (R*H, Dh, S)
  kh = x2.reshape(R * H, Dh, S)                                       # k == v == x view

  # TODO(synk): perf item 6 — if the bundle dump shows per-head vxpose on the
  # critical path, materialize kh^T once (jnp.swapaxes/pltpu.einshape) and feed
  # a contraction-on-sublane dot_general here instead.
  scores = jnp.einsum('bid,bjd->bij', qh, kh,
                      preferred_element_type=jnp.float32)             # (R*H, Dh, Dh) f32

  # Softmax statistics in f32; exact divide (correctness-review request).
  m = jnp.max(scores, axis=-1, keepdims=True)
  e = jnp.exp(scores - m)
  attn = e / jnp.sum(e, axis=-1, keepdims=True)

  ctx = jnp.einsum('bij,bjd->bid', attn.astype(jnp.bfloat16), kh,
                   preferred_element_type=jnp.float32)                # (R*H, Dh, S) f32
  ctx2 = ctx.reshape(R * D, S).astype(jnp.bfloat16)                   # (R*D, S)

  # ------------- memory_proj(cat([context, memory], -1)) fused ------------
  # Kept as two matmuls (review item 8): avoids the in-kernel concat relayout.
  h = (jnp.dot(ctx2, w_ctx, preferred_element_type=jnp.float32)
       + jnp.dot(mem2, w_mem, preferred_element_type=jnp.float32)
       + b_p)                                                          # (R*D, D) f32

  # ---------------------- LayerNorm(D) + ReLU (f32) -----------------------
  mu = jnp.mean(h, axis=-1, keepdims=True)
  hc = h - mu
  var = jnp.mean(hc * hc, axis=-1, keepdims=True)
  y = hc * lax.rsqrt(var + ln_eps) * gamma + beta
  y = jnp.maximum(y, 0.0)
  # TODO(synk): nn.Dropout(0.1) is identity in eval mode; training-mode dropout
  # would need pltpu.prng_seed / pltpu.prng_random_bits.

  out_ref[...] = y.reshape(C, B, D, D)


def conscious_layer_forward(params, x, memory, *, num_heads,
                            instances_per_step=None):
  """Runs the ConsciousLayer forward.

  x:      (B, S, D) or (N, B, S, D)   -- N independent invocations sharing weights
  memory: (B, D, M) or (N, B, D, M)   with S + M == 2*D
  Returns (B, D, D) or (N, B, D, D) float32.
  """
  single = (x.ndim == 3)
  if single:
    x = x[None]
    memory = memory[None]
  N, B, S, D = x.shape
  M = memory.shape[-1]
  assert memory.shape == (N, B, D, M)
  assert S + M == 2 * D, "cat([context, memory], -1) must have width 2*dim"
  assert D % num_heads == 0

  # Chunk size: aim for >=256 rows per MXU push (review item 4), divide N.
  if instances_per_step is None:
    rows_per_inst = B * S
    instances_per_step = max(1, min(N, -(-256 // rows_per_inst)))
  while N % instances_per_step:
    instances_per_step -= 1
  C = instances_per_step
  grid = (N // C,)

  # bf16 operands for the MXU / half the DMA bytes (review item 5).
  x_bf = x.astype(jnp.bfloat16)
  mem_bf = memory.astype(jnp.bfloat16)
  w_bf = params["w_packed"].astype(jnp.bfloat16)
  p = params["p_packed"].astype(jnp.float32)
  WK = w_bf.shape[0]                       # D + S + M == 3*D

  kernel = functools.partial(_conscious_layer_kernel,
                             num_heads=num_heads, ln_eps=1e-5)

  out = pl.pallas_call(
      kernel,
      out_shape=jax.ShapeDtypeStruct((N, B, D, D), jnp.float32),
      grid=grid,
      in_specs=[
          pl.BlockSpec((C, B, S, D), lambda i: (i, 0, 0, 0)),
          pl.BlockSpec((C, B, D, M), lambda i: (i, 0, 0, 0)),
          # Constant block index -> weights DMA'd once, VMEM-resident across
          # every grid step (review item 1).
          pl.BlockSpec((WK, D), lambda i: (0, 0)),
          pl.BlockSpec((4, D), lambda i: (0, 0)),
      ],
      out_specs=pl.BlockSpec((C, B, D, D), lambda i: (i, 0, 0, 0)),
      compiler_params=pltpu.CompilerParams(
          dimension_semantics=("parallel",)),    # v7x: shard chunks across 2 TCs
  )(x_bf, mem_bf, w_bf, p)

  return out[0] if single else out


def init_conscious_layer(key, dim=32, num_heads=4):
  """Matches the module's xavier_uniform_ weights / zero biases; packs the
  parameters so the kernel only needs 2 parameter DMAs (done once per call)."""
  k_q, k_p = jax.random.split(key, 2)
  a_q = (6.0 / (dim + dim)) ** 0.5          # xavier bound for Linear(dim, dim)
  a_p = (6.0 / (2 * dim + dim)) ** 0.5      # xavier bound for Linear(2*dim, dim)
  w_q = jax.random.uniform(k_q, (dim, dim), jnp.float32, -a_q, a_q)       # (in, out)
  w_p = jax.random.uniform(k_p, (2 * dim, dim), jnp.float32, -a_p, a_p)   # (in, out)
  w_packed = jnp.concatenate([w_q, w_p], axis=0)                           # (3*dim, dim)
  p_packed = jnp.stack([
      jnp.zeros((dim,), jnp.float32),   # self_query bias
      jnp.zeros((dim,), jnp.float32),   # memory_proj bias
      jnp.ones((dim,), jnp.float32),    # layer_norm weight
      jnp.zeros((dim,), jnp.float32),   # layer_norm bias
  ], axis=0)                                                               # (4, dim)
  return {"w_packed": w_packed, "p_packed": p_packed, "num_heads": num_heads}


def _reference(params, x, memory, num_heads, *, mixed_precision=True):
  """Pure-JAX reference mirroring the PyTorch forward (eval mode) for
  x: (N, B, S, D), memory: (N, B, D, M).  With mixed_precision=True it applies
  the same bf16 operand casts as the kernel (review item 5) so the comparison
  tolerance can stay tight; the math/structure is identical to the module."""
  N, B, S, D = x.shape
  H, Dh = num_heads, D // num_heads
  cast = (lambda a: a.astype(jnp.bfloat16)) if mixed_precision else (lambda a: a)

  w_q = cast(params["w_packed"][:D])
  w_p = cast(params["w_packed"][D:])
  b_q, b_p, gamma, beta = params["p_packed"].astype(jnp.float32)

  xq = cast(x)
  memq = cast(memory)

  q = jnp.einsum('nbsd,de->nbse', xq, w_q,
                 preferred_element_type=jnp.float32) + b_q
  q = q.reshape(N, B, H, Dh, S)                       # torch .view(B, H, Dh, -1)
  k = xq.reshape(N, B, H, Dh, S)                      # k == v == x view

  scores = jnp.einsum('nbhid,nbhjd->nbhij', cast(q), k,
                      preferred_element_type=jnp.float32)
  attn = jax.nn.softmax(scores, axis=-1)
  ctx = jnp.einsum('nbhij,nbhjd->nbhid', cast(attn), k,
                   preferred_element_type=jnp.float32)
  ctx = ctx.reshape(N, B, D, S)                       # torch .view(B, dim, -1)

  combined = jnp.concatenate([cast(ctx), memq], axis=-1)
  out = jnp.einsum('nbdk,ke->nbde', combined, w_p,
                   preferred_element_type=jnp.float32) + b_p

  mu = out.mean(-1, keepdims=True)
  var = ((out - mu) ** 2).mean(-1, keepdims=True)
  out = (out - mu) / jnp.sqrt(var + 1e-5) * gamma + beta
  return jnp.maximum(out, 0.0)


if __name__ == "__main__":
  B, DIM, HEADS = 2, 32, 4
  SEQ = DIM      # SEQ + memory width must equal 2*dim so memory_proj type-checks
  N = 8          # 8 invocations of the layer (e.g. timestep loop) folded into one call

  root = jax.random.PRNGKey(0)
  k_params, k_x, k_mem = jax.random.split(root, 3)

  params = init_conscious_layer(k_params, dim=DIM, num_heads=HEADS)
  x = jax.random.normal(k_x, (N, B, SEQ, DIM), jnp.float32)
  memory = jax.random.normal(k_mem, (N, B, DIM, DIM), jnp.float32)

  out = conscious_layer_forward(params, x, memory, num_heads=HEADS)
  jax.block_until_ready(out)

  assert out.shape == (N, B, DIM, DIM)
  assert bool(jnp.all(jnp.isfinite(out)))
  assert bool(jnp.all(out >= 0.0))          # ReLU output

  ref = _reference(params, x, memory, HEADS)
  assert bool(jnp.allclose(out, ref, rtol=1e-2, atol=1e-2)), "mismatch vs reference"

  # Single-invocation path (original module signature) still works.
  out1 = conscious_layer_forward(params, x[0], memory[0], num_heads=HEADS)
  jax.block_until_ready(out1)
  assert out1.shape == (B, DIM, DIM)
  assert bool(jnp.allclose(out1, ref[0], rtol=1e-2, atol=1e-2)), "single-call mismatch"

  print("KERNEL_OK")
</pallas_src>

<mosaic_0001>
module attributes {stable_mosaic.version = 11 : i64} {
  func.func @_conscious_layer_kernel(%arg0: i32, %arg1: memref<4x2x32x32xbf16, #tpu.memory_space<vmem>>, %arg2: memref<4x2x32x32xbf16, #tpu.memory_space<vmem>>, %arg3: memref<96x32xbf16, #tpu.memory_space<vmem>>, %arg4: memref<4x32xf32, #tpu.memory_space<vmem>>, %arg5: memref<4x2x32x32xf32, #tpu.memory_space<vmem>>) attributes {dimension_semantics = [#tpu.dimension_semantics<parallel>], iteration_bounds = array<i64: 2>, scalar_prefetch = 0 : i64, scratch_operands = 0 : i64, tpu.core_type = #tpu.core_type<tc>, window_params = [{transform_indices = @transform_0, window_bounds = array<i64: 4, 2, 32, 32>}, {transform_indices = @transform_1, window_bounds = array<i64: 4, 2, 32, 32>}, {pipeline_mode = #tpu.pipeline_mode<synchronous>, transform_indices = @transform_2, window_bounds = array<i64: 96, 32>}, {pipeline_mode = #tpu.pipeline_mode<synchronous>, transform_indices = @transform_3, window_bounds = array<i64: 4, 32>}, {transform_indices = @transform_4, window_bounds = array<i64: 4, 2, 32, 32>}]} {
    %c0 = arith.constant 0 : index
    %c0_0 = arith.constant 0 : index
    %c0_1 = arith.constant 0 : index
    %c0_2 = arith.constant 0 : index
    %0 = vector.load %arg1[%c0, %c0_0, %c0_1, %c0_2] : memref<4x2x32x32xbf16, #tpu.memory_space<vmem>>, vector<4x2x32x32xbf16>
    %1 = vector.shape_cast %0 : vector<4x2x32x32xbf16> to vector<256x32xbf16>
    %c0_3 = arith.constant 0 : index
    %c0_4 = arith.constant 0 : index
    %c0_5 = arith.constant 0 : index
    %c0_6 = arith.constant 0 : index
    %2 = vector.load %arg2[%c0_3, %c0_4, %c0_5, %c0_6] : memref<4x2x32x32xbf16, #tpu.memory_space<vmem>>, vector<4x2x32x32xbf16>
    %3 = vector.shape_cast %2 : vector<4x2x32x32xbf16> to vector<256x32xbf16>
    %c0_7 = arith.constant 0 : index
    %c0_8 = arith.constant 0 : index
    %4 = vector.load %arg3[%c0_7, %c0_8] : memref<96x32xbf16, #tpu.memory_space<vmem>>, vector<32x32xbf16>
    %c32 = arith.constant 32 : index
    %c0_9 = arith.constant 0 : index
    %5 = vector.load %arg3[%c32, %c0_9] : memref<96x32xbf16, #tpu.memory_space<vmem>>, vector<32x32xbf16>
    %c64 = arith.constant 64 : index
    %c0_10 = arith.constant 0 : index
    %6 = vector.load %arg3[%c64, %c0_10] : memref<96x32xbf16, #tpu.memory_space<vmem>>, vector<32x32xbf16>
    %c0_11 = arith.constant 0 : index
    %c0_12 = arith.constant 0 : index
    %7 = vector.load %arg4[%c0_11, %c0_12] : memref<4x32xf32, #tpu.memory_space<vmem>>, vector<4x32xf32>
    %8 = vector.extract_strided_slice %7 {offsets = [0, 0], sizes = [1, 32], strides = [1, 1]} : vector<4x32xf32> to vector<1x32xf32>
    %9 = vector.extract_strided_slice %7 {offsets = [1, 0], sizes = [1, 32], strides = [1, 1]} : vector<4x32xf32> to vector<1x32xf32>
    %10 = vector.extract_strided_slice %7 {offsets = [2, 0], sizes = [1, 32], strides = [1, 1]} : vector<4x32xf32> to vector<1x32xf32>
    %11 = vector.extract_strided_slice %7 {offsets = [3, 0], sizes = [1, 32], strides = [1, 1]} : vector<4x32xf32> to vector<1x32xf32>
    %cst = arith.constant dense<0.000000e+00> : vector<256x32xf32>
    %12 = tpu.matmul %1, %4, %cst {dimension_numbers = #tpu.dot_dimension_numbers<[1], [0], [0], [1], [0, 0, 1, 1], [], []>} : vector<256x32xbf16>, vector<32x32xbf16>, vector<256x32xf32> -> vector<256x32xf32>
    %13 = vector.broadcast %8 : vector<1x32xf32> to vector<256x32xf32>
    %14 = arith.addf %12, %13 : vector<256x32xf32>
    %15 = vector.shape_cast %14 : vector<256x32xf32> to vector<32x8x32xf32>
    %16 = arith.truncf %15 : vector<32x8x32xf32> to vector<32x8x32xbf16>
    %17 = vector.shape_cast %1 : vector<256x32xbf16> to vector<32x8x32xbf16>
    "tpu.trace_start"() <{level = 10 : i32, message = "bid,bjd->bij"}> : () -> ()
    %cst_13 = arith.constant dense<0.000000e+00> : vector<32x8x8xf32>
    %18 = tpu.matmul %16, %17, %cst_13 {dimension_numbers = #tpu.dot_dimension_numbers<[2], [2], [1], [1], [0, 0, 0, 1, 1, 1], [0], [0]>} : vector<32x8x32xbf16>, vector<32x8x32xbf16>, vector<32x8x8xf32> -> vector<32x8x8xf32>
    "tpu.trace_stop"() : () -> ()
    %cst_14 = arith.constant dense<0xFF800000> : vector<32x8xf32>
    %19 = vector.multi_reduction <maximumf>, %18, %cst_14 [2] : vector<32x8x8xf32> to vector<32x8xf32>
    %20 = vector.shape_cast %19 : vector<32x8xf32> to vector<32x8x1xf32>
    %21 = vector.broadcast %20 : vector<32x8x1xf32> to vector<32x8x8xf32>
    %22 = arith.subf %18, %21 : vector<32x8x8xf32>
    %23 = math.exp %22 : vector<32x8x8xf32>
    %cst_15 = arith.constant dense<0.000000e+00> : vector<32x8xf32>
    %24 = vector.multi_reduction <add>, %23, %cst_15 [2] : vector<32x8x8xf32> to vector<32x8xf32>
    %25 = vector.shape_cast %24 : vector<32x8xf32> to vector<32x8x1xf32>
    %26 = vector.broadcast %25 : vector<32x8x1xf32> to vector<32x8x8xf32>
    %27 = arith.divf %23, %26 : vector<32x8x8xf32>
    %28 = arith.truncf %27 : vector<32x8x8xf32> to vector<32x8x8xbf16>
    "tpu.trace_start"() <{level = 10 : i32, message = "bij,bjd->bid"}> : () -> ()
    %cst_16 = arith.constant dense<0.000000e+00> : vector<32x8x32xf32>
    %29 = tpu.matmul %28, %17, %cst_16 {dimension_numbers = #tpu.dot_dimension_numbers<[2], [1], [1], [2], [0, 0, 0, 1, 1, 2], [0], [0]>} : vector<32x8x8xbf16>, vector<32x8x32xbf16>, vector<32x8x32xf32> -> vector<32x8x32xf32>
    "tpu.trace_stop"() : () -> ()
    %30 = vector.shape_cast %29 : vector<32x8x32xf32> to vector<256x32xf32>
    %31 = arith.truncf %30 : vector<256x32xf32> to vector<256x32xbf16>
    %cst_17 = arith.constant dense<0.000000e+00> : vector<256x32xf32>
    %32 = tpu.matmul %31, %5, %cst_17 {dimension_numbers = #tpu.dot_dimension_numbers<[1], [0], [0], [1], [0, 0, 1, 1], [], []>} : vector<256x32xbf16>, vector<32x32xbf16>, vector<256x32xf32> -> vector<256x32xf32>
    %cst_18 = arith.constant dense<0.000000e+00> : vector<256x32xf32>
    %33 = tpu.matmul %3, %6, %cst_18 {dimension_numbers = #tpu.dot_dimension_numbers<[1], [0], [0], [1], [0, 0, 1, 1], [], []>} : vector<256x32xbf16>, vector<32x32xbf16>, vector<256x32xf32> -> vector<256x32xf32>
    %34 = arith.addf %32, %33 : vector<256x32xf32>
    %35 = vector.broadcast %9 : vector<1x32xf32> to vector<256x32xf32>
    %36 = arith.addf %34, %35 : vector<256x32xf32>
    %cst_19 = arith.constant dense<0.000000e+00> : vector<256xf32>
    %37 = vector.multi_reduction <add>, %36, %cst_19 [1] : vector<256x32xf32> to vector<256xf32>
    %38 = vector.shape_cast %37 : vector<256xf32> to vector<256x1xf32>
    %cst_20 = arith.constant 3.200000e+01 : f32
    %39 = vector.broadcast %cst_20 : f32 to vector<256x1xf32>
    %40 = arith.divf %38, %39 : vector<256x1xf32>
    %41 = vector.broadcast %40 : vector<256x1xf32> to vector<256x32xf32>
    %42 = arith.subf %36, %41 : vector<256x32xf32>
    %43 = arith.mulf %42, %42 : vector<256x32xf32>
    %cst_21 = arith.constant dense<0.000000e+00> : vector<256xf32>
    %44 = vector.multi_reduction <add>, %43, %cst_21 [1] : vector<256x32xf32> to vector<256xf32>
    %45 = vector.shape_cast %44 : vector<256xf32> to vector<256x1xf32>
    %cst_22 = arith.constant 3.200000e+01 : f32
    %46 = vector.broadcast %cst_22 : f32 to vector<256x1xf32>
    %47 = arith.divf %45, %46 : vector<256x1xf32>
    %cst_23 = arith.constant 9.99999974E-6 : f32
    %48 = vector.broadcast %cst_23 : f32 to vector<256x1xf32>
    %49 = arith.addf %47, %48 : vector<256x1xf32>
    %50 = math.rsqrt %49 : vector<256x1xf32>
    %51 = vector.broadcast %50 : vector<256x1xf32> to vector<256x32xf32>
    %52 = arith.mulf %42, %51 : vector<256x32xf32>
    %53 = vector.broadcast %10 : vector<1x32xf32> to vector<256x32xf32>
    %54 = arith.mulf %52, %53 : vector<256x32xf32>
    %55 = vector.broadcast %11 : vector<1x32xf32> to vector<256x32xf32>
    %56 = arith.addf %54, %55 : vector<256x32xf32>
    %cst_24 = arith.constant 0.000000e+00 : f32
    %57 = vector.broadcast %cst_24 : f32 to vector<256x32xf32>
    %58 = arith.maximumf %56, %57 : vector<256x32xf32>
    %59 = vector.shape_cast %58 : vector<256x32xf32> to vector<4x2x32x32xf32>
    %c0_25 = arith.constant 0 : index
    %c0_26 = arith.constant 0 : index
    %c0_27 = arith.constant 0 : index
    %c0_28 = arith.constant 0 : index
    %60 = vector.load %arg5[%c0_25, %c0_26, %c0_27, %c0_28] : memref<4x2x32x32xf32, #tpu.memory_space<vmem>>, vector<4x2x32x32xf32>
    tpu.vector_store %arg5[%c0_25, %c0_26, %c0_27, %c0_28], %59 {strides = array<i32>} : memref<4x2x32x32xf32, #tpu.memory_space<vmem>>, vector<4x2x32x32xf32>,
    return
  }
  func.func @transform_0(%arg0: i32) -> (i32, i32, i32, i32) {
    %c0_i32 = arith.constant 0 : i32
    %c0_i32_0 = arith.constant 0 : i32
    %c0_i32_1 = arith.constant 0 : i32
    %c0_i32_2 = arith.constant 0 : i32
    return %arg0, %c0_i32, %c0_i32_0, %c0_i32_1 : i32, i32, i32, i32
  }
  func.func @transform_1(%arg0: i32) -> (i32, i32, i32, i32) {
    %c0_i32 = arith.constant 0 : i32
    %c0_i32_0 = arith.constant 0 : i32
    %c0_i32_1 = arith.constant 0 : i32
    %c0_i32_2 = arith.constant 0 : i32
    return %arg0, %c0_i32, %c0_i32_0, %c0_i32_1 : i32, i32, i32, i32
  }
  func.func @transform_2(%arg0: i32) -> (i32, i32) {
    %c0_i32 = arith.constant 0 : i32
    %c0_i32_0 = arith.constant 0 : i32
    %c0_i32_1 = arith.constant 0 : i32
    return %c0_i32, %c0_i32_0 : i32, i32
  }
  func.func @transform_3(%arg0: i32) -> (i32, i32) {
    %c0_i32 = arith.constant 0 : i32
    %c0_i32_0 = arith.constant 0 : i32
    %c0_i32_1 = arith.constant 0 : i32
    return %c0_i32, %c0_i32_0 : i32, i32
  }
  func.func @transform_4(%arg0: i32) -> (i32, i32, i32, i32) {
    %c0_i32 = arith.constant 0 : i32
    %c0_i32_0 = arith.constant 0 : i32
    %c0_i32_1 = arith.constant 0 : i32
    %c0_i32_2 = arith.constant 0 : i32
    return %arg0, %c0_i32, %c0_i32_0, %c0_i32_1 : i32, i32, i32, i32
  }
}

</mosaic_0001>

<bundles_post_ra>
// kernel: tpu_custom_call.1
= control target key start
LH: loop header
LB: loop body
LE: loop exit
PB: predicated region body
PF: predicated region fallthrough
CT: control target
= control target key end

     0   :  { %9 = vsyncpa [#allocation3], 0  ;;  %s8278_s0 = inlined_call_operand.hbm [shape: bf16[8,2,32,32], index: 0, kind: input, shape index: {}]   ;;  %s8279_s1 = inlined_call_operand.hbm [shape: bf16[8,2,32,32], index: 1, kind: input, shape index: {}]   ;;  %s8280_s2 = inlined_call_operand.vmem [shape: bf16[96,32], index: 2, kind: input, shape index: {}]   ;;  %s8281_s3 = inlined_call_operand.vmem [shape: f32[4,32], index: 3, kind: input, shape index: {}]   ;;  %s8282_s4 = inlined_call_operand.hbm [shape: f32[8,2,32,32], index: 4, kind: output, shape index: {}]  }
   0x1   :  { %11 = vsyncpa [#allocation3 + $0x1], 0 }
   0x2   :  { %12 = vsyncpa [#allocation6], 0 }
   0x3   :  { %14 = vsyncpa [#allocation6 + $0x1], 0 }
   0x4   :  { %15 = vsyncpa [#allocation4], 0 }
   0x5   :  { %17 = vsyncpa [#allocation4 + $0x1], 0  ;;  %s6544_s15 = smov 0   ;;  %s6546_s16 = smov 0  }
   0x6   :  { %s6548_s17 = smov 0   ;;  %s6550_s18 = smov 0  }
   0x7 LB: > { %s6565_s19 = sadd.s32 4294967295, %s6508_s18   ;;  %s5213_s20 = sadd.s32 4294967294, %s6508_s18   ;;  %s6508_s18 = sphi %s6550_s18, %s8298_s18   ;;  %s6504_s17 = sphi %s6548_s17, %s8297_s17   ;;  %s6500_s16 = sphi %s6546_s16, %s8296_s16   ;;  %s6496_s15 = sphi %s6544_s15, %s8295_s15  }
   0x8   : > { %s6569_s21 = sadd.s32 1, %s6508_s18   ;;  %s30_s22 = sadd.s32 1, %s6504_s17 }
   0x9   : > { %s27_s23 = ssub.s32 %s6508_s18, %s6569_s21  ;;  %p37_p0 = scmp.ne.s32.totalorder %s6504_s17, %s6500_s16 }
   0xa   : > { %p28_p1 = scmp.eq.s32.totalorder %s27_s23, 0  ;;  %p38_p2 = scmp.eq.s32.totalorder %s6508_s18, 0 }
   0xb   : > { %p43_p3 = scmp.ne.s32.totalorder %s6500_s16, %s6496_s15  ;;  %p44_p4 = scmp.eq.s32.totalorder %s6565_s19, 0 }
   0xc   : > { %s6581_s24 = scalar_select %p28_p1, %s6504_s17, %s30_s22  }
   0xd   : > { %p6583_p5 = por %p38_p2, %p37_p0  ;;  %p6587_p6 = por %p44_p4, %p43_p3 }
   0xe   : > { %p135_p7 = scmp.eq.s32.totalorder %s6565_s19, 1  ;;  %p141_p8 = scmp.eq.s32.totalorder %s5213_s20, 1 }
   0xf   : > { %s8286_s26 = scalar_select %p6587_p6, 1, 0 }
  0x10   : > { %p6081_p10 = scmp.lt.s32.totalorder %s6508_s18, 2  ;;  %p6594_p11 = por %p135_p7, %p37_p0 }
  0x11   : > { %p6598_p12 = por %p141_p8, %p43_p3  ;;  %s6603_s29 = sand.u32 1, %s6504_s17  }
  0x12   : > { %s8287_s27 = scalar_select %p6594_p11, 1, 0 }
  0x13   : > { %s8288_s28 = scalar_select %p6598_p12, 1, 0 }
  0x14   : > { %s5385_s30 = sshll.u32 %s6508_s18, 11  ;;  %s5216_s5 = sshll.u32 %s6603_s29, 7 }
  0x15   : > { %s6612_s8 = scalar_lea.hbm %s8278_s0, %s5385_s30  ;;  %s171_s9 = scalar_lea.vmem [#allocation2], %s5216_s5 }
  0x16   : > { %s179_s10 = sshll.u32 %s171_s9, 4  ;;  %p6618_p13 = pnand %p6081_p10, %p6583_p5  ;;  %s6622_s10 = int_to_ptr.vmem [resolvable:$true] %s179_s10 }
  0x17   : > { %s168_s12 = scalar_lea.sflag [#allocation3], %s6603_s29  ;;  %s6384_s13 = scalar_lea.hbm %s6612_s8, 2048 }
  0x18   : > { %p6385_p0 = scmp.ne.s32.totalorder %s6612_s8, %s6384_s13  ;;  %p6386_p1 = pneg %p6618_p13 }
  0x19   : > { %s6389_s22 = scalar_lea.hbm %s8278_s0, 4096  ;;  %p6390_p4 = scmp.lt.s32.totalorder %s6612_s8, %s8278_s0 }
  0x1a   : > { %p6387_p2 = pnand %p6386_p1, %p6385_p0  ;;  %p6391_p5 = scmp.lt.s32.totalorder %s6389_s22, %s6384_s13 }
  0x1c   : > { %p6388_p3 = pneg %p6387_p2  ;;  %p6392_p7 = por %p6391_p5, %p6390_p4 }
  0x1e   : > { %p6393_p8 = pnand %p6392_p7, %p6388_p3 }
  0x20   : > { %6396 = shalt.err (!%p6393_p8)
}
  0x21   : > { %s6397_s6 = scalar_lea.vmem %s6622_s10, 2048  ;;  %s6510_s7 = smov [#allocation2]  }
  0x22   : > { %p6398_p10 = scmp.ne.s32.totalorder %s6622_s10, %s6397_s6  ;;  %s6402_s9 = sshll.u32 %s6510_s7, 4  ;;  %s6403_s9 = int_to_ptr.vmem [resolvable:$false] %s6402_s9 }
  0x23   : > { %s6404_s14 = scalar_lea.vmem %s6403_s9, 4096  ;;  %p6405_p9 = scmp.lt.s32.totalorder %s6622_s10, %s6403_s9 }
  0x24   : > { %p6400_p0 = pnand %p6398_p10, %p6386_p1  ;;  %p6406_p12 = scmp.lt.s32.totalorder %s6404_s14, %s6397_s6 }
  0x26   : > { %p6401_p2 = pneg %p6400_p0  ;;  %p6407_p11 = por %p6406_p12, %p6405_p9 }
  0x28   : > { %p6408_p4 = pnand %p6407_p11, %p6401_p2 }
  0x2a   : > { %6411 = shalt.err (!%p6408_p4)
}
  0x2b   : > { %s6511_s13 = smov 64   ;;  %s6512_s20 = smov 4  }
  0x2c   : > { %6073 = dma.hbm_to_vmem [thread:$0]  (!%p6618_p13), %s6612_s8, 2048, %s6622_s10, %s168_s12, %s6511_s13, %s6511_s13, %s6512_s20  }
  0x2d   : > { %p5224_p9 = scmp.ge.s32.totalorder %s6508_s18, 1  ;;  %p209_p11 = scmp.lt.s32.totalorder %s6508_s18, 3 }
  0x2e   : > { %s6665_s6 = scalar_lea.hbm %s8279_s1, %s5385_s30  ;;  %s193_s7 = scalar_lea.vmem [#allocation5], %s5216_s5 }
  0x2f   : > { %p6656_p12 = pnand %p5224_p9, %p209_p11  ;;  %s201_s9 = sshll.u32 %s193_s7, 4  ;;  %s6669_s9 = int_to_ptr.vmem [resolvable:$true] %s201_s9 }
  0x30   : > { %s190_s8 = scalar_lea.sflag [#allocation6], %s6603_s29  ;;  %s6412_s10 = scalar_lea.hbm %s6665_s6, 2048 }
  0x31   : > { %p6413_p3 = scmp.ne.s32.totalorder %s6665_s6, %s6412_s10  ;;  %s6417_s30 = scalar_lea.hbm %s8279_s1, 4096 }
  0x32   : > { %p6418_p8 = scmp.lt.s32.totalorder %s6665_s6, %s8279_s1  ;;  %p6419_p10 = scmp.lt.s32.totalorder %s6417_s30, %s6412_s10 }
  0x33   : > { %p6415_p5 = pnand %p6413_p3, %p6386_p1 }
  0x34   : > { %p6420_p0 = por %p6419_p10, %p6418_p8 }
  0x35   : > { %p6416_p7 = pneg %p6415_p5 }
  0x37   : > { %p6421_p2 = pnand %p6420_p0, %p6416_p7 }
  0x39   : > { %6424 = shalt.err (!%p6421_p2)
}
  0x3a   : > { %s6425_s29 = scalar_lea.vmem %s6669_s9, 2048  ;;  %s6513_s5 = smov [#allocation5]  }
  0x3b   : > { %p6426_p4 = scmp.ne.s32.totalorder %s6669_s9, %s6425_s29  ;;  %s6430_s7 = sshll.u32 %s6513_s5, 4  ;;  %s6431_s7 = int_to_ptr.vmem [resolvable:$false] %s6430_s7 }
  0x3c   : > { %s6432_s12 = scalar_lea.vmem %s6431_s7, 4096  ;;  %p6433_p3 = scmp.lt.s32.totalorder %s6669_s9, %s6431_s7 }
  0x3d   : > { %p6428_p9 = pnand %p6426_p4, %p6386_p1  ;;  %p6434_p5 = scmp.lt.s32.totalorder %s6432_s12, %s6425_s29 }
  0x3f   : > { %p6429_p11 = pneg %p6428_p9  ;;  %p6435_p6 = por %p6434_p5, %p6433_p3 }
  0x41   : > { %p6436_p8 = pnand %p6435_p6, %p6429_p11 }
  0x43   : > { %6439 = shalt.err (!%p6436_p8)
}
  0x44   : > { %6076 = dma.hbm_to_vmem [thread:$0]  (!%p6618_p13), %s6665_s6, 2048, %s6669_s9, %s190_s8, %s6511_s13, %s6511_s13, %s6512_s20  }
  0x45   : > { %213 = sbr.rel (%p6656_p12) target bundleno = 1735 (0x6c7), region = 36  ;;  %s6700_s10 = sand.u32 (!%p6656_p12), 1, %s6500_s16  }
  0x46   : > { %s5225_s14 = sshll.u32 (!%p6656_p12), %s6700_s10, 7  ;;  %s216_s30 = scalar_lea.sflag (!%p6656_p12), [#allocation3], %s6700_s10 }
  0x47   : > { %s6704_s23 = scalar_lea.vmem (!%p6656_p12), [#allocation2], %s5225_s14  ;;  %p8291_p6 = scmp.ne.s32.totalorder (!%p6656_p12), %s8286_s26, 0 }
  0x4a   : > { %6483 = dma.done.wait (%p8291_p6), %s216_s30, 2048  }
  0x4b   : > { %6485 = vsyncadd (%p8291_p6), %s216_s30, 4294965248  ;;  %s225_s11 = scalar_lea.sflag [#allocation6], %s6700_s10  ;;  %s6711_s13 = scalar_lea.vmem [#allocation5], %s5225_s14 }
  0x4c   : > { %6487 = dma.done.wait (%p8291_p6), %s225_s11, 2048  }
  0x4d   : > { %6489 = vsyncadd (%p8291_p6), %s225_s11, 4294965248  ;;  %v6514_v0 = vmov 0.0   ;;  %v6121_v1 = vld [vmem:[%s8280_s2 + $0x8] sm:$0xff]   ;;  %v6122_v2 = vld [vmem:[%s8280_s2] sm:$0xff]   ;;  %vm435_vm0 = vcmask 261120   ;;  %vm6515_vm1 = vmmov 0   ;;  %v339_v53 = vlaneseq }
  0x4e   : > { %5608 = vmatprep.subr.bf16.mxu1 %v6514_v0  ;;  %5572 = vmatprep.subr.bf16.mxu0 %v6121_v1  ;;  %v262_v3 = vld [vmem:[%s6704_s23] sm:$0xf]  ;;  %v6726_v4 = vld [vmem:[%s6704_s23 + $0x4] sm:$0xf]  ;;  %v6730_v6 = vld [vmem:[%s6704_s23 + $0x8] sm:$0xf] }
  0x4f   : > { %5573 = vmatpush3.bf16.msra.mxu0 %v6121_v1  ;;  %v5228_v5 = vcombine.low %v262_v3, %v6726_v4  ;;  %v6733_v7 = vld [vmem:[%s6704_s23 + $0xc] sm:$0xf]  ;;  %v6736_v8 = vld [vmem:[%s6704_s23 + $0x10] sm:$0xf]  ;;  %v6739_v9 = vld [vmem:[%s6704_s23 + $0x14] sm:$0xf]  ;;  %5610 = vmatprep.mubr.msk.bf16.mxu1 %vm6515_vm1, %v6514_v0 }
  0x50   : > { %5574 = vmatprep.subr.bf16.mxu0 %v6122_v2  ;;  %v5229_v10 = vcombine.low %v6730_v6, %v6733_v7  ;;  %v5230_v11 = vcombine.low %v6736_v8, %v6739_v9  ;;  %v6750_v12 = vld [vmem:[%s6704_s23 + $0x18] sm:$0xf]  ;;  %v6753_v13 = vld [vmem:[%s6704_s23 + $0x1c] sm:$0xf]  ;;  %v270_v14 = vld [vmem:[%s6704_s23 + $0x20] sm:$0xf] }
  0x51   : > { %5576 = vmatprep.mubr.msk.bf16.mxu0 %vm435_vm0, %v5228_v5  ;;  %v6757_v15 = vld [vmem:[%s6704_s23 + $0x24] sm:$0xf]  ;;  %v681_v16 = vsel %vm435_vm0, %v262_v3, 0  ;;  %v5231_v17 = vcombine.low %v6750_v12, %v6753_v13  ;;  %v6765_v19 = vld [vmem:[%s6704_s23 + $0x28] sm:$0xf]  ;;  %v1049_v52 = vsel %vm435_vm0, %v270_v14, 0 }
  0x52   : > { %5609 = vmatpush3.bf16.xpose.msra.mxu1 %v681_v16  ;;  %v5232_v18 = vcombine.low %v270_v14, %v6757_v15  ;;  %v6768_v20 = vld [vmem:[%s6704_s23 + $0x2c] sm:$0xf]  ;;  %v6772_v21 = vld [vmem:[%s6704_s23 + $0x30] sm:$0xf]  ;;  %v6775_v22 = vld [vmem:[%s6704_s23 + $0x34] sm:$0xf] }
  0x53   : > { %5575 = vmatpush3.bf16.msra.mxu0 %v6122_v2  ;;  %5614 = vmatprep.subr.bf16.mxu1 %v6514_v0  ;;  %v5233_v23 = vcombine.low %v6765_v19, %v6768_v20  ;;  %v5234_v24 = vcombine.low %v6772_v21, %v6775_v22  ;;  %v6785_v25 = vld [vmem:[%s6704_s23 + $0x38] sm:$0xf]  ;;  %v6788_v26 = vld [vmem:[%s6704_s23 + $0x3c] sm:$0xf]  ;;  %v6791_v27 = vld [vmem:[%s6704_s23 + $0x40] sm:$0xf] }
  0x54   : > { %5656 = vmatprep.subr.bf16.mxu0 %v6514_v0  ;;  %v6794_v28 = vld [vmem:[%s6704_s23 + $0x44] sm:$0xf]  ;;  %v5235_v29 = vcombine.low %v6785_v25, %v6788_v26  ;;  %v6803_v31 = vld [vmem:[%s6704_s23 + $0x48] sm:$0xf]  ;;  %v6806_v32 = vld [vmem:[%s6704_s23 + $0x4c] sm:$0xf] }
  0x55   : > { %v5236_v30 = vcombine.low %v6791_v27, %v6794_v28  ;;  %v6809_v33 = vld [vmem:[%s6704_s23 + $0x50] sm:$0xf]  ;;  %v6812_v34 = vld [vmem:[%s6704_s23 + $0x54] sm:$0xf]  ;;  %v5237_v35 = vcombine.low %v6803_v31, %v6806_v32  ;;  %v6821_v37 = vld [vmem:[%s6704_s23 + $0x58] sm:$0xf] }
  0x56   : > { %5577 = vmatmul.mubr.msk.bf16.vlgmr.msra.gmra.mxu0 %vm435_vm0, %v5229_v10  ;;  %v5238_v36 = vcombine.low %v6809_v33, %v6812_v34  ;;  %v6824_v38 = vld [vmem:[%s6704_s23 + $0x5c] sm:$0xf]  ;;  %v6827_v39 = vld [vmem:[%s6704_s23 + $0x60] sm:$0xf]  ;;  %v6830_v40 = vld [vmem:[%s6704_s23 + $0x64] sm:$0xf] }
  0x57   : > { %5580 = vmatprep.mubr.msk.bf16.mxu0 %vm435_vm0, %v5230_v11  ;;  %v5239_v41 = vcombine.low %v6821_v37, %v6824_v38  ;;  %v5240_v42 = vcombine.low %v6827_v39, %v6830_v40  ;;  %v6839_v43 = vld [vmem:[%s6704_s23 + $0x68] sm:$0xf]  ;;  %v6842_v44 = vld [vmem:[%s6704_s23 + $0x6c] sm:$0xf]  ;;  %v6845_v45 = vld [vmem:[%s6704_s23 + $0x70] sm:$0xf]  ;;  %5657 = vmatpush3.bf16.xpose.msra.mxu0 %v1049_v52 }
  0x58   : > { %v6848_v46 = vld [vmem:[%s6704_s23 + $0x74] sm:$0xf]  ;;  %v5241_v47 = vcombine.low %v6839_v43, %v6842_v44  ;;  %v6857_v49 = vld [vmem:[%s6704_s23 + $0x78] sm:$0xf]  ;;  %v6860_v50 = vld [vmem:[%s6704_s23 + $0x7c] sm:$0xf]  ;;  %5668 = vmatprep.subr.bf16.mxu0 %v6514_v0 }
  0x59   : > { %v5242_v48 = vcombine.low %v6845_v45, %v6848_v46  ;;  %v5243_v51 = vcombine.low %v6857_v49, %v6860_v50  ;;  %v6871_v54 = vshrl.u32 %v339_v53, 7  ;;  %v338_v56 = vld [vmem:[%s8281_s3] sm:$0xf]  ;;  %v727_v63 = vsel %vm435_vm0, %v6726_v4, 0  ;;  %s5227_s20 = sshll.u32 %s6700_s10, 8  ;;  %s5389_s6 = sshll.u32 %s6565_s19, 12 }
  0x5a   : > { %v773_v4 = vsel %vm435_vm0, %v6730_v6, 0  ;;  %v819_v6 = vsel %vm435_vm0, %v6733_v7, 0  ;;  %v1233_v52 = vsel %vm435_vm0, %v6772_v21, 0  ;;  %vm2149_vm2 = vcmask 64512   ;;  %s8073_s22 = scalar_lea.vmem [#allocation7], %s5227_s20  ;;  %s8231_s25 = scalar_lea.hbm %s8282_s4, %s5389_s6 }
  0x5b   : > { %v341_v55 = vsub.s32 0, %v6871_v54  ;;  %vm2537_vm3 = vcmask 1043456   ;;  %s5117_s9 = sshll.u32 %s8073_s22, 4  ;;  %s5103_s19 = scalar_lea.sflag [#allocation4], %s6700_s10  ;;  %s8233_s9 = int_to_ptr.vmem [resolvable:$true] %s5117_s9 }
  0x5c   : > { %s6440_s29 = scalar_lea.vmem %s8233_s9, 4096  ;;  %p8292_p1 = scmp.ne.s32.totalorder %s8287_s27, 0 }
  0x5d   : > { %v6877_v58 = vrot.slane %v338_v56, %v341_v55  ;;  %v911_v56 = vsel %vm435_vm0, %v6739_v9, 0  ;;  %p6441_p13 = scmp.ne.s32.totalorder %s8233_s9, %s6440_s29  ;;  %s6516_s5 = smov [#allocation7]  }
  0x5e   : > { %5581 = vmatmul.mubr.msk.bf16.gmra.mxu0 %vm435_vm0, %v5231_v17  ;;  %s6444_s7 = sshll.u32 %s6516_s5, 4  ;;  %s6445_s7 = int_to_ptr.vmem [resolvable:$false] %s6444_s7 }
  0x5f   : > { %5584 = vmatprep.mubr.msk.bf16.mxu0 %vm435_vm0, %v5232_v18  ;;  %p6442_p12 = pnand %p6441_p13, %p8292_p1  ;;  %s6446_s12 = scalar_lea.vmem %s6445_s7, 8192 }
  0x60   : > { %p6447_p10 = scmp.lt.s32.totalorder %s8233_s9, %s6445_s7  ;;  %p6448_p0 = scmp.lt.s32.totalorder %s6446_s12, %s6440_s29 }
  0x61   : > { %p6443_p7 = pneg %p6442_p12 }
  0x62   : > { %p6449_p2 = por %p6448_p0, %p6447_p10 }
  0x64   : > { %p6450_p4 = pnand %p6449_p2, %p6443_p7 }
  0x66   : > { %5585 = vmatmul.mubr.msk.bf16.gmra.mxu0 %vm435_vm0, %v5233_v23 }
  0x67   : > { %5588 = vmatprep.mubr.msk.bf16.mxu0 %vm435_vm0, %v5234_v24 }
  0x6e   : > { %5589 = vmatmul.mubr.msk.bf16.gmra.mxu0 %vm435_vm0, %v5235_v29 }
  0x6f   : > { %5592 = vmatprep.mubr.msk.bf16.mxu0 %vm435_vm0, %v5236_v30 }
  0x76   : > { %5593 = vmatmul.mubr.msk.bf16.gmra.mxu0 %vm435_vm0, %v5237_v35  ;;  %v1141_v35 = vsel %vm435_vm0, %v6765_v19, 0 }
  0x77   : > { %5596 = vmatprep.mubr.msk.bf16.mxu0 %vm435_vm0, %v5238_v36 }
  0x7e   : > { %5597 = vmatmul.mubr.msk.bf16.gmra.mxu0 %vm435_vm0, %v5239_v41 }
  0x7f   : > { %5600 = vmatprep.mubr.msk.bf16.mxu0 %vm435_vm0, %v5240_v42 }
  0x86   : > { %5601 = vmatmul.mubr.msk.bf16.gmra.mxu0 %vm435_vm0, %v5241_v47 }
  0x87   : > { %5604 = vmatprep.mubr.msk.bf16.mxu0 %vm435_vm0, %v5242_v48  ;;  %v865_v48 = vsel %vm435_vm0, %v6736_v8, 0 }
  0x8e   : > { %5605 = vmatmul.mubr.msk.bf16.gmra.mxu0 %vm435_vm0, %v5243_v51 }
  0x8f   : > { %5658 = vmatprep.mubr.msk.bf16.mxu0 %vm6515_vm1, %v6514_v0 }
 0x116   : > { %v5578_v57 = vpop.f32.mrf.mxu0 }
 0x117   : > { %v527_v17 = vadd.f32 %v5578_v57, %v6877_v58 }
 0x118   : > { %v518_v59 = vpop.f32.mrf.mxu0 }
 0x119   : > { %v519_v60 = vadd.f32 %v518_v59, %v6877_v58  ;;  %v647_v29 = vpack.c.bf16 %v527_v17, %v527_v17  ;;  %v1509_v17 = vsel %vm435_vm0, %v6803_v31, 0 }
 0x11a   : > { %v5579_v61 = vpop.f32.mrf.mxu0 }
 0x11b   : > { %v645_v62 = vpack.c.bf16 %v519_v60, %v519_v60  ;;  %v530_v41 = vadd.f32 %v5579_v61, %v6877_v58  ;;  %v1325_v60 = vsel %vm435_vm0, %v6785_v25, 0 }
 0x11c   : > { %v521_v1 = vpop.f32.mrf.mxu0 }
 0x11d   : > { %5611 = vmatmul.mubr.msk.bf16.vlgmr.msra.gmra.mxu1 %vm435_vm0, %v645_v62  ;;  %v522_v3 = vadd.f32 %v521_v1, %v6877_v58  ;;  %v648_v19 = vpack.c.bf16 %v530_v41, %v530_v41  ;;  %v957_v1 = vsel %vm435_vm0, %v6750_v12, 0 }
 0x11e   : > { %5615 = vmatpush3.bf16.xpose.msra.mxu1 %v727_v63  ;;  %5616 = vmatprep.mubr.msk.bf16.mxu1 %vm6515_vm1, %v6514_v0  ;;  %v6885_v2 = vpop.f32.mrf.mxu0 }
 0x11f   : > { %5620 = vmatprep.subr.bf16.mxu1 %v6514_v0  ;;  %v646_v11 = vpack.c.bf16 %v522_v3, %v522_v3 }
 0x120   : > { %v534_v5 = vpop.f32.mrf.mxu0 }
 0x121   : > { %v535_v53 = vadd.f32 %v534_v5, %v6877_v58  ;;  %v1417_v5 = vsel %vm435_vm0, %v6791_v27, 0 }
 0x122   : > { %v6889_v10 = vpop.f32.mrf.mxu0 }
 0x123   : > { %v649_v21 = vpack.c.bf16 %v535_v53, %v535_v53 }
 0x124   : > { %v537_v14 = vpop.f32.mrf.mxu0 }
 0x125   : > { %5617 = vmatmul.mubr.msk.bf16.vlgmr.msra.gmra.mxu1 %vm435_vm0, %v646_v11  ;;  %v538_v61 = vadd.f32 %v537_v14, %v6877_v58  ;;  %v543_v11 = vadd.f32 %v6885_v2, %v6877_v58  ;;  %v1003_v14 = vsel %vm435_vm0, %v6753_v13, 0 }
 0x126   : > { %5621 = vmatpush3.bf16.xpose.msra.mxu1 %v773_v4  ;;  %5622 = vmatprep.mubr.msk.bf16.mxu1 %vm6515_vm1, %v6514_v0  ;;  %v5586_v16 = vpop.f32.mrf.mxu0 }
 0x127   : > { %5626 = vmatprep.subr.bf16.mxu1 %v6514_v0  ;;  %v559_v42 = vadd.f32 %v5586_v16, %v6877_v58  ;;  %v650_v25 = vpack.c.bf16 %v538_v61, %v538_v61  ;;  %v651_v27 = vpack.c.bf16 %v543_v11, %v543_v11 }
 0x128   : > { %v550_v18 = vpop.f32.mrf.mxu0 }
 0x129   : > { %v551_v23 = vadd.f32 %v550_v18, %v6877_v58  ;;  %v655_v47 = vpack.c.bf16 %v559_v42, %v559_v42  ;;  %v546_v18 = vadd.f32 %v6889_v10, %v6877_v58 }
 0x12a   : > { %v6899_v24 = vpop.f32.mrf.mxu0 }
 0x12b   : > { %v653_v30 = vpack.c.bf16 %v551_v23, %v551_v23  ;;  %v652_v31 = vpack.c.bf16 %v546_v18, %v546_v18  ;;  %v1831_v18 = vsel %vm435_vm0, %v6830_v40, 0 }
 0x12c   : > { %v6905_v36 = vpop.f32.mrf.mxu0 }
 0x12d   : > { %5623 = vmatmul.mubr.msk.bf16.vlgmr.msra.gmra.mxu1 %vm435_vm0, %v647_v29  ;;  %5659 = vmatmul.mubr.msk.bf16.vlgmr.msra.gmra.mxu0 %vm435_vm0, %v653_v30  ;;  %v554_v10 = vadd.f32 %v6905_v36, %v6877_v58 }
 0x12e   : > { %5627 = vmatpush3.bf16.xpose.msra.mxu1 %v819_v6  ;;  %5628 = vmatprep.mubr.msk.bf16.mxu1 %vm6515_vm1, %v6514_v0  ;;  %v5590_v7 = vpop.f32.mrf.mxu0  ;;  %v1095_v6 = vsel %vm435_vm0, %v6757_v15, 0 }
 0x12f   : > { %5632 = vmatprep.subr.bf16.mxu1 %v6514_v0  ;;  %5669 = vmatpush3.bf16.xpose.msra.mxu0 %v1141_v35  ;;  %v575_v62 = vadd.f32 %v5590_v7, %v6877_v58  ;;  %v1601_v35 = vsel %vm435_vm0, %v6809_v33, 0  ;;  %v654_v15 = vpack.c.bf16 %v554_v10, %v554_v10  ;;  %v1187_v33 = vsel %vm435_vm0, %v6768_v20, 0 }
 0x130   : > { %5670 = vmatprep.mubr.msk.bf16.mxu0 %vm6515_vm1, %v6514_v0  ;;  %5680 = vmatprep.subr.bf16.mxu0 %v6514_v0  ;;  %v566_v51 = vpop.f32.mrf.mxu0  ;;  %v562_v7 = vadd.f32 %v6899_v24, %v6877_v58 }
 0x131   : > { %v567_v55 = vadd.f32 %v566_v51, %v6877_v58  ;;  %v659_v63 = vpack.c.bf16 %v575_v62, %v575_v62  ;;  %v1279_v51 = vsel %vm435_vm0, %v6775_v22, 0 }
 0x132   : > { %v6930_v8 = vpop.f32.mrf.mxu0  ;;  %v656_v24 = vpack.c.bf16 %v562_v7, %v562_v7 }
 0x133   : > { %v657_v57 = vpack.c.bf16 %v567_v55, %v567_v55  ;;  %v1785_v55 = vsel %vm435_vm0, %v6827_v39, 0  ;;  %v1371_v39 = vsel %vm435_vm0, %v6788_v26, 0 }
 0x134   : > { %v6935_v59 = vpop.f32.mrf.mxu0 }
 0x135   : > { %5629 = vmatmul.mubr.msk.bf16.vlgmr.msra.gmra.mxu1 %vm435_vm0, %v648_v19  ;;  %v1693_v19 = vsel %vm435_vm0, %v6821_v37, 0  ;;  %v570_v53 = vadd.f32 %v6935_v59, %v6877_v58  ;;  %v578_v59 = vadd.f32 %v6930_v8, %v6877_v58 }
 0x136   : > { %5633 = vmatpush3.bf16.xpose.msra.mxu1 %v865_v48  ;;  %5634 = vmatprep.mubr.msk.bf16.mxu1 %vm6515_vm1, %v6514_v0  ;;  %v5594_v9 = vpop.f32.mrf.mxu0 }
 0x137   : > { %5638 = vmatprep.subr.bf16.mxu1 %v6514_v0  ;;  %5671 = vmatmul.mubr.msk.bf16.vlgmr.msra.gmra.mxu0 %vm435_vm0, %v655_v47  ;;  %v591_v23 = vadd.f32 %v5594_v9, %v6877_v58  ;;  %v658_v22 = vpack.c.bf16 %v570_v53, %v570_v53  ;;  %v660_v8 = vpack.c.bf16 %v578_v59, %v578_v59 }
 0x138   : > { %5681 = vmatpush3.bf16.xpose.msra.mxu0 %v1233_v52  ;;  %5682 = vmatprep.mubr.msk.bf16.mxu0 %vm6515_vm1, %v6514_v0  ;;  %v582_v3 = vpop.f32.mrf.mxu0 }
 0x139   : > { %5692 = vmatprep.subr.bf16.mxu0 %v6514_v0  ;;  %v583_v4 = vadd.f32 %v582_v3, %v6877_v58  ;;  %v663_v29 = vpack.c.bf16 %v591_v23, %v591_v23 }
 0x13a   : > { %v6963_v12 = vpop.f32.mrf.mxu0 }
 0x13b   : > { %v661_v16 = vpack.c.bf16 %v583_v4, %v583_v4  ;;  %v594_v11 = vadd.f32 %v6963_v12, %v6877_v58  ;;  %v2061_v4 = vsel %vm435_vm0, %v6857_v49, 0  ;;  %v1647_v49 = vsel %vm435_vm0, %v6812_v34, 0 }
 0x13c   : > { %v6968_v2 = vpop.f32.mrf.mxu0  ;;  %v1739_v34 = vsel %vm435_vm0, %v6824_v38, 0 }
 0x13d   : > { %5635 = vmatmul.mubr.msk.bf16.vlgmr.msra.gmra.mxu1 %vm435_vm0, %v649_v21 }
 0x13e   : > { %5639 = vmatpush3.bf16.xpose.msra.mxu1 %v911_v56  ;;  %5640 = vmatprep.mubr.msk.bf16.mxu1 %vm6515_vm1, %v6514_v0  ;;  %v5598_v13 = vpop.f32.mrf.mxu0 }
 0x13f   : > { %5644 = vmatprep.subr.bf16.mxu1 %v6514_v0  ;;  %5683 = vmatmul.mubr.msk.bf16.vlgmr.msra.gmra.mxu0 %vm435_vm0, %v657_v57  ;;  %v607_v48 = vadd.f32 %v5598_v13, %v6877_v58  ;;  %v1923_v13 = vsel %vm435_vm0, %v6842_v44, 0 }
 0x140   : > { %5693 = vmatpush3.bf16.xpose.msra.mxu0 %v1325_v60  ;;  %5694 = vmatprep.mubr.msk.bf16.mxu0 %vm6515_vm1, %v6514_v0  ;;  %v598_v30 = vpop.f32.mrf.mxu0  ;;  %v1877_v60 = vsel %vm435_vm0, %v6839_v43, 0  ;;  %v1463_v43 = vsel %vm435_vm0, %v6794_v28, 0 }
 0x141   : > { %5704 = vmatprep.subr.bf16.mxu0 %v6514_v0  ;;  %v599_v41 = vadd.f32 %v598_v30, %v6877_v58  ;;  %v667_v37 = vpack.c.bf16 %v607_v48, %v607_v48  ;;  %v2015_v30 = vsel %vm435_vm0, %v6848_v46, 0 }
 0x142   : > { %v6998_v36 = vpop.f32.mrf.mxu0 }
 0x143   : > { %v665_v42 = vpack.c.bf16 %v599_v41, %v599_v41 }
 0x144   : > { %v7009_v47 = vpop.f32.mrf.mxu0 }
 0x145   : > { %5641 = vmatmul.mubr.msk.bf16.vlgmr.msra.gmra.mxu1 %vm435_vm0, %v650_v25  ;;  %v586_v25 = vadd.f32 %v6968_v2, %v6877_v58  ;;  %v610_v2 = vadd.f32 %v6998_v36, %v6877_v58 }
 0x146   : > { %5645 = vmatpush3.bf16.xpose.msra.mxu1 %v957_v1  ;;  %5646 = vmatprep.mubr.msk.bf16.mxu1 %vm6515_vm1, %v6514_v0  ;;  %v5602_v20 = vpop.f32.mrf.mxu0 }
 0x147   : > { %5650 = vmatprep.subr.bf16.mxu1 %v6514_v0  ;;  %5695 = vmatmul.mubr.msk.bf16.vlgmr.msra.gmra.mxu0 %vm435_vm0, %v659_v63  ;;  %v623_v61 = vadd.f32 %v5602_v20, %v6877_v58  ;;  %v1969_v63 = vsel %vm435_vm0, %v6845_v45, 0  ;;  %v662_v3 = vpack.c.bf16 %v586_v25, %v586_v25  ;;  %v1555_v45 = vsel %vm435_vm0, %v6806_v32, 0 }
 0x148   : > { %5705 = vmatpush3.bf16.xpose.msra.mxu0 %v1417_v5  ;;  %5706 = vmatprep.mubr.msk.bf16.mxu0 %vm6515_vm1, %v6514_v0  ;;  %v614_v52 = vpop.f32.mrf.mxu0  ;;  %v664_v32 = vpack.c.bf16 %v594_v11, %v594_v11 }
 0x149   : > { %5716 = vmatprep.subr.bf16.mxu0 %v6514_v0  ;;  %v615_v21 = vadd.f32 %v614_v52, %v6877_v58  ;;  %v671_v9 = vpack.c.bf16 %v623_v61, %v623_v61 }
 0x14a   : > { %v7034_v57 = vpop.f32.mrf.mxu0 }
 0x14b   : > { %v669_v56 = vpack.c.bf16 %v615_v21, %v615_v21 }
 0x14c   : > { %v617_v26 = vpop.f32.mrf.mxu0 }
 0x14d   : > { %5647 = vmatmul.mubr.msk.bf16.vlgmr.msra.gmra.mxu1 %vm435_vm0, %v651_v27  ;;  %v618_v23 = vadd.f32 %v617_v26, %v6877_v58 }
 0x14e   : > { %5651 = vmatpush3.bf16.xpose.msra.mxu1 %v1003_v14  ;;  %5652 = vmatprep.mubr.msk.bf16.mxu1 %vm6515_vm1, %v6514_v0  ;;  %v5606_v62 = vpop.f32.mrf.mxu0  ;;  %v602_v14 = vadd.f32 %v7009_v47, %v6877_v58 }
 0x14f   : > { %5662 = vmatprep.subr.bf16.mxu1 %v6514_v0  ;;  %5707 = vmatmul.mubr.msk.bf16.vlgmr.msra.gmra.mxu0 %vm435_vm0, %v661_v16  ;;  %v639_v27 = vadd.f32 %v5606_v62, %v6877_v58  ;;  %v670_v38 = vpack.c.bf16 %v618_v23, %v618_v23 }
 0x150   : > { %5717 = vmatpush3.bf16.xpose.msra.mxu0 %v1509_v17  ;;  %5718 = vmatprep.mubr.msk.bf16.mxu0 %vm6515_vm1, %v6514_v0  ;;  %v630_v1 = vpop.f32.mrf.mxu0  ;;  %v666_v16 = vpack.c.bf16 %v602_v14, %v602_v14  ;;  %v668_v17 = vpack.c.bf16 %v610_v2, %v610_v2 }
 0x151   : > { %5728 = vmatprep.subr.bf16.mxu0 %v6514_v0  ;;  %v631_v28 = vadd.f32 %v630_v1, %v6877_v58  ;;  %v675_v12 = vpack.c.bf16 %v639_v27, %v639_v27 }
 0x152   : > { %v5607_v40 = vpop.f32.mrf.mxu0 }
 0x153   : > { %v673_v5 = vpack.c.bf16 %v631_v28, %v631_v28  ;;  %v642_v41 = vadd.f32 %v5607_v40, %v6877_v58 }
 0x155   : > { %5653 = vmatmul.mubr.msk.bf16.vlgmr.msra.gmra.mxu1 %vm435_vm0, %v652_v31  ;;  %v626_v31 = vadd.f32 %v7034_v57, %v6877_v58  ;;  %v676_v46 = vpack.c.bf16 %v642_v41, %v642_v41 }
 0x156   : > { %5663 = vmatpush3.bf16.xpose.msra.mxu1 %v1095_v6  ;;  %5664 = vmatprep.mubr.msk.bf16.mxu1 %vm6515_vm1, %v6514_v0  ;;  %v633_v6 = vpop.f32.mrf.mxu0 }
 0x157   : > { %5674 = vmatprep.subr.bf16.mxu1 %v6514_v0  ;;  %5719 = vmatmul.mubr.msk.bf16.vlgmr.msra.gmra.mxu0 %vm435_vm0, %v663_v29  ;;  %v672_v29 = vpack.c.bf16 %v626_v31, %v626_v31  ;;  %v634_v44 = vadd.f32 %v633_v6, %v6877_v58 }
 0x158   : > { %5729 = vmatpush3.bf16.xpose.msra.mxu0 %v1601_v35  ;;  %5730 = vmatprep.mubr.msk.bf16.mxu0 %vm6515_vm1, %v6514_v0  ;;  %v2107_v35 = vsel %vm435_vm0, %v6860_v50, 0 }
 0x159   : > { %5740 = vmatprep.subr.bf16.mxu0 %v6514_v0  ;;  %v674_v10 = vpack.c.bf16 %v634_v44, %v634_v44 }
 0x15d   : > { %5665 = vmatmul.mubr.msk.bf16.vlgmr.msra.gmra.mxu1 %vm435_vm0, %v654_v15 }
 0x15e   : > { %5675 = vmatpush3.bf16.xpose.msra.mxu1 %v1187_v33  ;;  %5676 = vmatprep.mubr.msk.bf16.mxu1 %vm6515_vm1, %v6514_v0 }
 0x15f   : > { %5686 = vmatprep.subr.bf16.mxu1 %v6514_v0  ;;  %5731 = vmatmul.mubr.msk.bf16.vlgmr.msra.gmra.mxu0 %vm435_vm0, %v665_v42 }
 0x160   : > { %5741 = vmatpush3.bf16.xpose.msra.mxu0 %v1693_v19  ;;  %5742 = vmatprep.mubr.msk.bf16.mxu0 %vm6515_vm1, %v6514_v0 }
 0x161   : > { %5752 = vmatprep.subr.bf16.mxu0 %v6514_v0 }
 0x165   : > { %5677 = vmatmul.mubr.msk.bf16.vlgmr.msra.gmra.mxu1 %vm435_vm0, %v656_v24 }
 0x166   : > { %5687 = vmatpush3.bf16.xpose.msra.mxu1 %v1279_v51  ;;  %5688 = vmatprep.mubr.msk.bf16.mxu1 %vm6515_vm1, %v6514_v0 }
 0x167   : > { %5698 = vmatprep.subr.bf16.mxu1 %v6514_v0  ;;  %5743 = vmatmul.mubr.msk.bf16.vlgmr.msra.gmra.mxu0 %vm435_vm0, %v667_v37 }
 0x168   : > { %5753 = vmatpush3.bf16.xpose.msra.mxu0 %v1785_v55  ;;  %5754 = vmatprep.mubr.msk.bf16.mxu0 %vm6515_vm1, %v6514_v0 }
 0x169   : > { %5764 = vmatprep.subr.bf16.mxu0 %v6514_v0 }
 0x16d   : > { %5689 = vmatmul.mubr.msk.bf16.vlgmr.msra.gmra.mxu1 %vm435_vm0, %v658_v22 }
 0x16e   : > { %5699 = vmatpush3.bf16.xpose.msra.mxu1 %v1371_v39  ;;  %5700 = vmatprep.mubr.msk.bf16.mxu1 %vm6515_vm1, %v6514_v0 }
 0x16f   : > { %5710 = vmatprep.subr.bf16.mxu1 %v6514_v0  ;;  %5755 = vmatmul.mubr.msk.bf16.vlgmr.msra.gmra.mxu0 %vm435_vm0, %v669_v56 }
 0x170   : > { %5765 = vmatpush3.bf16.xpose.msra.mxu0 %v1877_v60  ;;  %5766 = vmatprep.mubr.msk.bf16.mxu0 %vm6515_vm1, %v6514_v0 }
 0x171   : > { %5776 = vmatprep.subr.bf16.mxu0 %v6514_v0 }
 0x175   : > { %5701 = vmatmul.mubr.msk.bf16.vlgmr.msra.gmra.mxu1 %vm435_vm0, %v660_v8 }
 0x176   : > { %5711 = vmatpush3.bf16.xpose.msra.mxu1 %v1463_v43  ;;  %5712 = vmatprep.mubr.msk.bf16.mxu1 %vm6515_vm1, %v6514_v0 }
 0x177   : > { %5722 = vmatprep.subr.bf16.mxu1 %v6514_v0  ;;  %5767 = vmatmul.mubr.msk.bf16.vlgmr.msra.gmra.mxu0 %vm435_vm0, %v671_v9 }
 0x178   : > { %5777 = vmatpush3.bf16.xpose.msra.mxu0 %v1969_v63  ;;  %5778 = vmatprep.mubr.msk.bf16.mxu0 %vm6515_vm1, %v6514_v0 }
 0x179   : > { %5788 = vmatprep.subr.bf16.mxu0 %v6514_v0 }
 0x17d   : > { %5713 = vmatmul.mubr.msk.bf16.vlgmr.msra.gmra.mxu1 %vm435_vm0, %v662_v3 }
 0x17e   : > { %5723 = vmatpush3.bf16.xpose.msra.mxu1 %v1555_v45  ;;  %5724 = vmatprep.mubr.msk.bf16.mxu1 %vm6515_vm1, %v6514_v0 }
 0x17f   : > { %5734 = vmatprep.subr.bf16.mxu1 %v6514_v0  ;;  %5779 = vmatmul.mubr.msk.bf16.vlgmr.msra.gmra.mxu0 %vm435_vm0, %v673_v5 }
 0x180   : > { %5789 = vmatpush3.bf16.xpose.msra.mxu0 %v2061_v4  ;;  %5790 = vmatprep.mubr.msk.bf16.mxu0 %vm6515_vm1, %v6514_v0 }
 0x181   : > { %5800 = vmatprep.subr.bf16.mxu0 %v6514_v0 }
 0x185   : > { %5725 = vmatmul.mubr.msk.bf16.vlgmr.msra.gmra.mxu1 %vm435_vm0, %v664_v32 }
 0x186   : > { %5735 = vmatpush3.bf16.xpose.msra.mxu1 %v1647_v49  ;;  %5736 = vmatprep.mubr.msk.bf16.mxu1 %vm6515_vm1, %v6514_v0 }
 0x187   : > { %5746 = vmatprep.subr.bf16.mxu1 %v6514_v0  ;;  %5791 = vmatmul.mubr.msk.bf16.vlgmr.msra.gmra.mxu0 %vm435_vm0, %v675_v12 }
 0x188   : > { %5802 = vmatprep.mubr.msk.bf16.mxu0 %vm6515_vm1, %v6514_v0 }
 0x18d   : > { %5737 = vmatmul.mubr.msk.bf16.vlgmr.msra.gmra.mxu1 %vm435_vm0, %v666_v16 }
 0x18e   : > { %5747 = vmatpush3.bf16.xpose.msra.mxu1 %v1739_v34  ;;  %5748 = vmatprep.mubr.msk.bf16.mxu1 %vm6515_vm1, %v6514_v0 }
 0x18f   : > { %5758 = vmatprep.subr.bf16.mxu1 %v6514_v0 }
 0x195   : > { %5749 = vmatmul.mubr.msk.bf16.vlgmr.msra.gmra.mxu1 %vm435_vm0, %v668_v17 }
 0x196   : > { %5759 = vmatpush3.bf16.xpose.msra.mxu1 %v1831_v18  ;;  %5760 = vmatprep.mubr.msk.bf16.mxu1 %vm6515_vm1, %v6514_v0 }
 0x197   : > { %5770 = vmatprep.subr.bf16.mxu1 %v6514_v0 }
 0x19d   : > { %5761 = vmatmul.mubr.msk.bf16.vlgmr.msra.gmra.mxu1 %vm435_vm0, %v670_v38 }
 0x19e   : > { %5771 = vmatpush3.bf16.xpose.msra.mxu1 %v1923_v13  ;;  %5772 = vmatprep.mubr.msk.bf16.mxu1 %vm6515_vm1, %v6514_v0 }
 0x19f   : > { %5782 = vmatprep.subr.bf16.mxu1 %v6514_v0 }
 0x1a5   : > { %5773 = vmatmul.mubr.msk.bf16.vlgmr.msra.gmra.mxu1 %vm435_vm0, %v672_v29 }
 0x1a6   : > { %5783 = vmatpush3.bf16.xpose.msra.mxu1 %v2015_v30  ;;  %5784 = vmatprep.mubr.msk.bf16.mxu1 %vm6515_vm1, %v6514_v0 }
 0x1a7   : > { %5794 = vmatprep.subr.bf16.mxu1 %v6514_v0 }
 0x1ad   : > { %5785 = vmatmul.mubr.msk.bf16.vlgmr.msra.gmra.mxu1 %vm435_vm0, %v674_v10 }
 0x1ae   : > { %5795 = vmatpush3.bf16.xpose.msra.mxu1 %v2107_v35  ;;  %5796 = vmatprep.mubr.msk.bf16.mxu1 %vm6515_vm1, %v6514_v0 }
 0x1af   : > { %5806 = vmatprep.subr.bf16.mxu1 %v6514_v0 }
 0x1b5   : > { %5797 = vmatmul.mubr.msk.bf16.vlgmr.msra.gmra.mxu1 %vm435_vm0, %v676_v46 }
 0x1b6   : > { %5808 = vmatprep.mubr.msk.bf16.mxu1 %vm6515_vm1, %v6514_v0 }
 0x1dd   : > { %v7130_v15 = vpop.f32.mrf.mxu1 }
 0x1de   : > { %v2150_v50 = vsel %vm2149_vm2, %v7130_v15, -inf }
 0x1df   : > { %2151 = vmax.xlane.f32.xlu0 %v2150_v50  ;;  %v5612_v58 = vpop.f32.mrf.mxu1 }
 0x1e1   : > { %v720_v36 = vpop.f32.mrf.mxu1 }
 0x1e3   : > { %v5613_v33 = vpop.f32.mrf.mxu1 }
 0x1e5   : > { %v7134_v42 = vpop.f32.mrf.mxu1 }
 0x1e6   : > { %v2153_v7 = vsel %vm2149_vm2, %v7134_v42, -inf }
 0x1e7   : > { %2154 = vmax.xlane.f32.xlu0 %v2153_v7  ;;  %v5618_v19 = vpop.f32.mrf.mxu1 }
 0x1e9   : > { %v766_v47 = vpop.f32.mrf.mxu1 }
 0x1eb   : > { %v5619_v48 = vpop.f32.mrf.mxu1 }
 0x1ed   : > { %v7138_v20 = vpop.f32.mrf.mxu1  ;;  %v7140_v24 = vpop.f32.mrf.mxu0 }
 0x1ee   : > { %v2156_v37 = vsel %vm2149_vm2, %v7138_v20, -inf  ;;  %v2174_v38 = vsel %vm2149_vm2, %v7140_v24, -inf }
 0x1ef   : > { %2157 = vmax.xlane.f32.xlu1 %v2156_v37  ;;  %v5624_v51 = vpop.f32.mrf.mxu1  ;;  %v5660_v52 = vpop.f32.mrf.mxu0 }
 0x1f1   : > { %v812_v53 = vpop.f32.mrf.mxu1  ;;  %v1088_v55 = vpop.f32.mrf.mxu0 }
 0x1f3   : > { %v5625_v21 = vpop.f32.mrf.mxu1  ;;  %v5661_v22 = vpop.f32.mrf.mxu0 }
 0x1f5   : > { %v7144_v39 = vpop.f32.mrf.mxu1 }
 0x1f6   : > { %v2159_v56 = vsel %vm2149_vm2, %v7144_v39, -inf }
 0x1f7   : > { %2160 = vmax.xlane.f32.xlu1 %v2159_v56  ;;  %v5630_v57 = vpop.f32.mrf.mxu1  ;;  %v7148_v59 = vpop.f32.mrf.mxu0 }
 0x1f8   : > { %v2180_v6 = vsel %vm2149_vm2, %v7148_v59, -inf }
 0x1f9   : > { %v858_v60 = vpop.f32.mrf.mxu1  ;;  %v5672_v61 = vpop.f32.mrf.mxu0 }
 0x1fb   : > { %v5631_v26 = vpop.f32.mrf.mxu1  ;;  %v1180_v8 = vpop.f32.mrf.mxu0 }
 0x1fd   : > { %v7150_v62 = vpop.f32.mrf.mxu1  ;;  %v5673_v43 = vpop.f32.mrf.mxu0 }
 0x1fe   : > { %v2162_v9 = vsel %vm2149_vm2, %v7150_v62, -inf }
 0x1ff   : > { %2163 = vmax.xlane.f32.xlu0 %v2162_v9  ;;  %v5636_v25 = vpop.f32.mrf.mxu1  ;;  %v7154_v63 = vpop.f32.mrf.mxu0 }
 0x200   : > { %v2186_v46 = vsel %vm2149_vm2, %v7154_v63, -inf }
 0x201   : > { %v904_v1 = vpop.f32.mrf.mxu1  ;;  %v5684_v28 = vpop.f32.mrf.mxu0 }
 0x203   : > { %v5637_v3 = vpop.f32.mrf.mxu1  ;;  %v1272_v45 = vpop.f32.mrf.mxu0 }
 0x205   : > { %v7156_v5 = vpop.f32.mrf.mxu1  ;;  %v5685_v11 = vpop.f32.mrf.mxu0 }
 0x206   : > { %v2165_v4 = vsel %vm2149_vm2, %v7156_v5, -inf }
 0x207   : > { %2166 = vmax.xlane.f32.xlu1 %v2165_v4  ;;  %v5642_v27 = vpop.f32.mrf.mxu1  ;;  %v7160_v32 = vpop.f32.mrf.mxu0 }
 0x208   : > { %v2192_v7 = vsel %vm2149_vm2, %v7160_v32, -inf }
 0x209   : > { %v950_v49 = vpop.f32.mrf.mxu1  ;;  %v5696_v12 = vpop.f32.mrf.mxu0 }
 0x20b   : > { %v5643_v14 = vpop.f32.mrf.mxu1  ;;  %v1364_v16 = vpop.f32.mrf.mxu0 }
 0x20d   : > { %v7162_v34 = vpop.f32.mrf.mxu1  ;;  %v5697_v2 = vpop.f32.mrf.mxu0 }
 0x20e   : > { %v2168_v17 = vsel %vm2149_vm2, %v7162_v34, -inf }
 0x20f   : > { %2169 = vmax.xlane.f32.xlu0 %v2168_v17  ;;  %v5648_v18 = vpop.f32.mrf.mxu1  ;;  %v7166_v23 = vpop.f32.mrf.mxu0 }
 0x210   : > { %v2198_v52 = vsel %vm2149_vm2, %v7166_v23, -inf }
 0x211   : > { %v996_v13 = vpop.f32.mrf.mxu1  ;;  %v5708_v31 = vpop.f32.mrf.mxu0 }
 0x213   : > { %2175 = vmax.xlane.f32.xlu0 %v2174_v38  ;;  %v5649_v40 = vpop.f32.mrf.mxu1  ;;  %v1456_v29 = vpop.f32.mrf.mxu0 }
 0x215   : > { %v7172_v30 = vpop.f32.mrf.mxu1  ;;  %v5709_v44 = vpop.f32.mrf.mxu0 }
 0x216   : > { %v2171_v10 = vsel %vm2149_vm2, %v7172_v30, -inf }
 0x217   : > { %2181 = vmax.xlane.f32.xlu0 %v2180_v6  ;;  %2172 = vmax.xlane.f32.xlu1 %v2171_v10  ;;  %v5654_v35 = vpop.f32.mrf.mxu1  ;;  %v7176_v41 = vpop.f32.mrf.mxu0 }
 0x218   : > { %v2204_v56 = vsel %vm2149_vm2, %v7176_v41, -inf }
 0x219   : > { %v1042_v50 = vpop.f32.mrf.mxu1  ;;  %v5720_v58 = vpop.f32.mrf.mxu0 }
 0x21b   : > { %2187 = vmax.xlane.f32.xlu0 %v2186_v46  ;;  %v5655_v36 = vpop.f32.mrf.mxu1  ;;  %v1548_v33 = vpop.f32.mrf.mxu0 }
 0x21d   : > { %v7182_v19 = vpop.f32.mrf.mxu1  ;;  %v5721_v47 = vpop.f32.mrf.mxu0 }
 0x21e   : > { %v2177_v48 = vsel %vm2149_vm2, %v7182_v19, -inf }
 0x21f   : > { %2193 = vmax.xlane.f32.xlu0 %v2192_v7  ;;  %2178 = vmax.xlane.f32.xlu1 %v2177_v48  ;;  %v5666_v37 = vpop.f32.mrf.mxu1  ;;  %v7186_v51 = vpop.f32.mrf.mxu0 }
 0x220   : > { %v2210_v43 = vsel %vm2149_vm2, %v7186_v51, -inf }
 0x221   : > { %v1134_v53 = vpop.f32.mrf.mxu1  ;;  %v5732_v55 = vpop.f32.mrf.mxu0 }
 0x223   : > { %2199 = vmax.xlane.f32.xlu0 %v2198_v52  ;;  %v5667_v21 = vpop.f32.mrf.mxu1  ;;  %v1640_v22 = vpop.f32.mrf.mxu0 }
 0x225   : > { %v7192_v57 = vpop.f32.mrf.mxu1  ;;  %v5733_v60 = vpop.f32.mrf.mxu0 }
 0x226   : > { %v2183_v61 = vsel %vm2149_vm2, %v7192_v57, -inf }
 0x227   : > { %2205 = vmax.xlane.f32.xlu0 %v2204_v56  ;;  %2184 = vmax.xlane.f32.xlu1 %v2183_v61  ;;  %v5678_v26 = vpop.f32.mrf.mxu1  ;;  %v7196_v8 = vpop.f32.mrf.mxu0 }
 0x228   : > { %v2216_v3 = vsel %vm2149_vm2, %v7196_v8, -inf }
 0x229   : > { %v1226_v9 = vpop.f32.mrf.mxu1  ;;  %v5744_v25 = vpop.f32.mrf.mxu0 }
 0x22b   : > { %2211 = vmax.xlane.f32.xlu0 %v2210_v43  ;;  %v5679_v1 = vpop.f32.mrf.mxu1  ;;  %v1732_v28 = vpop.f32.mrf.mxu0 }
 0x22d   : > { %v7202_v45 = vpop.f32.mrf.mxu1  ;;  %v5745_v11 = vpop.f32.mrf.mxu0 }
 0x22e   : > { %v2189_v4 = vsel %vm2149_vm2, %v7202_v45, -inf }
 0x22f   : > { %2217 = vmax.xlane.f32.xlu0 %v2216_v3  ;;  %2190 = vmax.xlane.f32.xlu1 %v2189_v4  ;;  %v5690_v27 = vpop.f32.mrf.mxu1  ;;  %v7206_v49 = vpop.f32.mrf.mxu0 }
 0x231   : > { %v1318_v12 = vpop.f32.mrf.mxu1  ;;  %v5756_v14 = vpop.f32.mrf.mxu0 }
 0x233   : > { %v5691_v16 = vpop.f32.mrf.mxu1  ;;  %v1824_v2 = vpop.f32.mrf.mxu0 }
 0x235   : > { %v7208_v17 = vpop.f32.mrf.mxu1  ;;  %v5757_v18 = vpop.f32.mrf.mxu0 }
 0x236   : > { %v2195_v38 = vsel %vm2149_vm2, %v7208_v17, -inf }
 0x237   : > { %2196 = vmax.xlane.f32.xlu1 %v2195_v38  ;;  %v5702_v13 = vpop.f32.mrf.mxu1  ;;  %v7212_v31 = vpop.f32.mrf.mxu0 }
 0x239   : > { %v1410_v40 = vpop.f32.mrf.mxu1  ;;  %v5768_v29 = vpop.f32.mrf.mxu0 }
 0x23b   : > { %v5703_v6 = vpop.f32.mrf.mxu1  ;;  %v1916_v44 = vpop.f32.mrf.mxu0 }
 0x23d   : > { %v7214_v10 = vpop.f32.mrf.mxu1  ;;  %v5769_v35 = vpop.f32.mrf.mxu0 }
 0x23e   : > { %v2201_v46 = vsel %vm2149_vm2, %v7214_v10, -inf }
 0x23f   : > { %2202 = vmax.xlane.f32.xlu1 %v2201_v46  ;;  %v5714_v50 = vpop.f32.mrf.mxu1  ;;  %v7218_v58 = vpop.f32.mrf.mxu0 }
 0x241   : > { %v1502_v36 = vpop.f32.mrf.mxu1  ;;  %v5780_v33 = vpop.f32.mrf.mxu0 }
 0x243   : > { %v5715_v7 = vpop.f32.mrf.mxu1  ;;  %v2008_v47 = vpop.f32.mrf.mxu0 }
 0x245   : > { %v7220_v48 = vpop.f32.mrf.mxu1  ;;  %v5781_v37 = vpop.f32.mrf.mxu0 }
 0x246   : > { %v2207_v52 = vsel %vm2149_vm2, %v7220_v48, -inf }
 0x247   : > { %2208 = vmax.xlane.f32.xlu1 %v2207_v52  ;;  %v5726_v53 = vpop.f32.mrf.mxu1  ;;  %v7224_v55 = vpop.f32.mrf.mxu0 }
 0x249   : > { %v1594_v21 = vpop.f32.mrf.mxu1  ;;  %v5792_v22 = vpop.f32.mrf.mxu0 }
 0x24b   : > { %v5727_v56 = vpop.f32.mrf.mxu1  ;;  %v2100_v60 = vpop.f32.mrf.mxu0 }
 0x24d   : > { %v7226_v61 = vpop.f32.mrf.mxu1  ;;  %v5793_v26 = vpop.f32.mrf.mxu0 }
 0x24e   : > { %v2213_v43 = vsel %vm2149_vm2, %v7226_v61, -inf }
 0x24f   : > { %2214 = vmax.xlane.f32.xlu1 %v2213_v43  ;;  %v5738_v9 = vpop.f32.mrf.mxu1 }
 0x251   : > { %v1686_v25 = vpop.f32.mrf.mxu1 }
 0x253   : > { %v5739_v1 = vpop.f32.mrf.mxu1 }
 0x255   : > { %v7230_v28 = vpop.f32.mrf.mxu1 }
 0x256   : > { %v2219_v3 = vsel %vm2149_vm2, %v7230_v28, -inf }
 0x257   : > { %2220 = vmax.xlane.f32.xlu1 %v2219_v3  ;;  %v5750_v11 = vpop.f32.mrf.mxu1 }
 0x259   : > { %v1778_v4 = vpop.f32.mrf.mxu1 }
 0x25b   : > { %v5751_v27 = vpop.f32.mrf.mxu1 }
 0x25d   : > { %v7234_v12 = vpop.f32.mrf.mxu1 }
 0x25e   : > { %v2225_v3 = vsel %vm2149_vm2, %v7234_v12, -inf }
 0x25f   : > { %v5762_v14 = vpop.f32.mrf.mxu1 }
 0x261   : > { %v1870_v16 = vpop.f32.mrf.mxu1 }
 0x262   : > { %v2228_v16 = vsel %vm2149_vm2, %v7212_v31, -inf }
 0x263   : > { %v5763_v2 = vpop.f32.mrf.mxu1 }
 0x265   : > { %v7236_v18 = vpop.f32.mrf.mxu1 }
 0x267   : > { %v5774_v38 = vpop.f32.mrf.mxu1 }
 0x268   : > { %v2152_v13 = vpop.xlane.xlu0 %2151 }
 0x269   : > { %v2246_v40 = vsub.f32 %v7130_v15, %v2152_v13  ;;  %v1962_v29 = vpop.f32.mrf.mxu1 }
 0x26a   : > { %v2231_v29 = vsel %vm2149_vm2, %v7236_v18, -inf }
 0x26b   : > { %v2278_v6 = vmul.f32 1.442695, %v2246_v40  ;;  %v5775_v44 = vpop.f32.mrf.mxu1 }
 0x26d   : > { %6159 = vpow2.f32 %v2278_v6  ;;  %v7239_v35 = vpop.f32.mrf.mxu1  ;;  %v6351_v6 = vld [vmem:[%s6704_s23] sm:$0xf] }
 0x26e   : > { %v2538_v44 = vsel %vm2537_vm3, %v6351_v6, 0 }
 0x26f   : > { %v5786_v46 = vpop.f32.mrf.mxu1  ;;  %5801 = vmatpush3.bf16.msra.mxu0 %v2538_v44 }
 0x270   : > { %v2155_v50 = vpop.xlane.xlu0 %2154  ;;  %5812 = vmatprep.subr.bf16.mxu0 %v6514_v0 }
 0x271   : > { %v2247_v36 = vsub.f32 %v7134_v42, %v2155_v50  ;;  %v2054_v33 = vpop.f32.mrf.mxu1  ;;  %v2222_v42 = vsel %vm2149_vm2, %v7206_v49, -inf }
 0x273   : > { %v2280_v7 = vmul.f32 1.442695, %v2247_v36  ;;  %v5787_v47 = vpop.f32.mrf.mxu1 }
 0x275   : > { %6161 = vpow2.f32 %v2280_v7  ;;  %v7242_v37 = vpop.f32.mrf.mxu1 }
 0x277   : > { %v5798_v52 = vpop.f32.mrf.mxu1 }
 0x278   : > { %v2158_v53 = vpop.xlane.xlu1 %2157  ;;  %v2234_v52 = vsel %vm2149_vm2, %v7218_v58, -inf }
 0x279   : > { %v2248_v15 = vsub.f32 %v7138_v20, %v2158_v53  ;;  %v2146_v21 = vpop.f32.mrf.mxu1  ;;  %v6352_v53 = vld [vmem:[%s6704_s23 + $0x4] sm:$0xf] }
 0x27a   : > { %v7245_v22 = vpop.eup %6159 }
 0x27b   : > { %v2282_v56 = vmul.f32 1.442695, %v2248_v15  ;;  %v2342_v60 = vsel %vm2149_vm2, %v7245_v22, 0.0  ;;  %v5799_v26 = vpop.f32.mrf.mxu1  ;;  %v2583_v15 = vsel %vm2537_vm3, %v6352_v53, 0 }
 0x27c   : > { %2343 = vadd.xlane.f32.xlu0 %v2342_v60  ;;  %5807 = vmatpush3.bf16.msra.mxu1 %v2583_v15 }
 0x27d   : > { %6163 = vpow2.f32 %v2282_v56  ;;  %5818 = vmatprep.subr.bf16.mxu1 %v6514_v0 }
 0x280   : > { %v2161_v43 = vpop.xlane.xlu1 %2160  ;;  %2223 = vmax.xlane.f32.xlu0 %v2222_v42 }
 0x281   : > { %v2249_v9 = vsub.f32 %v7144_v39, %v2161_v43 }
 0x282   : > { %v7252_v25 = vpop.eup %6161 }
 0x283   : > { %v2284_v20 = vmul.f32 1.442695, %v2249_v9  ;;  %v2345_v1 = vsel %vm2149_vm2, %v7252_v25, 0.0 }
 0x284   : > { %2346 = vadd.xlane.f32.xlu1 %v2345_v1 }
 0x285   : > { %6165 = vpow2.f32 %v2284_v20 }
 0x288   : > { %v2164_v11 = vpop.xlane.xlu0 %2163  ;;  %2226 = vmax.xlane.f32.xlu1 %v2225_v3  ;;  %v2237_v3 = vsel %vm2149_vm2, %v7239_v35, -inf }
 0x289   : > { %v2250_v4 = vsub.f32 %v7150_v62, %v2164_v11 }
 0x28a   : > { %v7259_v27 = vpop.eup %6163 }
 0x28b   : > { %v2286_v14 = vmul.f32 1.442695, %v2250_v4  ;;  %v2348_v39 = vsel %vm2149_vm2, %v7259_v27, 0.0 }
 0x28c   : > { %2349 = vadd.xlane.f32.xlu0 %v2348_v39 }
 0x28d   : > { %6167 = vpow2.f32 %v2286_v14 }
 0x290   : > { %v2167_v2 = vpop.xlane.xlu1 %2166  ;;  %2229 = vmax.xlane.f32.xlu0 %v2228_v16 }
 0x291   : > { %v2251_v38 = vsub.f32 %v7156_v5, %v2167_v2 }
 0x292   : > { %v7266_v13 = vpop.eup %6165 }
 0x293   : > { %v2288_v40 = vmul.f32 1.442695, %v2251_v38  ;;  %v2351_v62 = vsel %vm2149_vm2, %v7266_v13, 0.0 }
 0x294   : > { %2352 = vadd.xlane.f32.xlu1 %v2351_v62 }
 0x295   : > { %6169 = vpow2.f32 %v2288_v40 }
 0x298   : > { %v2170_v5 = vpop.xlane.xlu0 %2169  ;;  %2232 = vmax.xlane.f32.xlu1 %v2231_v29 }
 0x299   : > { %v2252_v46 = vsub.f32 %v7162_v34, %v2170_v5 }
 0x29a   : > { %v7276_v50 = vpop.eup %6167 }
 0x29b   : > { %v2290_v36 = vmul.f32 1.442695, %v2252_v46  ;;  %v2354_v33 = vsel %vm2149_vm2, %v7276_v50, 0.0 }
 0x29c   : > { %2355 = vadd.xlane.f32.xlu0 %v2354_v33  ;;  %v2176_v7 = vpop.xlane.xlu0 %2175 }
 0x29d   : > { %6171 = vpow2.f32 %v2290_v36  ;;  %v2254_v47 = vsub.f32 %v7140_v24, %v2176_v7 }
 0x29f   : > { %v2294_v21 = vmul.f32 1.442695, %v2254_v47 }
 0x2a0   : > { %2235 = vmax.xlane.f32.xlu0 %v2234_v52  ;;  %v2182_v34 = vpop.xlane.xlu0 %2181  ;;  %v2173_v56 = vpop.xlane.xlu1 %2172 }
 0x2a1   : > { %v2256_v60 = vsub.f32 %v7148_v59, %v2182_v34  ;;  %v2253_v26 = vsub.f32 %v7172_v30, %v2173_v56  ;;  %6173 = vpow2.f32 %v2294_v21  ;;  %v2243_v56 = vsel %vm2149_vm2, %v7242_v37, -inf }
 0x2a2   : > { %v7288_v42 = vpop.eup %6169 }
 0x2a3   : > { %v2298_v24 = vmul.f32 1.442695, %v2256_v60  ;;  %v2292_v43 = vmul.f32 1.442695, %v2253_v26  ;;  %v2357_v9 = vsel %vm2149_vm2, %v7288_v42, 0.0 }
 0x2a4   : > { %v2188_v20 = vpop.xlane.xlu0 %2187  ;;  %2358 = vadd.xlane.f32.xlu1 %v2357_v9 }
 0x2a5   : > { %v2258_v1 = vsub.f32 %v7154_v63, %v2188_v20  ;;  %6175 = vpow2.f32 %v2292_v43 }
 0x2a6   : > { %6177 = vpow2.f32 %v2298_v24 }
 0x2a7   : > { %v2302_v59 = vmul.f32 1.442695, %v2258_v1 }
 0x2a8   : > { %v2194_v11 = vpop.xlane.xlu0 %2193  ;;  %v2179_v30 = vpop.xlane.xlu1 %2178  ;;  %2238 = vmax.xlane.f32.xlu1 %v2237_v3 }
 0x2a9   : > { %v2260_v4 = vsub.f32 %v7160_v32, %v2194_v11  ;;  %v2255_v14 = vsub.f32 %v7182_v19, %v2179_v30  ;;  %6179 = vpow2.f32 %v2302_v59  ;;  %v2240_v32 = vsel %vm2149_vm2, %v7224_v55, -inf }
 0x2aa   : > { %v7297_v39 = vpop.eup %6171 }
 0x2ab   : > { %v2306_v16 = vmul.f32 1.442695, %v2260_v4  ;;  %v2296_v2 = vmul.f32 1.442695, %v2255_v14  ;;  %v2360_v63 = vsel %vm2149_vm2, %v7297_v39, 0.0 }
 0x2ac   : > { %2361 = vadd.xlane.f32.xlu0 %v2360_v63  ;;  %v2200_v38 = vpop.xlane.xlu0 %2199 }
 0x2ad   : > { %v2262_v40 = vsub.f32 %v7166_v23, %v2200_v38  ;;  %6181 = vpow2.f32 %v2296_v2 }
 0x2ae   : > { %6183 = vpow2.f32 %v2306_v16  ;;  %v7304_v29 = vpop.eup %6173 }
 0x2af   : > { %v2310_v62 = vmul.f32 1.442695, %v2262_v40  ;;  %v2366_v33 = vsel %vm2149_vm2, %v7304_v29, 0.0 }
 0x2b0   : > { %2241 = vmax.xlane.f32.xlu0 %v2240_v32  ;;  %v2206_v19 = vpop.xlane.xlu0 %2205  ;;  %v2185_v6 = vpop.xlane.xlu1 %2184 }
 0x2b1   : > { %v2264_v44 = vsub.f32 %v7176_v41, %v2206_v19  ;;  %v2257_v5 = vsub.f32 %v7192_v57, %v2185_v6  ;;  %6185 = vpow2.f32 %v2310_v62 }
 0x2b2   : > { %v7308_v46 = vpop.eup %6175 }
 0x2b3   : > { %v2314_v36 = vmul.f32 1.442695, %v2264_v44  ;;  %v2300_v23 = vmul.f32 1.442695, %v2257_v5  ;;  %v7312_v7 = vpop.eup %6177  ;;  %v2363_v52 = vsel %vm2149_vm2, %v7308_v46, 0.0 }
 0x2b4   : > { %2367 = vadd.xlane.f32.xlu0 %v2366_v33  ;;  %v2212_v47 = vpop.xlane.xlu0 %2211  ;;  %2364 = vadd.xlane.f32.xlu1 %v2363_v52  ;;  %v2372_v57 = vsel %vm2149_vm2, %v7312_v7, 0.0 }
 0x2b5   : > { %v2266_v53 = vsub.f32 %v7186_v51, %v2212_v47  ;;  %6187 = vpow2.f32 %v2300_v23 }
 0x2b6   : > { %6189 = vpow2.f32 %v2314_v36  ;;  %v7319_v15 = vpop.eup %6179 }
 0x2b7   : > { %v2318_v41 = vmul.f32 1.442695, %v2266_v53  ;;  %v2378_v9 = vsel %vm2149_vm2, %v7319_v15, 0.0 }
 0x2b8   : > { %2373 = vadd.xlane.f32.xlu0 %v2372_v57  ;;  %v2218_v21 = vpop.xlane.xlu0 %2217  ;;  %v2191_v34 = vpop.xlane.xlu1 %2190  ;;  %2244 = vmax.xlane.f32.xlu1 %v2243_v56 }
 0x2b9   : > { %v2268_v60 = vsub.f32 %v7196_v8, %v2218_v21  ;;  %v2259_v26 = vsub.f32 %v7202_v45, %v2191_v34  ;;  %6191 = vpow2.f32 %v2318_v41 }
 0x2ba   : > { %v7325_v51 = vpop.eup %6181 }
 0x2bb   : > { %v2322_v24 = vmul.f32 1.442695, %v2268_v60  ;;  %v2304_v43 = vmul.f32 1.442695, %v2259_v26  ;;  %v7329_v20 = vpop.eup %6183  ;;  %v2369_v1 = vsel %vm2149_vm2, %v7325_v51, 0.0 }
 0x2bc   : > { %2379 = vadd.xlane.f32.xlu0 %v2378_v9  ;;  %2370 = vadd.xlane.f32.xlu1 %v2369_v1  ;;  %v2384_v8 = vsel %vm2149_vm2, %v7329_v20, 0.0 }
 0x2bd   : > { %6193 = vpow2.f32 %v2304_v43 }
 0x2be   : > { %6195 = vpow2.f32 %v2322_v24  ;;  %v7335_v45 = vpop.eup %6185 }
 0x2bf   : > { %v2390_v4 = vsel %vm2149_vm2, %v7335_v45, 0.0 }
 0x2c0   : > { %2385 = vadd.xlane.f32.xlu0 %v2384_v8  ;;  %v2197_v3 = vpop.xlane.xlu1 %2196 }
 0x2c1   : > { %v2261_v59 = vsub.f32 %v7208_v17, %v2197_v3 }
 0x2c2   : > { %v7338_v11 = vpop.eup %6187 }
 0x2c3   : > { %v2308_v30 = vmul.f32 1.442695, %v2261_v59  ;;  %v7342_v14 = vpop.eup %6189  ;;  %v2375_v16 = vsel %vm2149_vm2, %v7338_v11, 0.0 }
 0x2c4   : > { %2391 = vadd.xlane.f32.xlu0 %v2390_v4  ;;  %2376 = vadd.xlane.f32.xlu1 %v2375_v16  ;;  %v2396_v2 = vsel %vm2149_vm2, %v7342_v14, 0.0 }
 0x2c5   : > { %6197 = vpow2.f32 %v2308_v30 }
 0x2c6   : > { %v7348_v63 = vpop.eup %6191 }
 0x2c7   : > { %v2402_v32 = vsel %vm2149_vm2, %v7348_v63, 0.0 }
 0x2c8   : > { %2397 = vadd.xlane.f32.xlu0 %v2396_v2  ;;  %v2203_v17 = vpop.xlane.xlu1 %2202 }
 0x2c9   : > { %v2263_v38 = vsub.f32 %v7214_v10, %v2203_v17 }
 0x2ca   : > { %v7351_v40 = vpop.eup %6193 }
 0x2cb   : > { %v2312_v62 = vmul.f32 1.442695, %v2263_v38  ;;  %v7355_v19 = vpop.eup %6195  ;;  %v2381_v6 = vsel %vm2149_vm2, %v7351_v40, 0.0 }
 0x2cc   : > { %2403 = vadd.xlane.f32.xlu0 %v2402_v32  ;;  %2382 = vadd.xlane.f32.xlu1 %v2381_v6  ;;  %v2408_v44 = vsel %vm2149_vm2, %v7355_v19, 0.0 }
 0x2cd   : > { %6199 = vpow2.f32 %v2312_v62  ;;  %v6353_v62 = vld [vmem:[%s6704_s23 + $0x8] sm:$0xf] }
 0x2ce   : > { %v2628_v32 = vsel %vm2537_vm3, %v6353_v62, 0 }
 0x2d0   : > { %2409 = vadd.xlane.f32.xlu0 %v2408_v44  ;;  %v2209_v5 = vpop.xlane.xlu1 %2208 }
 0x2d1   : > { %v2265_v10 = vsub.f32 %v7220_v48, %v2209_v5 }
 0x2d2   : > { %v7362_v36 = vpop.eup %6197 }
 0x2d3   : > { %v2316_v23 = vmul.f32 1.442695, %v2265_v10  ;;  %v2387_v33 = vsel %vm2149_vm2, %v7362_v36, 0.0 }
 0x2d4   : > { %2388 = vadd.xlane.f32.xlu1 %v2387_v33 }
 0x2d5   : > { %6201 = vpow2.f32 %v2316_v23 }
 0x2d8   : > { %v2215_v47 = vpop.xlane.xlu1 %2214 }
 0x2d9   : > { %v2267_v52 = vsub.f32 %v7226_v61, %v2215_v47  ;;  %v6354_v47 = vld [vmem:[%s6704_s23 + $0xc] sm:$0xf] }
 0x2da   : > { %v7367_v53 = vpop.eup %6199 }
 0x2db   : > { %v2320_v41 = vmul.f32 1.442695, %v2267_v52  ;;  %v2393_v57 = vsel %vm2149_vm2, %v7367_v53, 0.0  ;;  %v2673_v52 = vsel %vm2537_vm3, %v6354_v47, 0 }
 0x2dc   : > { %2394 = vadd.xlane.f32.xlu1 %v2393_v57 }
 0x2dd   : > { %6203 = vpow2.f32 %v2320_v41 }
 0x2e0   : > { %v2221_v48 = vpop.xlane.xlu1 %2220 }
 0x2e1   : > { %v2269_v21 = vsub.f32 %v7230_v28, %v2221_v48 }
 0x2e2   : > { %v7372_v34 = vpop.eup %6201 }
 0x2e3   : > { %v2324_v56 = vmul.f32 1.442695, %v2269_v21  ;;  %v2399_v60 = vsel %vm2149_vm2, %v7372_v34, 0.0 }
 0x2e4   : > { %2400 = vadd.xlane.f32.xlu1 %v2399_v60 }
 0x2e5   : > { %6205 = vpow2.f32 %v2324_v56 }
 0x2ea   : > { %v7376_v61 = vpop.eup %6203 }
 0x2eb   : > { %v2405_v26 = vsel %vm2149_vm2, %v7376_v61, 0.0 }
 0x2ec   : > { %2406 = vadd.xlane.f32.xlu1 %v2405_v26  ;;  %v6355_v26 = vld [vmem:[%s6704_s23 + $0x10] sm:$0xf] }
 0x2f2   : > { %v7380_v24 = vpop.eup %6205 }
 0x2f3   : > { %v2411_v43 = vsel %vm2149_vm2, %v7380_v24, 0.0 }
 0x2f4   : > { %2412 = vadd.xlane.f32.xlu1 %v2411_v43  ;;  %v2718_v43 = vsel %vm2537_vm3, %v6355_v26, 0 }
 0x305   : > { %v2344_v28 = vpop.xlane.xlu0 %2343 }
 0x306   : > { %6207 = vrcp.f32 %v2344_v28 }
 0x309   : > { %v2224_v9 = vpop.xlane.xlu0 %2223 }
 0x30a   : > { %v2270_v1 = vsub.f32 %v7206_v49, %v2224_v9 }
 0x30c   : > { %v2326_v8 = vmul.f32 1.442695, %v2270_v1 }
 0x30d   : > { %v2347_v3 = vpop.xlane.xlu1 %2346 }
 0x30e   : > { %6209 = vpow2.f32 %v2326_v8 }
 0x30f   : > { %6211 = vrcp.f32 %v2347_v3 }
 0x311   : > { %v2227_v59 = vpop.xlane.xlu1 %2226 }
 0x312   : > { %v2271_v30 = vsub.f32 %v7234_v12, %v2227_v59 }
 0x313   : > { %v6208_v4 = vpop.eup %6207 }
 0x314   : > { %v2328_v16 = vmul.f32 1.442695, %v2271_v30  ;;  %v2439_v2 = vmul.f32 %v6208_v4, %v7245_v22  ;;  %v6356_v4 = vld [vmem:[%s6704_s23 + $0x14] sm:$0xf] }
 0x315   : > { %v2350_v17 = vpop.xlane.xlu0 %2349 }
 0x316   : > { %6213 = vpow2.f32 %v2328_v16  ;;  %v2502_v38 = vpack.c.bf16 %v2439_v2, %v2439_v2  ;;  %v2763_v16 = vsel %vm2537_vm3, %v6356_v4, 0 }
 0x317   : > { %6215 = vrcp.f32 %v2350_v17 }
 0x318   : > { %5803 = vmatmul.mubr.msk.bf16.vlgmr.msra.gmra.mxu0 %vm2149_vm2, %v2502_v38 }
 0x319   : > { %v2230_v49 = vpop.xlane.xlu0 %2229  ;;  %5813 = vmatpush3.bf16.msra.mxu0 %v2628_v32  ;;  %5814 = vmatprep.mubr.msk.bf16.mxu0 %vm6515_vm1, %v6514_v0 }
 0x31a   : > { %v2272_v12 = vsub.f32 %v7212_v31, %v2230_v49  ;;  %5824 = vmatprep.subr.bf16.mxu0 %v6514_v0 }
 0x31b   : > { %v7394_v22 = vpop.eup %6209 }
 0x31c   : > { %v6212_v6 = vpop.eup %6211  ;;  %v2330_v44 = vmul.f32 1.442695, %v2272_v12  ;;  %v2414_v5 = vsel %vm2149_vm2, %v7394_v22, 0.0 }
 0x31d   : > { %2415 = vadd.xlane.f32.xlu0 %v2414_v5  ;;  %v2353_v10 = vpop.xlane.xlu1 %2352  ;;  %v2441_v23 = vmul.f32 %v6212_v6, %v7252_v25  ;;  %v6357_v6 = vld [vmem:[%s6704_s23 + $0x18] sm:$0xf] }
 0x31e   : > { %6217 = vpow2.f32 %v2330_v44  ;;  %v2808_v44 = vsel %vm2537_vm3, %v6357_v6, 0 }
 0x31f   : > { %6219 = vrcp.f32 %v2353_v10  ;;  %v2503_v33 = vpack.c.bf16 %v2441_v23, %v2441_v23 }
 0x321   : > { %5809 = vmatmul.mubr.msk.bf16.vlgmr.msra.gmra.mxu1 %vm2149_vm2, %v2503_v33  ;;  %v2233_v31 = vpop.xlane.xlu1 %2232 }
 0x322   : > { %v2273_v41 = vsub.f32 %v7236_v18, %v2233_v31  ;;  %5819 = vmatpush3.bf16.msra.mxu1 %v2673_v52  ;;  %5820 = vmatprep.mubr.msk.bf16.mxu1 %vm6515_vm1, %v6514_v0 }
 0x323   : > { %v7405_v57 = vpop.eup %6213  ;;  %5830 = vmatprep.subr.bf16.mxu1 %v6514_v0 }
 0x324   : > { %v6216_v25 = vpop.eup %6215  ;;  %v2332_v48 = vmul.f32 1.442695, %v2273_v41  ;;  %v2417_v21 = vsel %vm2149_vm2, %v7405_v57, 0.0 }
 0x325   : > { %v2356_v56 = vpop.xlane.xlu0 %2355  ;;  %2418 = vadd.xlane.f32.xlu1 %v2417_v21  ;;  %v2443_v60 = vmul.f32 %v6216_v25, %v7259_v27  ;;  %v6358_v25 = vld [vmem:[%s6704_s23 + $0x1c] sm:$0xf] }
 0x326   : > { %6221 = vpow2.f32 %v2332_v48  ;;  %v2853_v48 = vsel %vm2537_vm3, %v6358_v25, 0 }
 0x327   : > { %6223 = vrcp.f32 %v2356_v56  ;;  %v2504_v18 = vpack.c.bf16 %v2443_v60, %v2443_v60 }
 0x329   : > { %5815 = vmatmul.mubr.msk.bf16.vlgmr.msra.gmra.mxu0 %vm2149_vm2, %v2504_v18  ;;  %v2236_v28 = vpop.xlane.xlu0 %2235 }
 0x32a   : > { %v2274_v9 = vsub.f32 %v7218_v58, %v2236_v28  ;;  %5825 = vmatpush3.bf16.msra.mxu0 %v2718_v43  ;;  %5826 = vmatprep.mubr.msk.bf16.mxu0 %vm6515_vm1, %v6514_v0 }
 0x32b   : > { %v7417_v1 = vpop.eup %6217  ;;  %5836 = vmatprep.subr.bf16.mxu0 %v6514_v0 }
 0x32c   : > { %v6220_v27 = vpop.eup %6219  ;;  %v2334_v8 = vmul.f32 1.442695, %v2274_v9  ;;  %v2420_v3 = vsel %vm2149_vm2, %v7417_v1, 0.0 }
 0x32d   : > { %2421 = vadd.xlane.f32.xlu0 %v2420_v3  ;;  %v2359_v59 = vpop.xlane.xlu1 %2358  ;;  %v2445_v30 = vmul.f32 %v6220_v27, %v7266_v13 }
 0x32e   : > { %6225 = vpow2.f32 %v2334_v8  ;;  %v6359_v8 = vld [vmem:[%s6704_s23 + $0x20] sm:$0xf] }
 0x32f   : > { %6227 = vrcp.f32 %v2359_v59  ;;  %v2505_v58 = vpack.c.bf16 %v2445_v30, %v2445_v30  ;;  %v2898_v3 = vsel %vm2537_vm3, %v6359_v8, 0 }
 0x331   : > { %5821 = vmatmul.mubr.msk.bf16.vlgmr.msra.gmra.mxu1 %vm2149_vm2, %v2505_v58  ;;  %v2239_v2 = vpop.xlane.xlu1 %2238 }
 0x332   : > { %v2275_v17 = vsub.f32 %v7239_v35, %v2239_v2  ;;  %5831 = vmatpush3.bf16.msra.mxu1 %v2763_v16  ;;  %5832 = vmatprep.mubr.msk.bf16.mxu1 %vm6515_vm1, %v6514_v0 }
 0x333   : > { %v7429_v38 = vpop.eup %6221  ;;  %5842 = vmatprep.subr.bf16.mxu1 %v6514_v0 }
 0x334   : > { %v6224_v13 = vpop.eup %6223  ;;  %v2336_v62 = vmul.f32 1.442695, %v2275_v17  ;;  %v2423_v32 = vsel %vm2149_vm2, %v7429_v38, 0.0 }
 0x335   : > { %v2362_v49 = vpop.xlane.xlu0 %2361  ;;  %2424 = vadd.xlane.f32.xlu1 %v2423_v32  ;;  %v2447_v12 = vmul.f32 %v6224_v13, %v7276_v50  ;;  %v6360_v13 = vld [vmem:[%s6704_s23 + $0x28] sm:$0xf] }
 0x336   : > { %6229 = vpow2.f32 %v2336_v62  ;;  %v2988_v62 = vsel %vm2537_vm3, %v6360_v13, 0 }
 0x337   : > { %6231 = vrcp.f32 %v2362_v49  ;;  %v2506_v35 = vpack.c.bf16 %v2447_v12, %v2447_v12 }
 0x339   : > { %5827 = vmatmul.mubr.msk.bf16.vlgmr.msra.gmra.mxu0 %vm2149_vm2, %v2506_v35  ;;  %v2242_v5 = vpop.xlane.xlu0 %2241  ;;  %v6361_v35 = vld [vmem:[%s6704_s23 + $0x24] sm:$0xf] }
 0x33a   : > { %v2276_v10 = vsub.f32 %v7224_v55, %v2242_v5  ;;  %5837 = vmatpush3.bf16.msra.mxu0 %v2808_v44  ;;  %5838 = vmatprep.mubr.msk.bf16.mxu0 %vm6515_vm1, %v6514_v0  ;;  %v2943_v6 = vsel %vm2537_vm3, %v6361_v35, 0 }
 0x33b   : > { %v7441_v23 = vpop.eup %6225  ;;  %5848 = vmatprep.subr.bf16.mxu0 %v6514_v0 }
 0x33c   : > { %v6228_v50 = vpop.eup %6227  ;;  %v2338_v33 = vmul.f32 1.442695, %v2276_v10  ;;  %v2426_v47 = vsel %vm2149_vm2, %v7441_v23, 0.0 }
 0x33d   : > { %2427 = vadd.xlane.f32.xlu0 %v2426_v47  ;;  %v2368_v52 = vpop.xlane.xlu0 %2367  ;;  %v2449_v31 = vmul.f32 %v6228_v50, %v7288_v42  ;;  %v2365_v41 = vpop.xlane.xlu1 %2364 }
 0x33e   : > { %6233 = vpow2.f32 %v2338_v33  ;;  %v6362_v33 = vld [vmem:[%s6704_s23 + $0x30] sm:$0xf] }
 0x33f   : > { %6235 = vrcp.f32 %v2368_v52  ;;  %v2507_v55 = vpack.c.bf16 %v2449_v31, %v2449_v31  ;;  %v3078_v47 = vsel %vm2537_vm3, %v6362_v33, 0 }
 0x340   : > { %6237 = vrcp.f32 %v2365_v41 }
 0x341   : > { %5833 = vmatmul.mubr.msk.bf16.vlgmr.msra.gmra.mxu1 %vm2149_vm2, %v2507_v55  ;;  %v2374_v21 = vpop.xlane.xlu0 %2373  ;;  %v2245_v56 = vpop.xlane.xlu1 %2244  ;;  %v6363_v55 = vld [vmem:[%s6704_s23 + $0x2c] sm:$0xf] }
 0x342   : > { %5843 = vmatpush3.bf16.msra.mxu1 %v2853_v48  ;;  %5844 = vmatprep.mubr.msk.bf16.mxu1 %vm6515_vm1, %v6514_v0  ;;  %6239 = vrcp.f32 %v2374_v21  ;;  %v2277_v42 = vsub.f32 %v7242_v37, %v2245_v56  ;;  %v3033_v25 = vsel %vm2537_vm3, %v6363_v55, 0 }
 0x343   : > { %v7452_v60 = vpop.eup %6229  ;;  %5854 = vmatprep.subr.bf16.mxu1 %v6514_v0 }
 0x344   : > { %v6232_v18 = vpop.eup %6231  ;;  %v2429_v26 = vsel %vm2149_vm2, %v7452_v60, 0.0  ;;  %v2340_v43 = vmul.f32 1.442695, %v2277_v42 }
 0x345   : > { %2430 = vadd.xlane.f32.xlu1 %v2429_v26  ;;  %v2451_v28 = vmul.f32 %v6232_v18, %v7297_v39  ;;  %v2371_v9 = vpop.xlane.xlu1 %2370  ;;  %v2380_v59 = vpop.xlane.xlu0 %2379  ;;  %v6364_v26 = vld [vmem:[%s6704_s23 + $0x38] sm:$0xf] }
 0x346   : > { %6241 = vpow2.f32 %v2340_v43  ;;  %v3168_v43 = vsel %vm2537_vm3, %v6364_v26, 0  ;;  %v6373_v26 = vld [vmem:[%s6704_s23 + $0x54] sm:$0xf] }
 0x347   : > { %v2508_v27 = vpack.c.bf16 %v2451_v28, %v2451_v28  ;;  %6243 = vrcp.f32 %v2371_v9 }
 0x348   : > { %6245 = vrcp.f32 %v2380_v59 }
 0x349   : > { %5839 = vmatmul.mubr.msk.bf16.vlgmr.msra.gmra.mxu0 %vm2149_vm2, %v2508_v27  ;;  %v2386_v49 = vpop.xlane.xlu0 %2385 }
 0x34a   : > { %5849 = vmatpush3.bf16.msra.mxu0 %v2898_v3  ;;  %5850 = vmatprep.mubr.msk.bf16.mxu0 %vm6515_vm1, %v6514_v0 }
 0x34b   : > { %v7464_v37 = vpop.eup %6233  ;;  %5860 = vmatprep.subr.bf16.mxu0 %v6514_v0 }
 0x34c   : > { %v6236_v39 = vpop.eup %6235  ;;  %v2432_v30 = vsel %vm2149_vm2, %v7464_v37, 0.0 }
 0x34d   : > { %v6238_v58 = vpop.eup %6237  ;;  %2433 = vadd.xlane.f32.xlu0 %v2432_v30  ;;  %v2455_v4 = vmul.f32 %v6236_v39, %v7304_v29  ;;  %v2377_v16 = vpop.xlane.xlu1 %2376 }
 0x34e   : > { %v2453_v2 = vmul.f32 %v6238_v58, %v7308_v46  ;;  %6247 = vrcp.f32 %v2377_v16  ;;  %v2392_v31 = vpop.xlane.xlu0 %2391  ;;  %v6366_v58 = vld [vmem:[%s6704_s23 + $0x40] sm:$0xf] }
 0x34f   : > { %v2510_v17 = vpack.c.bf16 %v2455_v4, %v2455_v4  ;;  %v6240_v32 = vpop.eup %6239  ;;  %6249 = vrcp.f32 %v2386_v49  ;;  %v3258_v4 = vsel %vm2537_vm3, %v6366_v58, 0 }
 0x350   : > { %v2509_v12 = vpack.c.bf16 %v2453_v2, %v2453_v2  ;;  %v2459_v29 = vmul.f32 %v6240_v32, %v7312_v7 }
 0x351   : > { %5851 = vmatmul.mubr.msk.bf16.vlgmr.msra.gmra.mxu0 %vm2149_vm2, %v2510_v17 }
 0x352   : > { %5845 = vmatmul.mubr.msk.bf16.vlgmr.msra.gmra.mxu1 %vm2149_vm2, %v2509_v12  ;;  %5861 = vmatpush3.bf16.msra.mxu0 %v2988_v62  ;;  %v2512_v7 = vpack.c.bf16 %v2459_v29, %v2459_v29  ;;  %v2398_v9 = vpop.xlane.xlu0 %2397 }
 0x353   : > { %5855 = vmatpush3.bf16.msra.mxu1 %v2943_v6  ;;  %5856 = vmatprep.mubr.msk.bf16.mxu1 %vm6515_vm1, %v6514_v0  ;;  %v7480_v46 = vpop.eup %6241 }
 0x354   : > { %5862 = vmatprep.mubr.msk.bf16.mxu0 %vm6515_vm1, %v6514_v0  ;;  %5866 = vmatprep.subr.bf16.mxu1 %v6514_v0  ;;  %v6244_v44 = vpop.eup %6243  ;;  %v2435_v5 = vsel %vm2149_vm2, %v7480_v46, 0.0 }
 0x355   : > { %5872 = vmatprep.subr.bf16.mxu0 %v6514_v0  ;;  %2436 = vadd.xlane.f32.xlu1 %v2435_v5  ;;  %v2383_v10 = vpop.xlane.xlu1 %2382  ;;  %v2457_v50 = vmul.f32 %v6244_v44, %v7325_v51  ;;  %v6246_v52 = vpop.eup %6245  ;;  %v6369_v44 = vld [vmem:[%s6704_s23 + $0x44] sm:$0xf] }
 0x356   : > { %6251 = vrcp.f32 %v2383_v10  ;;  %v2463_v51 = vmul.f32 %v6246_v52, %v7319_v15  ;;  %v6365_v15 = vld [vmem:[%s6704_s23 + $0x34] sm:$0xf]  ;;  %v2404_v2 = vpop.xlane.xlu0 %2403  ;;  %v3303_v5 = vsel %vm2537_vm3, %v6369_v44, 0  ;;  %v6370_v52 = vld [vmem:[%s6704_s23 + $0x50] sm:$0xf] }
 0x357   : > { %v2511_v41 = vpack.c.bf16 %v2457_v50, %v2457_v50  ;;  %6253 = vrcp.f32 %v2392_v31  ;;  %v3123_v27 = vsel %vm2537_vm3, %v6365_v15, 0  ;;  %v6379_v44 = vld [vmem:[%s6704_s23 + $0x70] sm:$0xf] }
 0x358   : > { %v2514_v18 = vpack.c.bf16 %v2463_v51, %v2463_v51 }
 0x359   : > { %5863 = vmatmul.mubr.msk.bf16.vlgmr.msra.gmra.mxu0 %vm2149_vm2, %v2512_v7 }
 0x35a   : > { %5857 = vmatmul.mubr.msk.bf16.vlgmr.msra.gmra.mxu1 %vm2149_vm2, %v2511_v41  ;;  %5873 = vmatpush3.bf16.msra.mxu0 %v3078_v47  ;;  %v2410_v29 = vpop.xlane.xlu0 %2409  ;;  %v6371_v41 = vld [vmem:[%s6704_s23 + $0x4c] sm:$0xf] }
 0x35b   : > { %5867 = vmatpush3.bf16.msra.mxu1 %v3033_v25  ;;  %5868 = vmatprep.mubr.msk.bf16.mxu1 %vm6515_vm1, %v6514_v0  ;;  %v6248_v48 = vpop.eup %6247  ;;  %v3393_v55 = vsel %vm2537_vm3, %v6371_v41, 0 }
 0x35c   : > { %5874 = vmatprep.mubr.msk.bf16.mxu0 %vm6515_vm1, %v6514_v0  ;;  %5878 = vmatprep.subr.bf16.mxu1 %v6514_v0  ;;  %v2461_v56 = vmul.f32 %v6248_v48, %v7338_v11  ;;  %v6250_v28 = vpop.eup %6249 }
 0x35d   : > { %v2389_v21 = vpop.xlane.xlu1 %2388  ;;  %5884 = vmatprep.subr.bf16.mxu0 %v6514_v0  ;;  %v2467_v11 = vmul.f32 %v6250_v28, %v7329_v20  ;;  %v6367_v20 = vld [vmem:[%s6704_s23 + $0x3c] sm:$0xf] }
 0x35e   : > { %6255 = vrcp.f32 %v2389_v21  ;;  %v2513_v42 = vpack.c.bf16 %v2461_v56, %v2461_v56  ;;  %v3213_v17 = vsel %vm2537_vm3, %v6367_v20, 0 }
 0x35f   : > { %6257 = vrcp.f32 %v2398_v9  ;;  %v2516_v30 = vpack.c.bf16 %v2467_v11, %v2467_v11  ;;  %v6374_v11 = vld [vmem:[%s6704_s23 + $0x60] sm:$0xf] }
 0x361   : > { %5875 = vmatmul.mubr.msk.bf16.vlgmr.msra.gmra.mxu0 %vm2149_vm2, %v2514_v18 }
 0x362   : > { %5869 = vmatmul.mubr.msk.bf16.vlgmr.msra.gmra.mxu1 %vm2149_vm2, %v2513_v42  ;;  %5885 = vmatpush3.bf16.msra.mxu0 %v3168_v43  ;;  %v6372_v42 = vld [vmem:[%s6704_s23 + $0x58] sm:$0xf]  ;;  %v3483_v43 = vsel %vm2537_vm3, %v6373_v26, 0 }
 0x363   : > { %5879 = vmatpush3.bf16.msra.mxu1 %v3123_v27  ;;  %5880 = vmatprep.mubr.msk.bf16.mxu1 %vm6515_vm1, %v6514_v0  ;;  %v6252_v8 = vpop.eup %6251  ;;  %v6140_v26 = vld [vmem:[%s8280_s2 + $0x18] sm:$0xff]  }
 0x364   : > { %5886 = vmatprep.mubr.msk.bf16.mxu0 %vm6515_vm1, %v6514_v0  ;;  %5890 = vmatprep.subr.bf16.mxu1 %v6514_v0  ;;  %v2465_v59 = vmul.f32 %v6252_v8, %v7351_v40  ;;  %v6254_v16 = vpop.eup %6253  ;;  %v3618_v8 = vsel %vm2537_vm3, %v6374_v11, 0 }
 0x365   : > { %v2395_v3 = vpop.xlane.xlu1 %2394  ;;  %5896 = vmatprep.subr.bf16.mxu0 %v6514_v0  ;;  %v2471_v13 = vmul.f32 %v6254_v16, %v7335_v45  ;;  %v6368_v45 = vld [vmem:[%s6704_s23 + $0x48] sm:$0xf] }
 0x366   : > { %6259 = vrcp.f32 %v2395_v3  ;;  %v2515_v39 = vpack.c.bf16 %v2465_v59, %v2465_v59  ;;  %v3348_v35 = vsel %vm2537_vm3, %v6368_v45, 0 }
 0x367   : > { %6261 = vrcp.f32 %v2404_v2  ;;  %v2518_v12 = vpack.c.bf16 %v2471_v13, %v2471_v13 }
 0x369   : > { %5887 = vmatmul.mubr.msk.bf16.vlgmr.msra.gmra.mxu0 %vm2149_vm2, %v2516_v30  ;;  %v6376_v30 = vld [vmem:[%s6704_s23 + $0x64] sm:$0xf] }
 0x36a   : > { %5881 = vmatmul.mubr.msk.bf16.vlgmr.msra.gmra.mxu1 %vm2149_vm2, %v2515_v39  ;;  %5897 = vmatpush3.bf16.msra.mxu0 %v3258_v4  ;;  %v3663_v58 = vsel %vm2537_vm3, %v6376_v30, 0 }
 0x36b   : > { %v6256_v40 = vpop.eup %6255  ;;  %5891 = vmatpush3.bf16.msra.mxu1 %v3213_v17  ;;  %5892 = vmatprep.mubr.msk.bf16.mxu1 %vm6515_vm1, %v6514_v0 }
 0x36c   : > { %5898 = vmatprep.mubr.msk.bf16.mxu0 %vm6515_vm1, %v6514_v0  ;;  %v2469_v62 = vmul.f32 %v6256_v40, %v7362_v36  ;;  %5902 = vmatprep.subr.bf16.mxu1 %v6514_v0  ;;  %v6258_v6 = vpop.eup %6257  ;;  %v6377_v40 = vld [vmem:[%s6704_s23 + $0x68] sm:$0xf] }
 0x36d   : > { %v2401_v32 = vpop.xlane.xlu1 %2400  ;;  %5908 = vmatprep.subr.bf16.mxu0 %v6514_v0  ;;  %v2475_v10 = vmul.f32 %v6258_v6, %v7342_v14  ;;  %v3438_v14 = vsel %vm2537_vm3, %v6370_v52, 0  ;;  %v3708_v13 = vsel %vm2537_vm3, %v6377_v40, 0 }
 0x36e   : > { %6263 = vrcp.f32 %v2401_v32  ;;  %v2517_v49 = vpack.c.bf16 %v2469_v62, %v2469_v62 }
 0x36f   : > { %6265 = vrcp.f32 %v2410_v29  ;;  %v2520_v47 = vpack.c.bf16 %v2475_v10, %v2475_v10 }
 0x371   : > { %5899 = vmatmul.mubr.msk.bf16.vlgmr.msra.gmra.mxu0 %vm2149_vm2, %v2518_v12  ;;  %v6378_v12 = vld [vmem:[%s6704_s23 + $0x6c] sm:$0xf] }
 0x372   : > { %5893 = vmatmul.mubr.msk.bf16.vlgmr.msra.gmra.mxu1 %vm2149_vm2, %v2517_v49  ;;  %5909 = vmatpush3.bf16.msra.mxu0 %v3348_v35  ;;  %v3753_v45 = vsel %vm2537_vm3, %v6378_v12, 0  ;;  %v6149_v12 = vld [vmem:[%s6711_s13 + $0x30] sm:$0xff]  }
 0x373   : > { %v6260_v36 = vpop.eup %6259  ;;  %5903 = vmatpush3.bf16.msra.mxu1 %v3303_v5  ;;  %5904 = vmatprep.mubr.msk.bf16.mxu1 %vm6515_vm1, %v6514_v0  ;;  %v3798_v5 = vsel %vm2537_vm3, %v6379_v44, 0  ;;  %v6150_v44 = vld [vmem:[%s6711_s13 + $0x38] sm:$0xff]  }
 0x374   : > { %v2473_v50 = vmul.f32 %v6260_v36, %v7367_v53  ;;  %5910 = vmatprep.mubr.msk.bf16.mxu0 %vm6515_vm1, %v6514_v0  ;;  %5914 = vmatprep.subr.bf16.mxu1 %v6514_v0  ;;  %v6262_v31 = vpop.eup %6261 }
 0x375   : > { %v2407_v7 = vpop.xlane.xlu1 %2406  ;;  %5920 = vmatprep.subr.bf16.mxu0 %v6514_v0  ;;  %v2479_v25 = vmul.f32 %v6262_v31, %v7348_v63  ;;  %v3528_v63 = vsel %vm2537_vm3, %v6372_v42, 0 }
 0x376   : > { %v2519_v33 = vpack.c.bf16 %v2473_v50, %v2473_v50  ;;  %6267 = vrcp.f32 %v2407_v7  ;;  %v6380_v7 = vld [vmem:[%s6704_s23 + $0x74] sm:$0xf] }
 0x377   : > { %v2522_v56 = vpack.c.bf16 %v2479_v25, %v2479_v25 }
 0x379   : > { %5911 = vmatmul.mubr.msk.bf16.vlgmr.msra.gmra.mxu0 %vm2149_vm2, %v2520_v47 }
 0x37a   : > { %5905 = vmatmul.mubr.msk.bf16.vlgmr.msra.gmra.mxu1 %vm2149_vm2, %v2519_v33  ;;  %5921 = vmatpush3.bf16.msra.mxu0 %v3438_v14  ;;  %v3843_v33 = vsel %vm2537_vm3, %v6380_v7, 0  ;;  %v6152_v7 = vld [vmem:[%s6711_s13 + $0x48] sm:$0xff]  }
 0x37b   : > { %v6264_v53 = vpop.eup %6263  ;;  %5915 = vmatpush3.bf16.msra.mxu1 %v3393_v55  ;;  %5916 = vmatprep.mubr.msk.bf16.mxu1 %vm6515_vm1, %v6514_v0  ;;  %v6139_v55 = vld [vmem:[%s8280_s2 + $0x28] sm:$0xff]  }
 0x37c   : > { %v2477_v51 = vmul.f32 %v6264_v53, %v7372_v34  ;;  %5922 = vmatprep.mubr.msk.bf16.mxu0 %vm6515_vm1, %v6514_v0  ;;  %5926 = vmatprep.subr.bf16.mxu1 %v6514_v0  ;;  %v6266_v18 = vpop.eup %6265 }
 0x37d   : > { %v2413_v48 = vpop.xlane.xlu1 %2412  ;;  %5932 = vmatprep.subr.bf16.mxu0 %v6514_v0  ;;  %v2483_v28 = vmul.f32 %v6266_v18, %v7355_v19  ;;  %v6375_v19 = vld [vmem:[%s6704_s23 + $0x5c] sm:$0xf] }
 0x37e   : > { %v2521_v21 = vpack.c.bf16 %v2477_v51, %v2477_v51  ;;  %6269 = vrcp.f32 %v2413_v48  ;;  %v3573_v3 = vsel %vm2537_vm3, %v6375_v19, 0 }
 0x37f   : > { %v2524_v27 = vpack.c.bf16 %v2483_v28, %v2483_v28 }
 0x381   : > { %5923 = vmatmul.mubr.msk.bf16.vlgmr.msra.gmra.mxu0 %vm2149_vm2, %v2522_v56 }
 0x382   : > { %5917 = vmatmul.mubr.msk.bf16.vlgmr.msra.gmra.mxu1 %vm2149_vm2, %v2521_v21  ;;  %5933 = vmatpush3.bf16.msra.mxu0 %v3528_v63  ;;  %v6382_v63 = vld [vmem:[%s6704_s23 + $0x7c] sm:$0xf] }
 0x383   : > { %v6268_v34 = vpop.eup %6267  ;;  %5927 = vmatpush3.bf16.msra.mxu1 %v3483_v43  ;;  %5928 = vmatprep.mubr.msk.bf16.mxu1 %vm6515_vm1, %v6514_v0  ;;  %v3933_v18 = vsel %vm2537_vm3, %v6382_v63, 0 }
 0x384   : > { %v2481_v9 = vmul.f32 %v6268_v34, %v7376_v61  ;;  %5934 = vmatprep.mubr.msk.bf16.mxu0 %vm6515_vm1, %v6514_v0  ;;  %5938 = vmatprep.subr.bf16.mxu1 %v6514_v0 }
 0x385   : > { %5944 = vmatprep.subr.bf16.mxu0 %v6514_v0 }
 0x386   : > { %v2523_v15 = vpack.c.bf16 %v2481_v9, %v2481_v9 }
 0x389   : > { %5935 = vmatmul.mubr.msk.bf16.vlgmr.msra.gmra.mxu0 %vm2149_vm2, %v2524_v27 }
 0x38a   : > { %5929 = vmatmul.mubr.msk.bf16.vlgmr.msra.gmra.mxu1 %vm2149_vm2, %v2523_v15  ;;  %5945 = vmatpush3.bf16.msra.mxu0 %v3618_v8  ;;  %v6143_v15 = vld [vmem:[%s6711_s13] sm:$0xff]  }
 0x38b   : > { %v6270_v61 = vpop.eup %6269  ;;  %5939 = vmatpush3.bf16.msra.mxu1 %v3573_v3  ;;  %5940 = vmatprep.mubr.msk.bf16.mxu1 %vm6515_vm1, %v6514_v0  ;;  %v6141_v8 = vld [vmem:[%s8280_s2 + $0x20] sm:$0xff]  }
 0x38c   : > { %v2485_v59 = vmul.f32 %v6270_v61, %v7380_v24  ;;  %5946 = vmatprep.mubr.msk.bf16.mxu0 %vm6515_vm1, %v6514_v0  ;;  %5950 = vmatprep.subr.bf16.mxu1 %v6514_v0 }
 0x38d   : > { %5956 = vmatprep.subr.bf16.mxu0 %v6514_v0 }
 0x38e   : > { %v2525_v39 = vpack.c.bf16 %v2485_v59, %v2485_v59 }
 0x392   : > { %5941 = vmatmul.mubr.msk.bf16.vlgmr.msra.gmra.mxu1 %vm2149_vm2, %v2525_v39  ;;  %v6145_v39 = vld [vmem:[%s6711_s13 + $0x10] sm:$0xff]  }
 0x393   : > { %5951 = vmatpush3.bf16.msra.mxu1 %v3663_v58  ;;  %5952 = vmatprep.mubr.msk.bf16.mxu1 %vm6515_vm1, %v6514_v0 }
 0x394   : > { %5962 = vmatprep.subr.bf16.mxu1 %v6514_v0 }
 0x3a6   : > { %v2416_v24 = vpop.xlane.xlu0 %2415 }
 0x3a7   : > { %6271 = vrcp.f32 %v2416_v24  ;;  %v6142_v24 = vld [vmem:[%s8280_s2 + $0x10] sm:$0xff]  }
 0x3ae   : > { %v2419_v4 = vpop.xlane.xlu1 %2418 }
 0x3af   : > { %6273 = vrcp.f32 %v2419_v4 }
 0x3b4   : > { %v6272_v16 = vpop.eup %6271 }
 0x3b5   : > { %v2487_v2 = vmul.f32 %v6272_v16, %v7394_v22 }
 0x3b6   : > { %v2422_v20 = vpop.xlane.xlu0 %2421 }
 0x3b7   : > { %v2526_v17 = vpack.c.bf16 %v2487_v2, %v2487_v2  ;;  %6275 = vrcp.f32 %v2422_v20  ;;  %v6146_v20 = vld [vmem:[%s6711_s13 + $0x18] sm:$0xff]  }
 0x3b9   : > { %5947 = vmatmul.mubr.msk.bf16.vlgmr.msra.gmra.mxu0 %vm2149_vm2, %v2526_v17  ;;  %v6147_v17 = vld [vmem:[%s6711_s13 + $0x20] sm:$0xff]  }
 0x3ba   : > { %5957 = vmatpush3.bf16.msra.mxu0 %v3708_v13  ;;  %5958 = vmatprep.mubr.msk.bf16.mxu0 %vm6515_vm1, %v6514_v0 }
 0x3bb   : > { %5968 = vmatprep.subr.bf16.mxu0 %v6514_v0 }
 0x3bc   : > { %v6274_v62 = vpop.eup %6273 }
 0x3bd   : > { %v2489_v32 = vmul.f32 %v6274_v62, %v7405_v57 }
 0x3be   : > { %v2425_v49 = vpop.xlane.xlu1 %2424 }
 0x3bf   : > { %v2527_v22 = vpack.c.bf16 %v2489_v32, %v2489_v32  ;;  %6277 = vrcp.f32 %v2425_v49 }
 0x3c1   : > { %5953 = vmatmul.mubr.msk.bf16.vlgmr.msra.gmra.mxu1 %vm2149_vm2, %v2527_v22  ;;  %v6148_v22 = vld [vmem:[%s6711_s13 + $0x28] sm:$0xff]  }
 0x3c2   : > { %5963 = vmatpush3.bf16.msra.mxu1 %v3753_v45  ;;  %5964 = vmatprep.mubr.msk.bf16.mxu1 %vm6515_vm1, %v6514_v0 }
 0x3c3   : > { %5974 = vmatprep.subr.bf16.mxu1 %v6514_v0 }
 0x3c4   : > { %v6276_v35 = vpop.eup %6275 }
 0x3c5   : > { %v2491_v6 = vmul.f32 %v6276_v35, %v7417_v1 }
 0x3c6   : > { %v2428_v29 = vpop.xlane.xlu0 %2427 }
 0x3c7   : > { %v2528_v57 = vpack.c.bf16 %v2491_v6, %v2491_v6  ;;  %6279 = vrcp.f32 %v2428_v29 }
 0x3c9   : > { %5959 = vmatmul.mubr.msk.bf16.vlgmr.msra.gmra.mxu0 %vm2149_vm2, %v2528_v57 }
 0x3ca   : > { %5969 = vmatpush3.bf16.msra.mxu0 %v3798_v5  ;;  %5970 = vmatprep.mubr.msk.bf16.mxu0 %vm6515_vm1, %v6514_v0  ;;  %v6151_v5 = vld [vmem:[%s6711_s13 + $0x40] sm:$0xff]  }
 0x3cb   : > { %5980 = vmatprep.subr.bf16.mxu0 %v6514_v0 }
 0x3cc   : > { %v6278_v36 = vpop.eup %6277 }
 0x3cd   : > { %v2493_v10 = vmul.f32 %v6278_v36, %v7429_v38  ;;  %v6381_v38 = vld [vmem:[%s6704_s23 + $0x78] sm:$0xf] }
 0x3ce   : > { %v2431_v50 = vpop.xlane.xlu1 %2430  ;;  %v3888_v41 = vsel %vm2537_vm3, %v6381_v38, 0 }
 0x3cf   : > { %v2529_v1 = vpack.c.bf16 %v2493_v10, %v2493_v10  ;;  %6281 = vrcp.f32 %v2431_v50 }
 0x3d1   : > { %5965 = vmatmul.mubr.msk.bf16.vlgmr.msra.gmra.mxu1 %vm2149_vm2, %v2529_v1 }
 0x3d2   : > { %5975 = vmatpush3.bf16.msra.mxu1 %v3843_v33  ;;  %5976 = vmatprep.mubr.msk.bf16.mxu1 %vm6515_vm1, %v6514_v0  ;;  %v6153_v33 = vld [vmem:[%s6711_s13 + $0x50] sm:$0xff]  }
 0x3d3   : > { %5986 = vmatprep.subr.bf16.mxu1 %v6514_v0 }
 0x3d4   : > { %v6280_v47 = vpop.eup %6279 }
 0x3d5   : > { %v2495_v52 = vmul.f32 %v6280_v47, %v7441_v23 }
 0x3d6   : > { %v2434_v14 = vpop.xlane.xlu0 %2433 }
 0x3d7   : > { %v2530_v31 = vpack.c.bf16 %v2495_v52, %v2495_v52  ;;  %6283 = vrcp.f32 %v2434_v14 }
 0x3d8   : > { %v2574_v53 = vpop.f32.mrf.mxu0 }
 0x3d9   : > { %5971 = vmatmul.mubr.msk.bf16.vlgmr.msra.gmra.mxu0 %vm2149_vm2, %v2530_v31 }
 0x3da   : > { %v5804_v25 = vpop.f32.mrf.mxu0  ;;  %5981 = vmatpush3.bf16.msra.mxu0 %v3888_v41  ;;  %5982 = vmatprep.mubr.msk.bf16.mxu0 %vm6515_vm1, %v6514_v0 }
 0x3db   : > { %5992 = vmatprep.subr.bf16.mxu0 %v6139_v55 }
 0x3dc   : > { %v6282_v23 = vpop.eup %6281  ;;  %v2577_v51 = vpop.f32.mrf.mxu0 }
 0x3dd   : > { %v2497_v48 = vmul.f32 %v6282_v23, %v7452_v60  ;;  %v6155_v23 = vld [vmem:[%s6711_s13 + $0x60] sm:$0xff]  }
 0x3de   : > { %v5805_v21 = vpop.f32.mrf.mxu0  ;;  %v2437_v42 = vpop.xlane.xlu1 %2436 }
 0x3df   : > { %v2531_v56 = vpack.c.bf16 %v2497_v48, %v2497_v48  ;;  %6285 = vrcp.f32 %v2437_v42 }
 0x3e1   : > { %v2619_v43 = vpop.f32.mrf.mxu1  ;;  %5977 = vmatmul.mubr.msk.bf16.vlgmr.msra.gmra.mxu1 %vm2149_vm2, %v2531_v56 }
 0x3e2   : > { %5987 = vmatpush3.bf16.msra.mxu1 %v3933_v18  ;;  %5988 = vmatprep.mubr.msk.bf16.mxu1 %vm6515_vm1, %v6514_v0  ;;  %v3975_v4 = vpack.c.bf16 %v2619_v43, %v2574_v53  ;;  %v6154_v53 = vld [vmem:[%s6711_s13 + $0x58] sm:$0xff]   ;;  %v6156_v43 = vld [vmem:[%s6711_s13 + $0x68] sm:$0xff]  }
 0x3e3   : > { %v5810_v60 = vpop.f32.mrf.mxu1  ;;  %6028 = vmatprep.subr.bf16.mxu1 %v6140_v26 }
 0x3e4   : > { %v6284_v34 = vpop.eup %6283 }
 0x3e5   : > { %v2499_v28 = vmul.f32 %v6284_v34, %v7464_v37  ;;  %v2622_v9 = vpop.f32.mrf.mxu1  ;;  %v6144_v37 = vld [vmem:[%s6711_s13 + $0x8] sm:$0xff]  }
 0x3e7   : > { %v2532_v27 = vpack.c.bf16 %v2499_v28, %v2499_v28  ;;  %v5811_v11 = vpop.f32.mrf.mxu1 }
 0x3e9   : > { %v2664_v19 = vpop.f32.mrf.mxu0  ;;  %5983 = vmatmul.mubr.msk.bf16.vlgmr.msra.gmra.mxu0 %vm2149_vm2, %v2532_v27 }
 0x3ea   : > { %5993 = vmatpush3.bf16.msra.mxu0 %v6139_v55  ;;  %5996 = vmatprep.mubr.msk.bf16.mxu0 %vm435_vm0, %v6143_v15 }
 0x3eb   : > { %v5816_v0 = vpop.f32.mrf.mxu0  ;;  %5994 = vmatprep.subr.bf16.mxu0 %v6141_v8 }
 0x3ec   : > { %v6286_v3 = vpop.eup %6285 }
 0x3ed   : > { %v2667_v61 = vpop.f32.mrf.mxu0  ;;  %v2501_v59 = vmul.f32 %v6286_v3, %v7480_v46 }
 0x3ee   : > { %5995 = vmatpush3.bf16.msra.mxu0 %v6141_v8 }
 0x3ef   : > { %v5817_v30 = vpop.f32.mrf.mxu0  ;;  %v2533_v58 = vpack.c.bf16 %v2501_v59, %v2501_v59 }
 0x3f1   : > { %v2709_v16 = vpop.f32.mrf.mxu1  ;;  %5997 = vmatmul.mubr.msk.bf16.vlgmr.msra.gmra.mxu0 %vm435_vm0, %v6144_v37  ;;  %5989 = vmatmul.mubr.msk.bf16.vlgmr.msra.gmra.mxu1 %vm2149_vm2, %v2533_v58 }
 0x3f2   : > { %6000 = vmatprep.mubr.msk.bf16.mxu0 %vm435_vm0, %v6145_v39  ;;  %6029 = vmatpush3.bf16.msra.mxu1 %v6140_v26  ;;  %v3976_v13 = vpack.c.bf16 %v2709_v16, %v2664_v19  ;;  %v6158_v16 = vld [vmem:[%s6711_s13 + $0x78] sm:$0xff]  }
 0x3f3   : > { %v5822_v2 = vpop.f32.mrf.mxu1  ;;  %6032 = vmatprep.mubr.msk.bf16.mxu1 %vm435_vm0, %v3975_v4  ;;  %6030 = vmatprep.subr.bf16.mxu1 %v6142_v24  ;;  %v6157_v4 = vld [vmem:[%s6711_s13 + $0x70] sm:$0xff]  }
 0x3f5   : > { %v2712_v46 = vpop.f32.mrf.mxu1 }
 0x3f6   : > { %6031 = vmatpush3.bf16.msra.mxu1 %v6142_v24 }
 0x3f7   : > { %v5823_v40 = vpop.f32.mrf.mxu1 }
 0x3f9   : > { %v2754_v62 = vpop.f32.mrf.mxu0  ;;  %6001 = vmatmul.mubr.msk.bf16.gmra.mxu0 %vm435_vm0, %v6146_v20  ;;  %6033 = vmatmul.mubr.msk.bf16.vlgmr.msra.gmra.mxu1 %vm435_vm0, %v3976_v13 }
 0x3fa   : > { %6004 = vmatprep.mubr.msk.bf16.mxu0 %vm435_vm0, %v6147_v17 }
 0x3fb   : > { %v5828_v32 = vpop.f32.mrf.mxu0 }
 0x3fd   : > { %v2757_v49 = vpop.f32.mrf.mxu0 }
 0x3ff   : > { %v5829_v45 = vpop.f32.mrf.mxu0 }
 0x401   : > { %v2799_v35 = vpop.f32.mrf.mxu1  ;;  %6005 = vmatmul.mubr.msk.bf16.gmra.mxu0 %vm435_vm0, %v6148_v22 }
 0x402   : > { %v3977_v6 = vpack.c.bf16 %v2799_v35, %v2754_v62  ;;  %6008 = vmatprep.mubr.msk.bf16.mxu0 %vm435_vm0, %v6149_v12 }
 0x403   : > { %v5834_v29 = vpop.f32.mrf.mxu1 }
 0x404   : > { %6036 = vmatprep.mubr.msk.bf16.mxu1 %vm435_vm0, %v3977_v6 }
 0x405   : > { %v2802_v57 = vpop.f32.mrf.mxu1 }
 0x407   : > { %v5835_v36 = vpop.f32.mrf.mxu1 }
 0x409   : > { %v2844_v10 = vpop.f32.mrf.mxu0  ;;  %6009 = vmatmul.mubr.msk.bf16.gmra.mxu0 %vm435_vm0, %v6150_v44 }
 0x40a   : > { %6012 = vmatprep.mubr.msk.bf16.mxu0 %vm435_vm0, %v6151_v5 }
 0x40b   : > { %v5840_v50 = vpop.f32.mrf.mxu0 }
 0x40d   : > { %v2847_v1 = vpop.f32.mrf.mxu0 }
 0x40f   : > { %v5841_v47 = vpop.f32.mrf.mxu0 }
 0x411   : > { %v2934_v52 = vpop.f32.mrf.mxu0  ;;  %6013 = vmatmul.mubr.msk.bf16.gmra.mxu0 %vm435_vm0, %v6152_v7 }
 0x412   : > { %v2889_v14 = vpop.f32.mrf.mxu1  ;;  %6016 = vmatprep.mubr.msk.bf16.mxu0 %vm435_vm0, %v6153_v33 }
 0x413   : > { %v3978_v31 = vpack.c.bf16 %v2889_v14, %v2844_v10  ;;  %v5852_v38 = vpop.f32.mrf.mxu0 }
 0x414   : > { %v5846_v41 = vpop.f32.mrf.mxu1 }
 0x415   : > { %6037 = vmatmul.mubr.msk.bf16.gmra.mxu1 %vm435_vm0, %v3978_v31  ;;  %v2937_v55 = vpop.f32.mrf.mxu0 }
 0x416   : > { %v2892_v25 = vpop.f32.mrf.mxu1 }
 0x417   : > { %v5853_v51 = vpop.f32.mrf.mxu0 }
 0x418   : > { %v5847_v48 = vpop.f32.mrf.mxu1 }
 0x419   : > { %v3024_v21 = vpop.f32.mrf.mxu0  ;;  %6017 = vmatmul.mubr.msk.bf16.gmra.mxu0 %vm435_vm0, %v6154_v53 }
 0x41a   : > { %v2979_v56 = vpop.f32.mrf.mxu1  ;;  %6020 = vmatprep.mubr.msk.bf16.mxu0 %vm435_vm0, %v6155_v23 }
 0x41b   : > { %v3979_v42 = vpack.c.bf16 %v2979_v56, %v2934_v52  ;;  %v5864_v63 = vpop.f32.mrf.mxu0 }
 0x41c   : > { %v5858_v18 = vpop.f32.mrf.mxu1 }
 0x41d   : > { %6040 = vmatprep.mubr.msk.bf16.mxu1 %vm435_vm0, %v3979_v42  ;;  %v3027_v26 = vpop.f32.mrf.mxu0 }
 0x41e   : > { %v2982_v60 = vpop.f32.mrf.mxu1 }
 0x41f   : > { %v5865_v34 = vpop.f32.mrf.mxu0 }
 0x420   : > { %v5859_v28 = vpop.f32.mrf.mxu1 }
 0x421   : > { %v3114_v9 = vpop.f32.mrf.mxu0  ;;  %6021 = vmatmul.mubr.msk.bf16.gmra.mxu0 %vm435_vm0, %v6156_v43 }
 0x422   : > { %v3069_v15 = vpop.f32.mrf.mxu1  ;;  %6024 = vmatprep.mubr.msk.bf16.mxu0 %vm435_vm0, %v6157_v4 }
 0x423   : > { %v3980_v27 = vpack.c.bf16 %v3069_v15, %v3024_v21  ;;  %v5876_v11 = vpop.f32.mrf.mxu0 }
 0x424   : > { %v5870_v8 = vpop.f32.mrf.mxu1 }
 0x425   : > { %6041 = vmatmul.mubr.msk.bf16.gmra.mxu1 %vm435_vm0, %v3980_v27  ;;  %v3117_v19 = vpop.f32.mrf.mxu0 }
 0x426   : > { %v3072_v0 = vpop.f32.mrf.mxu1 }
 0x427   : > { %v5877_v3 = vpop.f32.mrf.mxu0 }
 0x428   : > { %v5871_v61 = vpop.f32.mrf.mxu1 }
 0x429   : > { %v3204_v37 = vpop.f32.mrf.mxu0  ;;  %6025 = vmatmul.mubr.msk.bf16.gmra.mxu0 %vm435_vm0, %v6158_v16 }
 0x42a   : > { %v3159_v59 = vpop.f32.mrf.mxu1 }
 0x42b   : > { %v3981_v39 = vpack.c.bf16 %v3159_v59, %v3114_v9  ;;  %v5888_v30 = vpop.f32.mrf.mxu0 }
 0x42c   : > { %v5882_v58 = vpop.f32.mrf.mxu1 }
 0x42d   : > { %6044 = vmatprep.mubr.msk.bf16.mxu1 %vm435_vm0, %v3981_v39  ;;  %v3207_v24 = vpop.f32.mrf.mxu0 }
 0x42e   : > { %v3162_v2 = vpop.f32.mrf.mxu1 }
 0x42f   : > { %v5889_v46 = vpop.f32.mrf.mxu0 }
 0x430   : > { %v5883_v20 = vpop.f32.mrf.mxu1 }
 0x431   : > { %v3294_v17 = vpop.f32.mrf.mxu0 }
 0x432   : > { %v3249_v40 = vpop.f32.mrf.mxu1 }
 0x433   : > { %v3982_v13 = vpack.c.bf16 %v3249_v40, %v3204_v37  ;;  %v5900_v62 = vpop.f32.mrf.mxu0 }
 0x434   : > { %v5894_v32 = vpop.f32.mrf.mxu1 }
 0x435   : > { %6045 = vmatmul.mubr.msk.bf16.gmra.mxu1 %vm435_vm0, %v3982_v13  ;;  %v3297_v49 = vpop.f32.mrf.mxu0 }
 0x436   : > { %v3252_v22 = vpop.f32.mrf.mxu1 }
 0x437   : > { %v5901_v12 = vpop.f32.mrf.mxu0 }
 0x438   : > { %v5895_v45 = vpop.f32.mrf.mxu1 }
 0x439   : > { %v3384_v35 = vpop.f32.mrf.mxu0 }
 0x43a   : > { %v3339_v6 = vpop.f32.mrf.mxu1 }
 0x43b   : > { %v3983_v29 = vpack.c.bf16 %v3339_v6, %v3294_v17  ;;  %v5912_v57 = vpop.f32.mrf.mxu0 }
 0x43c   : > { %v5906_v44 = vpop.f32.mrf.mxu1 }
 0x43d   : > { %6048 = vmatprep.mubr.msk.bf16.mxu1 %vm435_vm0, %v3983_v29  ;;  %v3387_v5 = vpop.f32.mrf.mxu0  ;;  %v4515_v44 = vsub.s32 1, %v6871_v54 }
 0x43e   : > { %v3342_v36 = vpop.f32.mrf.mxu1 }
 0x43f   : > { %v5913_v10 = vpop.f32.mrf.mxu0 }
 0x440   : > { %v5907_v50 = vpop.f32.mrf.mxu1 }
 0x441   : > { %v3474_v1 = vpop.f32.mrf.mxu0  ;;  %v7700_v50 = vld [vmem:[%s8281_s3] sm:$0xf] }
 0x442   : > { %v3429_v7 = vpop.f32.mrf.mxu1 }
 0x443   : > { %v3984_v33 = vpack.c.bf16 %v3429_v7, %v3384_v35  ;;  %v5924_v47 = vpop.f32.mrf.mxu0 }
 0x444   : > { %v5918_v52 = vpop.f32.mrf.mxu1 }
 0x445   : > { %6049 = vmatmul.mubr.msk.bf16.gmra.mxu1 %vm435_vm0, %v3984_v33  ;;  %v3477_v14 = vpop.f32.mrf.mxu0 }
 0x446   : > { %v3432_v31 = vpop.f32.mrf.mxu1 }
 0x447   : > { %v5925_v38 = vpop.f32.mrf.mxu0 }
 0x448   : > { %v5919_v41 = vpop.f32.mrf.mxu1 }
 0x449   : > { %v3564_v55 = vpop.f32.mrf.mxu0 }
 0x44a   : > { %v3519_v53 = vpop.f32.mrf.mxu1 }
 0x44b   : > { %v3985_v25 = vpack.c.bf16 %v3519_v53, %v3474_v1  ;;  %v5936_v23 = vpop.f32.mrf.mxu0  ;;  %v7703_v1 = vrot.slane %v7700_v50, %v4515_v44 }
 0x44c   : > { %v5930_v51 = vpop.f32.mrf.mxu1 }
 0x44d   : > { %6052 = vmatprep.mubr.msk.bf16.mxu1 %vm435_vm0, %v3985_v25  ;;  %v3567_v48 = vpop.f32.mrf.mxu0 }
 0x44e   : > { %v3522_v21 = vpop.f32.mrf.mxu1 }
 0x44f   : > { %v5937_v56 = vpop.f32.mrf.mxu0 }
 0x450   : > { %v5931_v42 = vpop.f32.mrf.mxu1 }
 0x452   : > { %v3609_v63 = vpop.f32.mrf.mxu1 }
 0x453   : > { %v3986_v18 = vpack.c.bf16 %v3609_v63, %v3564_v55 }
 0x454   : > { %v5942_v26 = vpop.f32.mrf.mxu1 }
 0x455   : > { %6053 = vmatmul.mubr.msk.bf16.gmra.mxu1 %vm435_vm0, %v3986_v18 }
 0x456   : > { %v3612_v43 = vpop.f32.mrf.mxu1 }
 0x458   : > { %v5943_v60 = vpop.f32.mrf.mxu1 }
 0x479   : > { %v3654_v34 = vpop.f32.mrf.mxu0 }
 0x47b   : > { %v5948_v28 = vpop.f32.mrf.mxu0 }
 0x47d   : > { %v3657_v9 = vpop.f32.mrf.mxu0 }
 0x47f   : > { %v5949_v15 = vpop.f32.mrf.mxu0 }
 0x481   : > { %v3699_v27 = vpop.f32.mrf.mxu1 }
 0x482   : > { %v3987_v11 = vpack.c.bf16 %v3699_v27, %v3654_v34 }
 0x483   : > { %v5954_v8 = vpop.f32.mrf.mxu1 }
 0x484   : > { %6056 = vmatprep.mubr.msk.bf16.mxu1 %vm435_vm0, %v3987_v11 }
 0x485   : > { %v3702_v19 = vpop.f32.mrf.mxu1 }
 0x487   : > { %v5955_v0 = vpop.f32.mrf.mxu1 }
 0x489   : > { %v3744_v3 = vpop.f32.mrf.mxu0 }
 0x48b   : > { %v5960_v61 = vpop.f32.mrf.mxu0 }
 0x48d   : > { %v3747_v37 = vpop.f32.mrf.mxu0 }
 0x48f   : > { %v5961_v59 = vpop.f32.mrf.mxu0 }
 0x491   : > { %v3789_v39 = vpop.f32.mrf.mxu1 }
 0x492   : > { %v3988_v30 = vpack.c.bf16 %v3789_v39, %v3744_v3 }
 0x493   : > { %v5966_v58 = vpop.f32.mrf.mxu1 }
 0x494   : > { %6057 = vmatmul.mubr.msk.bf16.gmra.mxu1 %vm435_vm0, %v3988_v30 }
 0x495   : > { %v3792_v24 = vpop.f32.mrf.mxu1 }
 0x497   : > { %v5967_v4 = vpop.f32.mrf.mxu1 }
 0x499   : > { %v3834_v16 = vpop.f32.mrf.mxu0 }
 0x49b   : > { %v5972_v2 = vpop.f32.mrf.mxu0 }
 0x49d   : > { %v3837_v46 = vpop.f32.mrf.mxu0 }
 0x49f   : > { %v5973_v20 = vpop.f32.mrf.mxu0 }
 0x4a1   : > { %v3879_v17 = vpop.f32.mrf.mxu1 }
 0x4a2   : > { %v3989_v40 = vpack.c.bf16 %v3879_v17, %v3834_v16 }
 0x4a3   : > { %v5978_v13 = vpop.f32.mrf.mxu1 }
 0x4a4   : > { %6060 = vmatprep.mubr.msk.bf16.mxu1 %vm435_vm0, %v3989_v40 }
 0x4a5   : > { %v3882_v62 = vpop.f32.mrf.mxu1 }
 0x4a7   : > { %v5979_v32 = vpop.f32.mrf.mxu1 }
 0x4a9   : > { %v3924_v49 = vpop.f32.mrf.mxu0 }
 0x4ab   : > { %v5984_v22 = vpop.f32.mrf.mxu0 }
 0x4ad   : > { %v3927_v12 = vpop.f32.mrf.mxu0 }
 0x4af   : > { %v5985_v45 = vpop.f32.mrf.mxu0 }
 0x4b1   : > { %v3969_v35 = vpop.f32.mrf.mxu1  ;;  %v5998_v6 = vpop.f32.mrf.mxu0 }
 0x4b2   : > { %v3990_v29 = vpack.c.bf16 %v3969_v35, %v3924_v49 }
 0x4b3   : > { %v5990_v57 = vpop.f32.mrf.mxu1  ;;  %v4165_v36 = vpop.f32.mrf.mxu0 }
 0x4b4   : > { %6061 = vmatmul.mubr.msk.bf16.gmra.mxu1 %vm435_vm0, %v3990_v29 }
 0x4b5   : > { %v3972_v5 = vpop.f32.mrf.mxu1  ;;  %v5999_v33 = vpop.f32.mrf.mxu0 }
 0x4b7   : > { %v5991_v10 = vpop.f32.mrf.mxu1  ;;  %v4168_v41 = vpop.f32.mrf.mxu0 }
 0x4b9   : > { %v6034_v7 = vpop.f32.mrf.mxu1  ;;  %v6002_v18 = vpop.f32.mrf.mxu0 }
 0x4ba   : > { %v4395_v47 = vadd.f32 %v6034_v7, %v5998_v6 }
 0x4bb   : > { %v4386_v52 = vpop.f32.mrf.mxu1  ;;  %v4181_v26 = vpop.f32.mrf.mxu0 }
 0x4bc   : > { %v4387_v14 = vadd.f32 %v4386_v52, %v4165_v36  ;;  %v7706_v31 = vadd.f32 %v7703_v1, %v4395_v47 }
 0x4bd   : > { %v6035_v38 = vpop.f32.mrf.mxu1  ;;  %v6003_v60 = vpop.f32.mrf.mxu0 }
 0x4be   : > { %v4398_v55 = vadd.f32 %v6035_v38, %v5999_v33  ;;  %v4555_v53 = vsel %vm435_vm0, %v7706_v31, 0.0  ;;  %v7711_v25 = vadd.f32 %v7703_v1, %v4387_v14 }
 0x4bf   : > { %4556 = vadd.xlane.f32.xlu0 %v4555_v53  ;;  %v4389_v23 = vpop.f32.mrf.mxu1  ;;  %v4184_v11 = vpop.f32.mrf.mxu0 }
 0x4c0   : > { %v4390_v51 = vadd.f32 %v4389_v23, %v4168_v41  ;;  %v7714_v48 = vadd.f32 %v7703_v1, %v4398_v55  ;;  %v4549_v56 = vsel %vm435_vm0, %v7711_v25, 0.0 }
 0x4c1   : > { %v6006_v59 = vpop.f32.mrf.mxu0 }
 0x4c2   : > { %v4558_v21 = vsel %vm435_vm0, %v7714_v48, 0.0  ;;  %v7721_v42 = vadd.f32 %v7703_v1, %v4390_v51 }
 0x4c3   : > { %4559 = vadd.xlane.f32.xlu1 %v4558_v21  ;;  %4550 = vadd.xlane.f32.xlu0 %v4549_v56  ;;  %v4197_v24 = vpop.f32.mrf.mxu0 }
 0x4c4   : > { %v4552_v63 = vsel %vm435_vm0, %v7721_v42, 0.0 }
 0x4c5   : > { %v6007_v2 = vpop.f32.mrf.mxu0 }
 0x4c7   : > { %4553 = vadd.xlane.f32.xlu1 %v4552_v63  ;;  %v4200_v62 = vpop.f32.mrf.mxu0 }
 0x4c9   : > { %v6010_v6 = vpop.f32.mrf.mxu0 }
 0x4cb   : > { %v4213_v5 = vpop.f32.mrf.mxu0 }
 0x4cd   : > { %v6011_v7 = vpop.f32.mrf.mxu0 }
 0x4cf   : > { %v4216_v41 = vpop.f32.mrf.mxu0 }
 0x4d1   : > { %v6014_v63 = vpop.f32.mrf.mxu0 }
 0x4d5   : > { %v6038_v43 = vpop.f32.mrf.mxu1 }
 0x4d6   : > { %v4411_v34 = vadd.f32 %v6038_v43, %v6002_v18 }
 0x4d7   : > { %v4402_v28 = vpop.f32.mrf.mxu1 }
 0x4d8   : > { %v4403_v9 = vadd.f32 %v4402_v28, %v4181_v26  ;;  %v7726_v15 = vadd.f32 %v7703_v1, %v4411_v34 }
 0x4d9   : > { %v6039_v27 = vpop.f32.mrf.mxu1 }
 0x4da   : > { %v4414_v8 = vadd.f32 %v6039_v27, %v6003_v60  ;;  %v4567_v19 = vsel %vm435_vm0, %v7726_v15, 0.0  ;;  %v7731_v0 = vadd.f32 %v7703_v1, %v4403_v9  ;;  %v4229_v60 = vpop.f32.mrf.mxu0 }
 0x4db   : > { %v4405_v3 = vpop.f32.mrf.mxu1  ;;  %4568 = vadd.xlane.f32.xlu0 %v4567_v19 }
 0x4dc   : > { %v4406_v61 = vadd.f32 %v4405_v3, %v4184_v11  ;;  %v7734_v37 = vadd.f32 %v7703_v1, %v4414_v8  ;;  %v4561_v30 = vsel %vm435_vm0, %v7731_v0, 0.0  ;;  %v6015_v9 = vpop.f32.mrf.mxu0 }
 0x4de   : > { %v4570_v39 = vsel %vm435_vm0, %v7734_v37, 0.0  ;;  %v7741_v58 = vadd.f32 %v7703_v1, %v4406_v61  ;;  %v4232_v61 = vpop.f32.mrf.mxu0 }
 0x4df   : > { %4571 = vadd.xlane.f32.xlu1 %v4570_v39  ;;  %4562 = vadd.xlane.f32.xlu0 %v4561_v30 }
 0x4e0   : > { %v4564_v4 = vsel %vm435_vm0, %v7741_v58, 0.0 }
 0x4e3   : > { %4565 = vadd.xlane.f32.xlu1 %v4564_v4 }
 0x4e5   : > { %v6042_v16 = vpop.f32.mrf.mxu1 }
 0x4e6   : > { %v4427_v46 = vadd.f32 %v6042_v16, %v6006_v59 }
 0x4e7   : > { %v4418_v20 = vpop.f32.mrf.mxu1 }
 0x4e8   : > { %v4419_v17 = vadd.f32 %v4418_v20, %v4197_v24  ;;  %v7746_v40 = vadd.f32 %v7703_v1, %v4427_v46 }
 0x4e9   : > { %v6043_v13 = vpop.f32.mrf.mxu1 }
 0x4ea   : > { %v4430_v32 = vadd.f32 %v6043_v13, %v6007_v2  ;;  %v4579_v49 = vsel %vm435_vm0, %v7746_v40, 0.0  ;;  %v7751_v22 = vadd.f32 %v7703_v1, %v4419_v17  ;;  %v6018_v2 = vpop.f32.mrf.mxu0 }
 0x4eb   : > { %v4421_v12 = vpop.f32.mrf.mxu1  ;;  %4580 = vadd.xlane.f32.xlu0 %v4579_v49 }
 0x4ec   : > { %v4422_v45 = vadd.f32 %v4421_v12, %v4200_v62  ;;  %v7754_v35 = vadd.f32 %v7703_v1, %v4430_v32  ;;  %v4573_v57 = vsel %vm435_vm0, %v7751_v22, 0.0  ;;  %v4245_v13 = vpop.f32.mrf.mxu0 }
 0x4ee   : > { %v4582_v29 = vsel %vm435_vm0, %v7754_v35, 0.0  ;;  %v7761_v44 = vadd.f32 %v7703_v1, %v4422_v45  ;;  %v6019_v49 = vpop.f32.mrf.mxu0 }
 0x4ef   : > { %4583 = vadd.xlane.f32.xlu1 %v4582_v29  ;;  %4574 = vadd.xlane.f32.xlu0 %v4573_v57 }
 0x4f0   : > { %v4576_v36 = vsel %vm435_vm0, %v7761_v44, 0.0 }
 0x4f3   : > { %4577 = vadd.xlane.f32.xlu1 %v4576_v36 }
 0x4f5   : > { %v6046_v10 = vpop.f32.mrf.mxu1 }
 0x4f6   : > { %v4443_v33 = vadd.f32 %v6046_v10, %v6010_v6 }
 0x4f7   : > { %v4434_v47 = vpop.f32.mrf.mxu1 }
 0x4f8   : > { %v4435_v52 = vadd.f32 %v4434_v47, %v4213_v5  ;;  %v7766_v14 = vadd.f32 %v7703_v1, %v4443_v33  ;;  %v4248_v5 = vpop.f32.mrf.mxu0 }
 0x4f9   : > { %v6047_v38 = vpop.f32.mrf.mxu1 }
 0x4fa   : > { %v4446_v55 = vadd.f32 %v6047_v38, %v6011_v7  ;;  %v4591_v53 = vsel %vm435_vm0, %v7766_v14, 0.0  ;;  %v7771_v23 = vadd.f32 %v7703_v1, %v4435_v52 }
 0x4fb   : > { %v4437_v51 = vpop.f32.mrf.mxu1  ;;  %4592 = vadd.xlane.f32.xlu0 %v4591_v53 }
 0x4fc   : > { %v4438_v21 = vadd.f32 %v4437_v51, %v4216_v41  ;;  %v7774_v56 = vadd.f32 %v7703_v1, %v4446_v55  ;;  %v4585_v26 = vsel %vm435_vm0, %v7771_v23, 0.0  ;;  %v6022_v51 = vpop.f32.mrf.mxu0 }
 0x4fe   : > { %v4594_v18 = vsel %vm435_vm0, %v7774_v56, 0.0  ;;  %v7781_v43 = vadd.f32 %v7703_v1, %v4438_v21  ;;  %v4261_v21 = vpop.f32.mrf.mxu0 }
 0x4ff   : > { %4595 = vadd.xlane.f32.xlu1 %v4594_v18  ;;  %4586 = vadd.xlane.f32.xlu0 %v4585_v26 }
 0x500   : > { %v4588_v34 = vsel %vm435_vm0, %v7781_v43, 0.0  ;;  %v6023_v18 = vpop.f32.mrf.mxu0 }
 0x503   : > { %4589 = vadd.xlane.f32.xlu1 %v4588_v34 }
 0x505   : > { %v6050_v28 = vpop.f32.mrf.mxu1 }
 0x506   : > { %v4459_v27 = vadd.f32 %v6050_v28, %v6014_v63 }
 0x507   : > { %v4450_v11 = vpop.f32.mrf.mxu1 }
 0x508   : > { %v4451_v8 = vadd.f32 %v4450_v11, %v4229_v60  ;;  %v7786_v19 = vadd.f32 %v7703_v1, %v4459_v27  ;;  %v4264_v27 = vpop.f32.mrf.mxu0 }
 0x509   : > { %v6051_v3 = vpop.f32.mrf.mxu1 }
 0x50a   : > { %v4462_v59 = vadd.f32 %v6051_v3, %v6015_v9  ;;  %v4603_v39 = vsel %vm435_vm0, %v7786_v19, 0.0  ;;  %v7791_v30 = vadd.f32 %v7703_v1, %v4451_v8 }
 0x50b   : > { %v4453_v24 = vpop.f32.mrf.mxu1  ;;  %4604 = vadd.xlane.f32.xlu0 %v4603_v39 }
 0x50c   : > { %v4454_v4 = vadd.f32 %v4453_v24, %v4232_v61  ;;  %v7794_v16 = vadd.f32 %v7703_v1, %v4462_v59  ;;  %v4597_v20 = vsel %vm435_vm0, %v7791_v30, 0.0 }
 0x50e   : > { %v4606_v46 = vsel %vm435_vm0, %v7794_v16, 0.0  ;;  %v7801_v17 = vadd.f32 %v7703_v1, %v4454_v4 }
 0x50f   : > { %4607 = vadd.xlane.f32.xlu1 %v4606_v46  ;;  %4598 = vadd.xlane.f32.xlu0 %v4597_v20 }
 0x510   : > { %v4600_v62 = vsel %vm435_vm0, %v7801_v17, 0.0 }
 0x513   : > { %4601 = vadd.xlane.f32.xlu1 %v4600_v62 }
 0x515   : > { %v6054_v32 = vpop.f32.mrf.mxu1 }
 0x516   : > { %v4475_v12 = vadd.f32 %v6054_v32, %v6018_v2 }
 0x517   : > { %v4466_v45 = vpop.f32.mrf.mxu1 }
 0x518   : > { %v4467_v6 = vadd.f32 %v4466_v45, %v4245_v13  ;;  %v7806_v29 = vadd.f32 %v7703_v1, %v4475_v12  ;;  %v6026_v13 = vpop.f32.mrf.mxu0 }
 0x519   : > { %v6055_v57 = vpop.f32.mrf.mxu1 }
 0x51a   : > { %v4478_v36 = vadd.f32 %v6055_v57, %v6019_v49  ;;  %v4615_v10 = vsel %vm435_vm0, %v7806_v29, 0.0  ;;  %v7811_v7 = vadd.f32 %v7703_v1, %v4467_v6  ;;  %v4277_v49 = vpop.f32.mrf.mxu0 }
 0x51b   : > { %v4469_v33 = vpop.f32.mrf.mxu1  ;;  %4616 = vadd.xlane.f32.xlu0 %v4615_v10 }
 0x51c   : > { %v4470_v47 = vadd.f32 %v4469_v33, %v4248_v5  ;;  %v7814_v52 = vadd.f32 %v7703_v1, %v4478_v36  ;;  %v4609_v41 = vsel %vm435_vm0, %v7811_v7, 0.0  ;;  %v6027_v5 = vpop.f32.mrf.mxu0 }
 0x51e   : > { %v4618_v38 = vsel %vm435_vm0, %v7814_v52, 0.0  ;;  %v7821_v55 = vadd.f32 %v7703_v1, %v4470_v47 }
 0x51f   : > { %4619 = vadd.xlane.f32.xlu1 %v4618_v38  ;;  %4610 = vadd.xlane.f32.xlu0 %v4609_v41 }
 0x520   : > { %v4612_v53 = vsel %vm435_vm0, %v7821_v55, 0.0 }
 0x523   : > { %4613 = vadd.xlane.f32.xlu1 %v4612_v53 }
 0x548   : > { %v4557_v20 = vpop.xlane.xlu0 %4556 }
 0x549   : > { %v4648_v57 = vmul.f32 0.03125, %v4557_v20 }
 0x54b   : > { %v7849_v53 = vsub.f32 %v7706_v31, %v4648_v57 }
 0x54c   : > { %v4560_v62 = vpop.xlane.xlu1 %4559  ;;  %v4551_v32 = vpop.xlane.xlu0 %4550 }
 0x550   : > { %v4554_v45 = vpop.xlane.xlu1 %4553 }
 0x554   : > { %v6058_v63 = vpop.f32.mrf.mxu1 }
 0x555   : > { %v4491_v26 = vadd.f32 %v6058_v63, %v6022_v51  ;;  %v4649_v51 = vmul.f32 0.03125, %v4560_v62  ;;  %v4280_v63 = vpop.f32.mrf.mxu0 }
 0x556   : > { %v4482_v60 = vpop.f32.mrf.mxu1 }
 0x557   : > { %v4483_v34 = vadd.f32 %v4482_v60, %v4261_v21  ;;  %v7826_v28 = vadd.f32 %v7703_v1, %v4491_v26  ;;  %v4646_v21 = vmul.f32 0.03125, %v4551_v32  ;;  %v7860_v31 = vsub.f32 %v7714_v48, %v4649_v51 }
 0x558   : > { %v6059_v9 = vpop.f32.mrf.mxu1 }
 0x559   : > { %v4494_v11 = vadd.f32 %v6059_v9, %v6023_v18  ;;  %v4627_v8 = vsel %vm435_vm0, %v7826_v28, 0.0  ;;  %v7831_v3 = vadd.f32 %v7703_v1, %v4483_v34 }
 0x55a   : > { %v4485_v61 = vpop.f32.mrf.mxu1  ;;  %4628 = vadd.xlane.f32.xlu0 %v4627_v8  ;;  %v7863_v8 = vsub.f32 %v7711_v25, %v4646_v21 }
 0x55b   : > { %v4486_v59 = vadd.f32 %v4485_v61, %v4264_v27  ;;  %v7834_v39 = vadd.f32 %v7703_v1, %v4494_v11  ;;  %v4621_v4 = vsel %vm435_vm0, %v7831_v3, 0.0  ;;  %v4647_v61 = vmul.f32 0.03125, %v4554_v45 }
 0x55c   : > { %v4710_v57 = vmul.f32 %v7863_v8, %v7863_v8 }
 0x55d   : > { %v4630_v24 = vsel %vm435_vm0, %v7834_v39, 0.0  ;;  %v7841_v2 = vadd.f32 %v7703_v1, %v4486_v59  ;;  %v4712_v59 = vmul.f32 %v7849_v53, %v7849_v53  ;;  %v7875_v25 = vsub.f32 %v7721_v42, %v4647_v61 }
 0x55e   : > { %4631 = vadd.xlane.f32.xlu1 %v4630_v24  ;;  %4622 = vadd.xlane.f32.xlu0 %v4621_v4 }
 0x55f   : > { %v4624_v46 = vsel %vm435_vm0, %v7841_v2, 0.0 }
 0x562   : > { %4625 = vadd.xlane.f32.xlu1 %v4624_v46 }
 0x564   : > { %v4569_v6 = vpop.xlane.xlu0 %4568 }
 0x565   : > { %v4652_v24 = vmul.f32 0.03125, %v4569_v6 }
 0x568   : > { %v4572_v38 = vpop.xlane.xlu1 %4571  ;;  %v4563_v26 = vpop.xlane.xlu0 %4562 }
 0x569   : > { %v4653_v48 = vmul.f32 0.03125, %v4572_v38  ;;  %v4650_v32 = vmul.f32 0.03125, %v4563_v26  ;;  %v4742_v38 = vsel %vm435_vm0, %v4710_v57, 0.0 }
 0x56c   : > { %v4566_v4 = vpop.xlane.xlu1 %4565 }
 0x574   : > { %v6062_v12 = vpop.f32.mrf.mxu1  ;;  %v4581_v46 = vpop.xlane.xlu0 %4580 }
 0x575   : > { %v4507_v10 = vadd.f32 %v6062_v12, %v6026_v13  ;;  %v7879_v12 = vsub.f32 %v7726_v15, %v4652_v24  ;;  %v4651_v15 = vmul.f32 0.03125, %v4566_v4 }
 0x576   : > { %v4498_v36 = vpop.f32.mrf.mxu1 }
 0x577   : > { %v4499_v33 = vadd.f32 %v4498_v36, %v4277_v49  ;;  %v7854_v27 = vadd.f32 %v7703_v1, %v4507_v10  ;;  %v4748_v49 = vsel %vm435_vm0, %v4712_v59, 0.0  ;;  %v7891_v36 = vsub.f32 %v7731_v0, %v4650_v32 }
 0x578   : > { %v6063_v47 = vpop.f32.mrf.mxu1  ;;  %v4584_v45 = vpop.xlane.xlu1 %4583  ;;  %v4711_v10 = vmul.f32 %v7875_v25, %v7875_v25  ;;  %v4716_v51 = vmul.f32 %v7879_v12, %v7879_v12 }
 0x579   : > { %v7846_v41 = vadd.f32 %v7703_v1, %v4499_v33  ;;  %v4510_v60 = vadd.f32 %v6063_v47, %v6027_v5  ;;  %v4639_v13 = vsel %vm435_vm0, %v7854_v27, 0.0  ;;  %v4575_v42 = vpop.xlane.xlu0 %4574  ;;  %v7888_v5 = vsub.f32 %v7734_v37, %v4653_v48 }
 0x57a   : > { %v4501_v18 = vpop.f32.mrf.mxu1  ;;  %v4656_v33 = vmul.f32 0.03125, %v4581_v46  ;;  %v4745_v0 = vsel %vm435_vm0, %v4711_v10, 0.0  ;;  %v4714_v26 = vmul.f32 %v7891_v36, %v7891_v36  ;;  %v4760_v61 = vsel %vm435_vm0, %v4716_v51, 0.0 }
 0x57b   : > { %v4502_v34 = vadd.f32 %v4501_v18, %v4280_v63  ;;  %v4633_v9 = vsel %vm435_vm0, %v7846_v41, 0.0  ;;  %v7872_v62 = vadd.f32 %v7703_v1, %v4510_v60  ;;  %v7900_v63 = vsub.f32 %v7741_v58, %v4651_v15 }
 0x57c   : > { %4634 = vadd.xlane.f32.xlu0 %v4633_v9  ;;  %v4578_v21 = vpop.xlane.xlu1 %4577  ;;  %v4717_v18 = vmul.f32 %v7888_v5, %v7888_v5  ;;  %v7908_v60 = vsub.f32 %v7746_v40, %v4656_v33  ;;  %v4654_v9 = vmul.f32 0.03125, %v4575_v42  ;;  %v4754_v4 = vsel %vm435_vm0, %v4714_v26, 0.0 }
 0x57d   : > { %v7857_v11 = vadd.f32 %v7703_v1, %v4502_v34  ;;  %v4642_v6 = vsel %vm435_vm0, %v7872_v62, 0.0  ;;  %v4713_v1 = vmul.f32 %v7860_v31, %v7860_v31  ;;  %v4657_v34 = vmul.f32 0.03125, %v4584_v45 }
 0x57e   : > { %v4655_v58 = vmul.f32 0.03125, %v4578_v21  ;;  %v4763_v24 = vsel %vm435_vm0, %v4717_v18, 0.0  ;;  %v4715_v46 = vmul.f32 %v7900_v63, %v7900_v63  ;;  %v7919_v40 = vsub.f32 %v7751_v22, %v4654_v9 }
 0x57f   : > { %v4636_v20 = vsel %vm435_vm0, %v7857_v11, 0.0  ;;  %v4751_v47 = vsel %vm435_vm0, %v4713_v1, 0.0  ;;  %v4720_v32 = vmul.f32 %v7908_v60, %v7908_v60 }
 0x580   : > { %4637 = vadd.xlane.f32.xlu1 %v4636_v20  ;;  %4640 = vadd.xlane.f32.xlu0 %v4639_v13  ;;  %v7916_v20 = vsub.f32 %v7754_v35, %v4657_v34  ;;  %v4757_v1 = vsel %vm435_vm0, %v4715_v46, 0.0  ;;  %v4718_v10 = vmul.f32 %v7919_v40, %v7919_v40 }
 0x581   : > { %v4772_v42 = vsel %vm435_vm0, %v4720_v32, 0.0 }
 0x582   : > { %v4721_v15 = vmul.f32 %v7916_v20, %v7916_v20 }
 0x584   : > { %4643 = vadd.xlane.f32.xlu1 %v4642_v6  ;;  %4749 = vadd.xlane.f32.xlu0 %v4748_v49  ;;  %v4593_v37 = vpop.xlane.xlu0 %4592  ;;  %v7924_v49 = vsub.f32 %v7761_v44, %v4655_v58  ;;  %v4775_v21 = vsel %vm435_vm0, %v4721_v15, 0.0 }
 0x585   : > { %v4660_v13 = vmul.f32 0.03125, %v4593_v37  ;;  %v4766_v37 = vsel %vm435_vm0, %v4718_v10, 0.0 }
 0x587   : > { %v7928_v35 = vsub.f32 %v7766_v14, %v4660_v13 }
 0x588   : > { %4752 = vadd.xlane.f32.xlu1 %v4751_v47  ;;  %4743 = vadd.xlane.f32.xlu0 %v4742_v38  ;;  %v4596_v59 = vpop.xlane.xlu1 %4595  ;;  %v4587_v48 = vpop.xlane.xlu0 %4586  ;;  %v4719_v47 = vmul.f32 %v7924_v49, %v7924_v49 }
 0x589   : > { %v4661_v45 = vmul.f32 0.03125, %v4596_v59  ;;  %v4658_v6 = vmul.f32 0.03125, %v4587_v48 }
 0x58b   : > { %v7936_v44 = vsub.f32 %v7774_v56, %v4661_v45  ;;  %v7939_v33 = vsub.f32 %v7771_v23, %v4658_v6  ;;  %v4769_v23 = vsel %vm435_vm0, %v4719_v47, 0.0 }
 0x58c   : > { %4746 = vadd.xlane.f32.xlu1 %v4745_v0  ;;  %4761 = vadd.xlane.f32.xlu0 %v4760_v61  ;;  %v4590_v57 = vpop.xlane.xlu1 %4589  ;;  %v4724_v0 = vmul.f32 %v7928_v35, %v7928_v35 }
 0x58d   : > { %v4659_v14 = vmul.f32 0.03125, %v4590_v57  ;;  %v4725_v26 = vmul.f32 %v7936_v44, %v7936_v44  ;;  %v4722_v34 = vmul.f32 %v7939_v33, %v7939_v33 }
 0x58e   : > { %v4784_v58 = vsel %vm435_vm0, %v4724_v0, 0.0 }
 0x58f   : > { %v7948_v56 = vsub.f32 %v7781_v43, %v4659_v14  ;;  %v4787_v43 = vsel %vm435_vm0, %v4725_v26, 0.0 }
 0x590   : > { %4764 = vadd.xlane.f32.xlu1 %v4763_v24  ;;  %4755 = vadd.xlane.f32.xlu0 %v4754_v4  ;;  %v4778_v4 = vsel %vm435_vm0, %v4722_v34, 0.0 }
 0x591   : > { %v4723_v46 = vmul.f32 %v7948_v56, %v7948_v56 }
 0x593   : > { %v4781_v45 = vsel %vm435_vm0, %v4723_v46, 0.0 }
 0x594   : > { %v4605_v22 = vpop.xlane.xlu0 %4604  ;;  %4758 = vadd.xlane.f32.xlu1 %v4757_v1  ;;  %4773 = vadd.xlane.f32.xlu0 %v4772_v42 }
 0x595   : > { %v4664_v38 = vmul.f32 0.03125, %v4605_v22 }
 0x597   : > { %v7956_v9 = vsub.f32 %v7786_v19, %v4664_v38 }
 0x598   : > { %v4608_v51 = vpop.xlane.xlu1 %4607  ;;  %v4599_v18 = vpop.xlane.xlu0 %4598  ;;  %4776 = vadd.xlane.f32.xlu1 %v4775_v21  ;;  %4767 = vadd.xlane.f32.xlu0 %v4766_v37 }
 0x599   : > { %v4665_v61 = vmul.f32 0.03125, %v4608_v51  ;;  %v4662_v59 = vmul.f32 0.03125, %v4599_v18  ;;  %v4728_v32 = vmul.f32 %v7956_v9, %v7956_v9 }
 0x59b   : > { %v7964_v13 = vsub.f32 %v7794_v16, %v4665_v61  ;;  %v7967_v19 = vsub.f32 %v7791_v30, %v4662_v59  ;;  %v4796_v57 = vsel %vm435_vm0, %v4728_v32, 0.0 }
 0x59c   : > { %v4602_v24 = vpop.xlane.xlu1 %4601  ;;  %4770 = vadd.xlane.f32.xlu1 %v4769_v23  ;;  %4785 = vadd.xlane.f32.xlu0 %v4784_v58 }
 0x59d   : > { %v4663_v48 = vmul.f32 0.03125, %v4602_v24  ;;  %v4729_v16 = vmul.f32 %v7964_v13, %v7964_v13  ;;  %v4726_v30 = vmul.f32 %v7967_v19, %v7967_v19 }
 0x59f   : > { %v7973_v6 = vsub.f32 %v7801_v17, %v4663_v48  ;;  %v4799_v17 = vsel %vm435_vm0, %v4729_v16, 0.0  ;;  %v4790_v14 = vsel %vm435_vm0, %v4726_v30, 0.0 }
 0x5a0   : > { %4788 = vadd.xlane.f32.xlu1 %v4787_v43  ;;  %4779 = vadd.xlane.f32.xlu0 %v4778_v4 }
 0x5a1   : > { %v4727_v47 = vmul.f32 %v7973_v6, %v7973_v6 }
 0x5a3   : > { %v4793_v18 = vsel %vm435_vm0, %v4727_v47, 0.0 }
 0x5a4   : > { %v4617_v1 = vpop.xlane.xlu0 %4616  ;;  %4782 = vadd.xlane.f32.xlu1 %v4781_v45  ;;  %4797 = vadd.xlane.f32.xlu0 %v4796_v57 }
 0x5a5   : > { %v4668_v22 = vmul.f32 0.03125, %v4617_v1 }
 0x5a7   : > { %v7981_v42 = vsub.f32 %v7806_v29, %v4668_v22 }
 0x5a8   : > { %v4620_v15 = vpop.xlane.xlu1 %4619  ;;  %v4611_v10 = vpop.xlane.xlu0 %4610  ;;  %4800 = vadd.xlane.f32.xlu1 %v4799_v17  ;;  %4791 = vadd.xlane.f32.xlu0 %v4790_v14 }
 0x5a9   : > { %v4669_v38 = vmul.f32 0.03125, %v4620_v15  ;;  %v4666_v51 = vmul.f32 0.03125, %v4611_v10  ;;  %v4732_v21 = vmul.f32 %v7981_v42, %v7981_v42 }
 0x5ab   : > { %v7990_v37 = vsub.f32 %v7814_v52, %v4669_v38  ;;  %v7993_v29 = vsub.f32 %v7811_v7, %v4666_v51  ;;  %v4808_v23 = vsel %vm435_vm0, %v4732_v21, 0.0 }
 0x5ac   : > { %v4614_v0 = vpop.xlane.xlu1 %4613  ;;  %4794 = vadd.xlane.f32.xlu1 %v4793_v18  ;;  %4809 = vadd.xlane.f32.xlu0 %v4808_v23 }
 0x5ad   : > { %v4667_v26 = vmul.f32 0.03125, %v4614_v0  ;;  %v4733_v34 = vmul.f32 %v7990_v37, %v7990_v37  ;;  %v4730_v61 = vmul.f32 %v7993_v29, %v7993_v29 }
 0x5af   : > { %v8002_v52 = vsub.f32 %v7821_v55, %v4667_v26  ;;  %v4811_v7 = vsel %vm435_vm0, %v4733_v34, 0.0  ;;  %v4802_v59 = vsel %vm435_vm0, %v4730_v61, 0.0 }
 0x5b0   : > { %4812 = vadd.xlane.f32.xlu1 %v4811_v7  ;;  %4803 = vadd.xlane.f32.xlu0 %v4802_v59 }
 0x5b1   : > { %v4731_v58 = vmul.f32 %v8002_v52, %v8002_v52 }
 0x5b3   : > { %v4805_v24 = vsel %vm435_vm0, %v4731_v58, 0.0 }
 0x5b4   : > { %4806 = vadd.xlane.f32.xlu1 %v4805_v24 }
 0x5e3   : > { %v4629_v43 = vpop.xlane.xlu0 %4628 }
 0x5e4   : > { %v4672_v4 = vmul.f32 0.03125, %v4629_v43 }
 0x5e6   : > { %v8010_v46 = vsub.f32 %v7826_v28, %v4672_v4 }
 0x5e7   : > { %v4632_v48 = vpop.xlane.xlu1 %4631  ;;  %v4623_v55 = vpop.xlane.xlu0 %4622 }
 0x5e8   : > { %v4673_v32 = vmul.f32 0.03125, %v4632_v48  ;;  %v4670_v45 = vmul.f32 0.03125, %v4623_v55  ;;  %v4736_v1 = vmul.f32 %v8010_v46, %v8010_v46 }
 0x5ea   : > { %v8015_v57 = vsub.f32 %v7834_v39, %v4673_v32  ;;  %v8018_v16 = vsub.f32 %v7831_v3, %v4670_v45  ;;  %v4820_v30 = vsel %vm435_vm0, %v4736_v1, 0.0 }
 0x5eb   : > { %v4626_v22 = vpop.xlane.xlu1 %4625  ;;  %4821 = vadd.xlane.f32.xlu0 %v4820_v30 }
 0x5ec   : > { %v4671_v15 = vmul.f32 0.03125, %v4626_v22  ;;  %v4737_v28 = vmul.f32 %v8015_v57, %v8015_v57  ;;  %v4734_v10 = vmul.f32 %v8018_v16, %v8018_v16 }
 0x5ee   : > { %v8026_v17 = vsub.f32 %v7841_v2, %v4671_v15  ;;  %v4823_v39 = vsel %vm435_vm0, %v4737_v28, 0.0  ;;  %v4814_v14 = vsel %vm435_vm0, %v4734_v10, 0.0 }
 0x5ef   : > { %4824 = vadd.xlane.f32.xlu1 %v4823_v39  ;;  %4815 = vadd.xlane.f32.xlu0 %v4814_v14 }
 0x5f0   : > { %v4735_v3 = vmul.f32 %v8026_v17, %v8026_v17 }
 0x5f2   : > { %v4817_v47 = vsel %vm435_vm0, %v4735_v3, 0.0 }
 0x5f3   : > { %4818 = vadd.xlane.f32.xlu1 %v4817_v47 }
 0x605   : > { %v4635_v38 = vpop.xlane.xlu0 %4634 }
 0x606   : > { %v4674_v51 = vmul.f32 0.03125, %v4635_v38 }
 0x608   : > { %v8034_v21 = vsub.f32 %v7846_v41, %v4674_v51 }
 0x609   : > { %v4638_v0 = vpop.xlane.xlu1 %4637  ;;  %v4641_v2 = vpop.xlane.xlu0 %4640 }
 0x60a   : > { %v4675_v18 = vmul.f32 0.03125, %v4638_v0  ;;  %v4676_v23 = vmul.f32 0.03125, %v4641_v2  ;;  %v4738_v26 = vmul.f32 %v8034_v21, %v8034_v21  ;;  %v4968_v2 = vsub.s32 2, %v6871_v54 }
 0x60c   : > { %v8039_v34 = vsub.f32 %v7857_v11, %v4675_v18  ;;  %v8042_v61 = vsub.f32 %v7854_v27, %v4676_v23  ;;  %v4826_v7 = vsel %vm435_vm0, %v4738_v26, 0.0  ;;  %v5004_v26 = vsub.s32 3, %v6871_v54 }
 0x60d   : > { %v4644_v59 = vpop.xlane.xlu1 %4643  ;;  %4827 = vadd.xlane.f32.xlu0 %v4826_v7  ;;  %v4750_v58 = vpop.xlane.xlu0 %4749 }
 0x60e   : > { %v4677_v41 = vmul.f32 0.03125, %v4644_v59  ;;  %v4840_v24 = vmul.f32 0.03125, %v4750_v58  ;;  %v4739_v43 = vmul.f32 %v8039_v34, %v8039_v34  ;;  %v4740_v4 = vmul.f32 %v8042_v61, %v8042_v61 }
 0x610   : > { %v8050_v48 = vsub.f32 %v7872_v62, %v4677_v41  ;;  %v4872_v11 = vadd.f32 1e-05, %v4840_v24  ;;  %v4829_v27 = vsel %vm435_vm0, %v4739_v43, 0.0  ;;  %v4832_v55 = vsel %vm435_vm0, %v4740_v4, 0.0 }
 0x611   : > { %4830 = vadd.xlane.f32.xlu1 %v4829_v27  ;;  %v4753_v32 = vpop.xlane.xlu1 %4752  ;;  %4833 = vadd.xlane.f32.xlu0 %v4832_v55  ;;  %v4744_v45 = vpop.xlane.xlu0 %4743  ;;  %v8060_v24 = vrot.slane %v7700_v50, %v4968_v2  ;;  %v8063_v27 = vrot.slane %v7700_v50, %v5004_v26 }
 0x612   : > { %6287 = vrsqrt.f32 %v4872_v11  ;;  %v4841_v1 = vmul.f32 0.03125, %v4753_v32  ;;  %v4838_v30 = vmul.f32 0.03125, %v4744_v45  ;;  %v4741_v22 = vmul.f32 %v8050_v48, %v8050_v48 }
 0x614   : > { %v4873_v15 = vadd.f32 1e-05, %v4841_v1  ;;  %v4870_v28 = vadd.f32 1e-05, %v4838_v30  ;;  %v4835_v62 = vsel %vm435_vm0, %v4741_v22, 0.0 }
 0x615   : > { %4836 = vadd.xlane.f32.xlu1 %v4835_v62  ;;  %v4747_v10 = vpop.xlane.xlu1 %4746  ;;  %v4762_v39 = vpop.xlane.xlu0 %4761 }
 0x616   : > { %6289 = vrsqrt.f32 %v4873_v15  ;;  %v4839_v14 = vmul.f32 0.03125, %v4747_v10  ;;  %v4844_v3 = vmul.f32 0.03125, %v4762_v39 }
 0x617   : > { %6291 = vrsqrt.f32 %v4870_v28 }
 0x618   : > { %v4871_v47 = vadd.f32 1e-05, %v4839_v14  ;;  %v4876_v38 = vadd.f32 1e-05, %v4844_v3 }
 0x619   : > { %v4765_v51 = vpop.xlane.xlu1 %4764  ;;  %v4756_v0 = vpop.xlane.xlu0 %4755 }
 0x61a   : > { %6293 = vrsqrt.f32 %v4871_v47  ;;  %v4845_v18 = vmul.f32 0.03125, %v4765_v51  ;;  %v4842_v23 = vmul.f32 0.03125, %v4756_v0 }
 0x61b   : > { %6295 = vrsqrt.f32 %v4876_v38 }
 0x61c   : > { %v4877_v7 = vadd.f32 1e-05, %v4845_v18  ;;  %v4874_v59 = vadd.f32 1e-05, %v4842_v23 }
 0x61d   : > { %v4759_v58 = vpop.xlane.xlu1 %4758  ;;  %v4774_v41 = vpop.xlane.xlu0 %4773 }
 0x61e   : > { %6297 = vrsqrt.f32 %v4877_v7  ;;  %v4843_v43 = vmul.f32 0.03125, %v4759_v58  ;;  %v4848_v4 = vmul.f32 0.03125, %v4774_v41 }
 0x61f   : > { %v6288_v11 = vpop.eup %6287  ;;  %6299 = vrsqrt.f32 %v4874_v59 }
 0x620   : > { %v4936_v55 = vmul.f32 %v6288_v11, %v7849_v53  ;;  %v4875_v32 = vadd.f32 1e-05, %v4843_v43  ;;  %v4880_v54 = vadd.f32 1e-05, %v4848_v4 }
 0x621   : > { %v4777_v45 = vpop.xlane.xlu1 %4776  ;;  %v4768_v1 = vpop.xlane.xlu0 %4767 }
 0x622   : > { %v4972_v30 = vmul.f32 %v8060_v24, %v4936_v55  ;;  %6301 = vrsqrt.f32 %v4875_v32  ;;  %v4849_v22 = vmul.f32 0.03125, %v4777_v45  ;;  %v4846_v15 = vmul.f32 0.03125, %v4768_v1 }
 0x623   : > { %v6290_v28 = vpop.eup %6289  ;;  %6303 = vrsqrt.f32 %v4880_v54 }
 0x624   : > { %v6292_v62 = vpop.eup %6291  ;;  %v5008_v10 = vadd.f32 %v8063_v27, %v4972_v30  ;;  %v4937_v50 = vmul.f32 %v6290_v28, %v7860_v31  ;;  %v4881_v39 = vadd.f32 1e-05, %v4849_v22  ;;  %v4878_v14 = vadd.f32 1e-05, %v4846_v15 }
 0x625   : > { %v4934_v53 = vmul.f32 %v6292_v62, %v7863_v8  ;;  %v4771_v3 = vpop.xlane.xlu1 %4770  ;;  %v4786_v47 = vpop.xlane.xlu0 %4785 }
 0x626   : > { %v5040_v38 = vmax.f32 %v5008_v10, 0.0  ;;  %v4973_v51 = vmul.f32 %v8060_v24, %v4937_v50  ;;  %6305 = vrsqrt.f32 %v4881_v39  ;;  %v4847_v0 = vmul.f32 0.03125, %v4771_v3 }
 0x627   : > { %v6294_v2 = vpop.eup %6293  ;;  %v4970_v18 = vmul.f32 %v8060_v24, %v4934_v53  ;;  %6307 = vrsqrt.f32 %v4878_v14  ;;  %v4852_v23 = vmul.f32 0.03125, %v4786_v47 }
 0x628   : > { %v6296_v26 = vpop.eup %6295  ;;  %5072 = vst.msk [vmem:[%s8073_s22 + $0x10] sm:$0xff] %vm435_vm0, %v5040_v38  ;;  %v5009_v31 = vadd.f32 %v8063_v27, %v4973_v51  ;;  %v4935_v8 = vmul.f32 %v6294_v2, %v7875_v25  ;;  %v4879_v7 = vadd.f32 1e-05, %v4847_v0 }
 0x629   : > { %v5006_v59 = vadd.f32 %v8063_v27, %v4970_v18  ;;  %v4940_v58 = vmul.f32 %v6296_v26, %v7879_v12  ;;  %v4884_v41 = vadd.f32 1e-05, %v4852_v23  ;;  %v4789_v43 = vpop.xlane.xlu1 %4788  ;;  %v4780_v4 = vpop.xlane.xlu0 %4779 }
 0x62a   : > { %v5041_v11 = vmax.f32 %v5009_v31, 0.0  ;;  %v4971_v55 = vmul.f32 %v8060_v24, %v4935_v8  ;;  %6309 = vrsqrt.f32 %v4879_v7  ;;  %v4853_v32 = vmul.f32 0.03125, %v4789_v43 }
 0x62b   : > { %v6298_v54 = vpop.eup %6297  ;;  %v5038_v45 = vmax.f32 %v5006_v59, 0.0  ;;  %v4976_v1 = vmul.f32 %v8060_v24, %v4940_v58  ;;  %6311 = vrsqrt.f32 %v4884_v41  ;;  %v4850_v25 = vmul.f32 0.03125, %v4780_v4 }
 0x62c   : > { %v6300_v30 = vpop.eup %6299  ;;  %5073 = vst.msk [vmem:[%s8073_s22 + $0x18] sm:$0xff] %vm435_vm0, %v5041_v11  ;;  %v5007_v12 = vadd.f32 %v8063_v27, %v4971_v55  ;;  %v4941_v22 = vmul.f32 %v6298_v54, %v7888_v5  ;;  %v4885_v15 = vadd.f32 1e-05, %v4853_v32 }
 0x62d   : > { %5070 = vst.msk [vmem:[%s8073_s22] sm:$0xff] %vm435_vm0, %v5038_v45  ;;  %v5012_v28 = vadd.f32 %v8063_v27, %v4976_v1  ;;  %v4938_v62 = vmul.f32 %v6300_v30, %v7891_v36  ;;  %v4882_v10 = vadd.f32 1e-05, %v4850_v25  ;;  %v4783_v50 = vpop.xlane.xlu1 %4782  ;;  %v4798_v39 = vpop.xlane.xlu0 %4797 }
 0x62e   : > { %v5039_v14 = vmax.f32 %v5007_v12, 0.0  ;;  %v4977_v53 = vmul.f32 %v8060_v24, %v4941_v22  ;;  %6313 = vrsqrt.f32 %v4885_v15  ;;  %v4851_v3 = vmul.f32 0.03125, %v4783_v50 }
 0x62f   : > { %v6302_v47 = vpop.eup %6301  ;;  %v5044_v38 = vmax.f32 %v5012_v28, 0.0  ;;  %v4974_v5 = vmul.f32 %v8060_v24, %v4938_v62  ;;  %6315 = vrsqrt.f32 %v4882_v10  ;;  %v4856_v51 = vmul.f32 0.03125, %v4798_v39 }
 0x630   : > { %v6304_v0 = vpop.eup %6303  ;;  %5071 = vst.msk [vmem:[%s8073_s22 + $0x8] sm:$0xff] %vm435_vm0, %v5039_v14  ;;  %v5013_v36 = vadd.f32 %v8063_v27, %v4977_v53  ;;  %v4939_v2 = vmul.f32 %v6302_v47, %v7900_v63  ;;  %v4883_v18 = vadd.f32 1e-05, %v4851_v3 }
 0x631   : > { %5076 = vst.msk [vmem:[%s8073_s22 + $0x30] sm:$0xff] %vm435_vm0, %v5044_v38  ;;  %v5010_v23 = vadd.f32 %v8063_v27, %v4974_v5  ;;  %v4944_v26 = vmul.f32 %v6304_v0, %v7908_v60  ;;  %v4888_v31 = vadd.f32 1e-05, %v4856_v51  ;;  %v4801_v8 = vpop.xlane.xlu1 %4800  ;;  %v4792_v7 = vpop.xlane.xlu0 %4791 }
 0x632   : > { %v5045_v59 = vmax.f32 %v5013_v36, 0.0  ;;  %v4975_v58 = vmul.f32 %v8060_v24, %v4939_v2  ;;  %6317 = vrsqrt.f32 %v4883_v18  ;;  %v4857_v41 = vmul.f32 0.03125, %v4801_v8 }
 0x633   : > { %v6306_v43 = vpop.eup %6305  ;;  %v5042_v4 = vmax.f32 %v5010_v23, 0.0  ;;  %v4980_v63 = vmul.f32 %v8060_v24, %v4944_v26  ;;  %6319 = vrsqrt.f32 %v4888_v31  ;;  %v4854_v11 = vmul.f32 0.03125, %v4792_v7 }
 0x634   : > { %v6308_v55 = vpop.eup %6307  ;;  %5077 = vst.msk [vmem:[%s8073_s22 + $0x38] sm:$0xff] %vm435_vm0, %v5045_v59  ;;  %v5011_v60 = vadd.f32 %v8063_v27, %v4975_v58  ;;  %v4945_v32 = vmul.f32 %v6306_v43, %v7916_v20  ;;  %v4889_v54 = vadd.f32 1e-05, %v4857_v41 }
 0x635   : > { %5074 = vst.msk [vmem:[%s8073_s22 + $0x20] sm:$0xff] %vm435_vm0, %v5042_v4  ;;  %v5016_v45 = vadd.f32 %v8063_v27, %v4980_v63  ;;  %v4942_v1 = vmul.f32 %v6308_v55, %v7919_v40  ;;  %v4886_v25 = vadd.f32 1e-05, %v4854_v11  ;;  %v4795_v30 = vpop.xlane.xlu1 %4794  ;;  %v4810_v12 = vpop.xlane.xlu0 %4809 }
 0x636   : > { %v5043_v22 = vmax.f32 %v5011_v60, 0.0  ;;  %v4981_v15 = vmul.f32 %v8060_v24, %v4945_v32  ;;  %6321 = vrsqrt.f32 %v4889_v54  ;;  %v4855_v28 = vmul.f32 0.03125, %v4795_v30 }
 0x637   : > { %v6310_v62 = vpop.eup %6309  ;;  %v5048_v10 = vmax.f32 %v5016_v45, 0.0  ;;  %v4978_v20 = vmul.f32 %v8060_v24, %v4942_v1  ;;  %6323 = vrsqrt.f32 %v4886_v25  ;;  %v4860_v50 = vmul.f32 0.03125, %v4810_v12 }
 0x638   : > { %v6312_v39 = vpop.eup %6311  ;;  %5075 = vst.msk [vmem:[%s8073_s22 + $0x28] sm:$0xff] %vm435_vm0, %v5043_v22  ;;  %v5017_v40 = vadd.f32 %v8063_v27, %v4981_v15  ;;  %v4943_v14 = vmul.f32 %v6310_v62, %v7924_v49  ;;  %v4887_v53 = vadd.f32 1e-05, %v4855_v28 }
 0x639   : > { %5080 = vst.msk [vmem:[%s8073_s22 + $0x50] sm:$0xff] %vm435_vm0, %v5048_v10  ;;  %v5014_v3 = vadd.f32 %v8063_v27, %v4978_v20  ;;  %v4948_v47 = vmul.f32 %v6312_v39, %v7928_v35  ;;  %v4892_v38 = vadd.f32 1e-05, %v4860_v50  ;;  %v4813_v5 = vpop.xlane.xlu1 %4812  ;;  %v4804_v51 = vpop.xlane.xlu0 %4803 }
 0x63a   : > { %v5049_v0 = vmax.f32 %v5017_v40, 0.0  ;;  %v4979_v36 = vmul.f32 %v8060_v24, %v4943_v14  ;;  %6325 = vrsqrt.f32 %v4887_v53  ;;  %v4861_v2 = vmul.f32 0.03125, %v4813_v5 }
 0x63b   : > { %v6314_v18 = vpop.eup %6313  ;;  %v5046_v23 = vmax.f32 %v5014_v3, 0.0  ;;  %v4984_v49 = vmul.f32 %v8060_v24, %v4948_v47  ;;  %6327 = vrsqrt.f32 %v4892_v38  ;;  %v4858_v26 = vmul.f32 0.03125, %v4804_v51 }
 0x63c   : > { %v6316_v31 = vpop.eup %6315  ;;  %5081 = vst.msk [vmem:[%s8073_s22 + $0x58] sm:$0xff] %vm435_vm0, %v5049_v0  ;;  %v5015_v35 = vadd.f32 %v8063_v27, %v4979_v36  ;;  %v4949_v8 = vmul.f32 %v6314_v18, %v7936_v44  ;;  %v4893_v7 = vadd.f32 1e-05, %v4861_v2 }
 0x63d   : > { %5078 = vst.msk [vmem:[%s8073_s22 + $0x40] sm:$0xff] %vm435_vm0, %v5046_v23  ;;  %v5020_v59 = vadd.f32 %v8063_v27, %v4984_v49  ;;  %v4946_v58 = vmul.f32 %v6316_v31, %v7939_v33  ;;  %v4890_v41 = vadd.f32 1e-05, %v4858_v26  ;;  %v4807_v43 = vpop.xlane.xlu1 %4806 }
 0x63e   : > { %v5047_v4 = vmax.f32 %v5015_v35, 0.0  ;;  %v4985_v63 = vmul.f32 %v8060_v24, %v4949_v8  ;;  %6329 = vrsqrt.f32 %v4893_v7  ;;  %v4859_v11 = vmul.f32 0.03125, %v4807_v43 }
 0x63f   : > { %v6318_v55 = vpop.eup %6317  ;;  %v5052_v60 = vmax.f32 %v5020_v59, 0.0  ;;  %v4982_v44 = vmul.f32 %v8060_v24, %v4946_v58  ;;  %6331 = vrsqrt.f32 %v4890_v41 }
 0x640   : > { %v6320_v32 = vpop.eup %6319  ;;  %5079 = vst.msk [vmem:[%s8073_s22 + $0x48] sm:$0xff] %vm435_vm0, %v5047_v4  ;;  %v5021_v54 = vadd.f32 %v8063_v27, %v4985_v63  ;;  %v4947_v33 = vmul.f32 %v6318_v55, %v7948_v56  ;;  %v4891_v45 = vadd.f32 1e-05, %v4859_v11 }
 0x641   : > { %5084 = vst.msk [vmem:[%s8073_s22 + $0x70] sm:$0xff] %vm435_vm0, %v5052_v60  ;;  %v5018_v1 = vadd.f32 %v8063_v27, %v4982_v44  ;;  %v4952_v25 = vmul.f32 %v6320_v32, %v7956_v9 }
 0x642   : > { %v5053_v30 = vmax.f32 %v5021_v54, 0.0  ;;  %v4983_v12 = vmul.f32 %v8060_v24, %v4947_v33  ;;  %6333 = vrsqrt.f32 %v4891_v45 }
 0x643   : > { %v6322_v22 = vpop.eup %6321  ;;  %v5050_v15 = vmax.f32 %v5018_v1, 0.0  ;;  %v4988_v28 = vmul.f32 %v8060_v24, %v4952_v25 }
 0x644   : > { %v6324_v62 = vpop.eup %6323  ;;  %5085 = vst.msk [vmem:[%s8073_s22 + $0x78] sm:$0xff] %vm435_vm0, %v5053_v30  ;;  %v5019_v56 = vadd.f32 %v8063_v27, %v4983_v12  ;;  %v4953_v10 = vmul.f32 %v6322_v22, %v7964_v13 }
 0x645   : > { %5082 = vst.msk [vmem:[%s8073_s22 + $0x60] sm:$0xff] %vm435_vm0, %v5050_v15  ;;  %v5024_v9 = vadd.f32 %v8063_v27, %v4988_v28  ;;  %v4950_v20 = vmul.f32 %v6324_v62, %v7967_v19 }
 0x646   : > { %v5051_v50 = vmax.f32 %v5019_v56, 0.0  ;;  %v4989_v39 = vmul.f32 %v8060_v24, %v4953_v10 }
 0x647   : > { %v6326_v40 = vpop.eup %6325  ;;  %v5056_v14 = vmax.f32 %v5024_v9, 0.0  ;;  %v4986_v53 = vmul.f32 %v8060_v24, %v4950_v20 }
 0x648   : > { %v6328_v3 = vpop.eup %6327  ;;  %5083 = vst.msk [vmem:[%s8073_s22 + $0x68] sm:$0xff] %vm435_vm0, %v5051_v50  ;;  %v5025_v13 = vadd.f32 %v8063_v27, %v4989_v39  ;;  %v4951_v47 = vmul.f32 %v6326_v40, %v7973_v6 }
 0x649   : > { %5088 = vst.msk [vmem:[%s8073_s22 + $0x90] sm:$0xff] %vm435_vm0, %v5056_v14  ;;  %v5022_v19 = vadd.f32 %v8063_v27, %v4986_v53  ;;  %v4956_v38 = vmul.f32 %v6328_v3, %v7981_v42 }
 0x64a   : > { %v5057_v5 = vmax.f32 %v5025_v13, 0.0  ;;  %v4987_v51 = vmul.f32 %v8060_v24, %v4951_v47 }
 0x64b   : > { %v6330_v0 = vpop.eup %6329  ;;  %v5054_v36 = vmax.f32 %v5022_v19, 0.0  ;;  %v4992_v2 = vmul.f32 %v8060_v24, %v4956_v38 }
 0x64c   : > { %v6332_v18 = vpop.eup %6331  ;;  %5089 = vst.msk [vmem:[%s8073_s22 + $0x98] sm:$0xff] %vm435_vm0, %v5057_v5  ;;  %v5023_v6 = vadd.f32 %v8063_v27, %v4987_v51  ;;  %v4957_v23 = vmul.f32 %v6330_v0, %v7990_v37 }
 0x64d   : > { %5086 = vst.msk [vmem:[%s8073_s22 + $0x80] sm:$0xff] %vm435_vm0, %v5054_v36  ;;  %v5028_v42 = vadd.f32 %v8063_v27, %v4992_v2  ;;  %v4954_v49 = vmul.f32 %v6332_v18, %v7993_v29 }
 0x64e   : > { %v5055_v26 = vmax.f32 %v5023_v6, 0.0  ;;  %v4993_v31 = vmul.f32 %v8060_v24, %v4957_v23 }
 0x64f   : > { %v6334_v35 = vpop.eup %6333  ;;  %v5060_v8 = vmax.f32 %v5028_v42, 0.0  ;;  %v4990_v7 = vmul.f32 %v8060_v24, %v4954_v49 }
 0x650   : > { %5087 = vst.msk [vmem:[%s8073_s22 + $0x88] sm:$0xff] %vm435_vm0, %v5055_v26  ;;  %v5029_v37 = vadd.f32 %v8063_v27, %v4993_v31  ;;  %v4955_v59 = vmul.f32 %v6334_v35, %v8002_v52 }
 0x651   : > { %5092 = vst.msk [vmem:[%s8073_s22 + $0xb0] sm:$0xff] %vm435_vm0, %v5060_v8  ;;  %v5026_v58 = vadd.f32 %v8063_v27, %v4990_v7 }
 0x652   : > { %v5061_v29 = vmax.f32 %v5029_v37, 0.0  ;;  %v4991_v41 = vmul.f32 %v8060_v24, %v4955_v59 }
 0x653   : > { %v5058_v43 = vmax.f32 %v5026_v58, 0.0 }
 0x654   : > { %5093 = vst.msk [vmem:[%s8073_s22 + $0xb8] sm:$0xff] %vm435_vm0, %v5061_v29  ;;  %v5027_v4 = vadd.f32 %v8063_v27, %v4991_v41 }
 0x655   : > { %5090 = vst.msk [vmem:[%s8073_s22 + $0xa0] sm:$0xff] %vm435_vm0, %v5058_v43 }
 0x656   : > { %v5059_v63 = vmax.f32 %v5027_v4, 0.0 }
 0x658   : > { %5091 = vst.msk [vmem:[%s8073_s22 + $0xa8] sm:$0xff] %vm435_vm0, %v5059_v63 }
 0x674   : > { %v4822_v11 = vpop.xlane.xlu0 %4821 }
 0x675   : > { %v4864_v55 = vmul.f32 0.03125, %v4822_v11 }
 0x677   : > { %v4896_v52 = vadd.f32 1e-05, %v4864_v55 }
 0x678   : > { %v4825_v60 = vpop.xlane.xlu1 %4824  ;;  %v4816_v44 = vpop.xlane.xlu0 %4815 }
 0x679   : > { %6335 = vrsqrt.f32 %v4896_v52  ;;  %v4865_v32 = vmul.f32 0.03125, %v4825_v60  ;;  %v4862_v54 = vmul.f32 0.03125, %v4816_v44 }
 0x67b   : > { %v4897_v33 = vadd.f32 1e-05, %v4865_v32  ;;  %v4894_v45 = vadd.f32 1e-05, %v4862_v54 }
 0x67c   : > { %v4819_v1 = vpop.xlane.xlu1 %4818 }
 0x67d   : > { %6337 = vrsqrt.f32 %v4897_v33  ;;  %v4863_v25 = vmul.f32 0.03125, %v4819_v1 }
 0x67e   : > { %6339 = vrsqrt.f32 %v4894_v45 }
 0x67f   : > { %v4895_v30 = vadd.f32 1e-05, %v4863_v25 }
 0x681   : > { %6341 = vrsqrt.f32 %v4895_v30 }
 0x686   : > { %v6336_v12 = vpop.eup %6335 }
 0x687   : > { %v4960_v22 = vmul.f32 %v6336_v12, %v8010_v46 }
 0x689   : > { %v4996_v15 = vmul.f32 %v8060_v24, %v4960_v22 }
 0x68a   : > { %v6338_v28 = vpop.eup %6337 }
 0x68b   : > { %v6340_v62 = vpop.eup %6339  ;;  %v5032_v56 = vadd.f32 %v8063_v27, %v4996_v15  ;;  %v4961_v10 = vmul.f32 %v6338_v28, %v8015_v57 }
 0x68c   : > { %v4958_v9 = vmul.f32 %v6340_v62, %v8018_v16 }
 0x68d   : > { %v5064_v20 = vmax.f32 %v5032_v56, 0.0  ;;  %v4997_v50 = vmul.f32 %v8060_v24, %v4961_v10 }
 0x68e   : > { %v6342_v39 = vpop.eup %6341  ;;  %v4994_v40 = vmul.f32 %v8060_v24, %v4958_v9 }
 0x68f   : > { %5096 = vst.msk [vmem:[%s8073_s22 + $0xd0] sm:$0xff] %vm435_vm0, %v5064_v20  ;;  %v5033_v46 = vadd.f32 %v8063_v27, %v4997_v50  ;;  %v4959_v14 = vmul.f32 %v6342_v39, %v8026_v17 }
 0x690   : > { %v5030_v53 = vadd.f32 %v8063_v27, %v4994_v40 }
 0x691   : > { %v5065_v3 = vmax.f32 %v5033_v46, 0.0  ;;  %v4995_v57 = vmul.f32 %v8060_v24, %v4959_v14 }
 0x692   : > { %v5062_v13 = vmax.f32 %v5030_v53, 0.0 }
 0x693   : > { %5097 = vst.msk [vmem:[%s8073_s22 + $0xd8] sm:$0xff] %vm435_vm0, %v5065_v3  ;;  %v5031_v16 = vadd.f32 %v8063_v27, %v4995_v57 }
 0x694   : > { %5094 = vst.msk [vmem:[%s8073_s22 + $0xc0] sm:$0xff] %vm435_vm0, %v5062_v13 }
 0x695   : > { %v5063_v47 = vmax.f32 %v5031_v16, 0.0 }
 0x696   : > { %v4828_v19 = vpop.xlane.xlu0 %4827 }
 0x697   : > { %5095 = vst.msk [vmem:[%s8073_s22 + $0xc8] sm:$0xff] %vm435_vm0, %v5063_v47  ;;  %v4866_v38 = vmul.f32 0.03125, %v4828_v19 }
 0x699   : > { %v4898_v5 = vadd.f32 1e-05, %v4866_v38 }
 0x69a   : > { %v4831_v51 = vpop.xlane.xlu1 %4830  ;;  %v4834_v17 = vpop.xlane.xlu0 %4833 }
 0x69b   : > { %6343 = vrsqrt.f32 %v4898_v5  ;;  %v4867_v0 = vmul.f32 0.03125, %v4831_v51  ;;  %v4868_v36 = vmul.f32 0.03125, %v4834_v17 }
 0x69d   : > { %v4899_v2 = vadd.f32 1e-05, %v4867_v0  ;;  %v4900_v18 = vadd.f32 1e-05, %v4868_v36 }
 0x69e   : > { %v4837_v6 = vpop.xlane.xlu1 %4836 }
 0x69f   : > { %6345 = vrsqrt.f32 %v4899_v2  ;;  %v4869_v23 = vmul.f32 0.03125, %v4837_v6 }
 0x6a0   : > { %6347 = vrsqrt.f32 %v4900_v18 }
 0x6a1   : > { %v4901_v42 = vadd.f32 1e-05, %v4869_v23 }
 0x6a3   : > { %6349 = vrsqrt.f32 %v4901_v42 }
 0x6a8   : > { %v6344_v49 = vpop.eup %6343 }
 0x6a9   : > { %v4962_v26 = vmul.f32 %v6344_v49, %v8034_v21 }
 0x6ab   : > { %v4998_v31 = vmul.f32 %v8060_v24, %v4962_v26 }
 0x6ac   : > { %v6346_v35 = vpop.eup %6345 }
 0x6ad   : > { %v6348_v8 = vpop.eup %6347  ;;  %v5034_v7 = vadd.f32 %v8063_v27, %v4998_v31  ;;  %v4963_v37 = vmul.f32 %v6346_v35, %v8039_v34 }
 0x6ae   : > { %v4964_v59 = vmul.f32 %v6348_v8, %v8042_v61 }
 0x6af   : > { %v5066_v58 = vmax.f32 %v5034_v7, 0.0  ;;  %v4999_v29 = vmul.f32 %v8060_v24, %v4963_v37 }
 0x6b0   : > { %v6350_v41 = vpop.eup %6349  ;;  %v5000_v21 = vmul.f32 %v8060_v24, %v4964_v59 }
 0x6b1   : > { %5098 = vst.msk [vmem:[%s8073_s22 + $0xe0] sm:$0xff] %vm435_vm0, %v5066_v58  ;;  %v5035_v43 = vadd.f32 %v8063_v27, %v4999_v29  ;;  %v4965_v4 = vmul.f32 %v6350_v41, %v8050_v48 }
 0x6b2   : > { %v5036_v63 = vadd.f32 %v8063_v27, %v5000_v21 }
 0x6b3   : > { %v5067_v34 = vmax.f32 %v5035_v43, 0.0  ;;  %v5001_v61 = vmul.f32 %v8060_v24, %v4965_v4 }
 0x6b4   : > { %v5068_v11 = vmax.f32 %v5036_v63, 0.0 }
 0x6b5   : > { %5099 = vst.msk [vmem:[%s8073_s22 + $0xe8] sm:$0xff] %vm435_vm0, %v5067_v34  ;;  %v5037_v55 = vadd.f32 %v8063_v27, %v5001_v61 }
 0x6b6   : > { %5100 = vst.msk [vmem:[%s8073_s22 + $0xf0] sm:$0xff] %vm435_vm0, %v5068_v11 }
 0x6b7   : > { %v5069_v48 = vmax.f32 %v5037_v55, 0.0 }
 0x6b9   : > { %5101 = vst.msk [vmem:[%s8073_s22 + $0xf8] sm:$0xff] %vm435_vm0, %v5069_v48 }
 0x6ba   : > { %6453 = shalt.err (!%p6450_p4)
}
 0x6bb   : > { %s6454_s14 = scalar_lea.hbm %s8231_s25, 4096  ;;  %s6458_s11 = scalar_lea.hbm %s8282_s4, 8192 }
 0x6bc   : > { %p6455_p9 = scmp.ne.s32.totalorder %s8231_s25, %s6454_s14  ;;  %p6459_p5 = scmp.lt.s32.totalorder %s8231_s25, %s8282_s4 }
 0x6bd   : > { %p6460_p8 = scmp.lt.s32.totalorder %s6458_s11, %s6454_s14 }
 0x6be   : > { %p6456_p11 = pnand %p6455_p9, %p8292_p1 }
 0x6bf   : > { %p6461_p6 = por %p6460_p8, %p6459_p5 }
 0x6c0   : > { %p6457_p3 = pneg %p6456_p11 }
 0x6c2   : > { %p6462_p13 = pnand %p6461_p6, %p6457_p3 }
 0x6c4   : > { %6465 = shalt.err (!%p6462_p13)
}
 0x6c5   : > { %s6517_s22 = smov 128   ;;  %s6518_s6 = smov 8  }
 0x6c6   : > { %6068 = dma.vmem_to_hbm [thread:$0]  (%p8292_p1), %s8233_s9, 4096, %s8231_s25, %s5103_s19, %s6517_s22, %s6517_s22, %s6518_s6  }
 0x6c7 PF: > { %s5132_s26 = sand.u32 1, %s6496_s15   ;;  %p8293_p12 = scmp.ne.s32.totalorder %s8288_s28, 0 }
 0x6c8   : > { %p8294_p7 = scmp.ge.s32.totalorder %s6508_s18, 2  ;;  %s5133_s8 = scalar_lea.sflag [#allocation4], %s5132_s26 }
 0x6ca   : > { %p6078_p10 = pnand %p8294_p7, %p8293_p12 }
 0x6cc   : > { %p6079_p0 = pneg %p6078_p10 }
 0x6ce   : > { %6491 = dma.done.wait (%p6079_p0), %s5133_s8, 4096  }
 0x6cf   : > { %6493 = vsyncadd (%p6079_p0), %s5133_s8, 4294963200  ;;  %p20_p2 = scmp.ge.s32.totalorder %s6569_s21, 4   ;;  %s8295_s15 = smov %s6500_s16 }
 0x6d0   : > { %s8296_s16 = smov %s6504_s17  ;;  %s8297_s17 = smov %s6581_s24 }
 0x6d1   : > { %s8298_s18 = smov %s6569_s21  ;;  %22 = sbr.rel (!%p20_p2) target bundleno = 7 (0x7), region = 94 }
 0x6d6   :  { %5138 = vsyncpa [#allocation3], 1 }
 0x6d7   :  { %5140 = vsyncpa [#allocation3 + $0x1], 1 }
 0x6d8   :  { %5141 = vsyncpa [#allocation6], 1 }
 0x6d9   :  { %5143 = vsyncpa [#allocation6 + $0x1], 1 }
 0x6da   :  { %5144 = vsyncpa [#allocation4], 1 }
 0x6db   :  { %5146 = vsyncpa [#allocation4 + $0x1], 1 }

</bundles_post_ra>
